<compile_context>
chip_gen: v7x
topology: tpu7x:2x2x1
jax: 0.10.0
libtpu: 0.0.40
codegen_flags: <defaults>
</compile_context>

<pallas_src>
import jax
import jax.numpy as jnp
from jax.experimental import pallas as pl
from jax.experimental.pallas import tpu as pltpu

KH = KW = 3          # conv taps
C = 256              # channels (fixed by the module)
GROUPS = 64
CPG = C // GROUPS    # channels per group = 4
LPAD = 8             # left zero/align border columns in the VMEM staging scratch
RPAD = 8             # right border columns


def _pick_chunk_rows(TH, W, target_rows=256):
    """Rows per M-chunk so each chunk's (CH*W, C) f32 accumulator stays register-friendly."""
    ch = max(1, min(TH, target_rows // max(W, 1)))
    while TH % ch:
        ch -= 1
    return ch


def _make_relu_gconv_kernel(TH, W, split_128):
    """Build the kernel for a fixed (row-tile, width) so all slices are static."""
    CH = _pick_chunk_rows(TH, W)
    NC = TH // CH
    CH2 = C // 2

    def kernel(x_main_ref, x_top_ref, x_bot_ref, w_ref, o_ref, xpad_ref):
        # x_main_ref : (1, TH, W, C) f32   current row tile
        # x_top_ref  : (1, 1, W, C)  f32   row above the tile (clamped at image top)
        # x_bot_ref  : (1, 1, W, C)  f32   row below the tile (clamped at image bottom)
        # w_ref      : (9, C, C) bf16  or (9, 2, 128, 128) bf16 when split_128
        # o_ref      : (1, TH, W, C) f32
        # xpad_ref   : (TH+2, LPAD+W+RPAD, C) bf16  zero-bordered staging scratch
        h = pl.program_id(1)
        nhb = pl.num_programs(1)

        # Zero only the two border columns the 3x3 windows actually read
        # (col LPAD-1 for kw=0, col LPAD+W for kw=2).  Re-zeroed every step so there are
        # no cross-step / cross-core assumptions about scratch contents.
        zcol = jnp.zeros((TH + 2, 1, C), jnp.bfloat16)
        xpad_ref[:, LPAD - 1:LPAD, :] = zcol
        xpad_ref[:, LPAD + W:LPAD + W + 1, :] = zcol

        # Stage the halo tile into the bf16 scratch (fused ReLU + cast).
        mid = jnp.maximum(x_main_ref[...], 0.0).astype(jnp.bfloat16).reshape(TH, W, C)
        top = jnp.maximum(x_top_ref[...], 0.0).reshape(1, W, C)
        bot = jnp.maximum(x_bot_ref[...], 0.0).reshape(1, W, C)
        top = jnp.where(h > 0, top, 0.0).astype(jnp.bfloat16)        # zero halo at image top
        bot = jnp.where(h < nhb - 1, bot, 0.0).astype(jnp.bfloat16)  # zero halo at image bottom

        xpad_ref[0:1, LPAD:LPAD + W, :] = top
        xpad_ref[1:TH + 1, LPAD:LPAD + W, :] = mid
        xpad_ref[TH + 1:TH + 2, LPAD:LPAD + W, :] = bot

        # 9 taps, accumulated in registers per M-chunk (no VMEM accumulator round-trip);
        # each chunk is stored once, directly into the output block.
        for c in range(NC):
            r0 = c * CH
            if split_128:
                # v5e path: only the two 128x128 diagonal quadrants of the block-diagonal
                # weight are nonzero -> two 128-wide matmuls per tap, half the MACs.
                acc0 = None
                acc1 = None
                for kh in range(KH):
                    for kw in range(KW):
                        t = kh * KW + kw
                        col0 = LPAD - 1 + kw
                        m0 = xpad_ref[r0 + kh:r0 + kh + CH, col0:col0 + W, 0:CH2]
                        m1 = xpad_ref[r0 + kh:r0 + kh + CH, col0:col0 + W, CH2:C]
                        y0 = jnp.dot(m0.reshape(CH * W, CH2), w_ref[t, 0],
                                     preferred_element_type=jnp.float32)
                        y1 = jnp.dot(m1.reshape(CH * W, CH2), w_ref[t, 1],
                                     preferred_element_type=jnp.float32)
                        acc0 = y0 if acc0 is None else acc0 + y0
                        acc1 = y1 if acc1 is None else acc1 + y1
                o_ref[0, r0:r0 + CH, :, 0:CH2] = (
                    acc0.reshape(CH, W, CH2).astype(o_ref.dtype))
                o_ref[0, r0:r0 + CH, :, CH2:C] = (
                    acc1.reshape(CH, W, CH2).astype(o_ref.dtype))
            else:
                acc = None
                for kh in range(KH):
                    for kw in range(KW):
                        t = kh * KW + kw
                        col0 = LPAD - 1 + kw
                        m = xpad_ref[r0 + kh:r0 + kh + CH, col0:col0 + W, :]
                        y = jnp.dot(m.reshape(CH * W, C), w_ref[t],
                                    preferred_element_type=jnp.float32)
                        acc = y if acc is None else acc + y
                o_ref[0, r0:r0 + CH, :, :] = acc.reshape(CH, W, C).astype(o_ref.dtype)

    return kernel


def _pick_tile_h(H, tile_h):
    """Largest divisor of H that is <= tile_h; prefer >= 2 H-blocks per image (megacore)."""
    th = max(1, min(tile_h, H))
    while H % th:
        th -= 1
    if th == H and H > 1:
        th = H // 2
        while H % th:
            th -= 1
    return th


def relu_grouped_conv2d_nhwc(x_nhwc, w_dense_bf16, *, tile_h=28, split_128=False):
    """x_nhwc: (N, H, W, 256) f32.
    w_dense_bf16: (9, 256, 256) bf16 block-diagonal weight, or (9, 2, 128, 128) bf16 halves
    when split_128 is True."""
    N, H, W, Cc = x_nhwc.shape
    assert Cc == C
    assert W % 8 == 0, "width must be a multiple of 8 (sublane tiling)"
    th = _pick_tile_h(H, tile_h)
    hb = H // th
    Wp = LPAD + W + RPAD

    kernel = _make_relu_gconv_kernel(th, W, split_128)

    if split_128:
        w_spec = pl.BlockSpec((KH * KW, 2, C // 2, C // 2), lambda n, h: (0, 0, 0, 0))
    else:
        w_spec = pl.BlockSpec((KH * KW, Cc, Cc), lambda n, h: (0, 0, 0))

    return pl.pallas_call(
        kernel,
        out_shape=jax.ShapeDtypeStruct((N, H, W, Cc), x_nhwc.dtype),
        grid_spec=pltpu.PrefetchScalarGridSpec(
            num_scalar_prefetch=0,
            grid=(N, hb),
            in_specs=[
                # main row tile
                pl.BlockSpec((1, th, W, Cc), lambda n, h: (n, h, 0, 0)),
                # 1-row top halo (block rows of size 1 -> block index == row index), clamped
                pl.BlockSpec((1, 1, W, Cc),
                             lambda n, h: (n, jnp.maximum(h * th - 1, 0), 0, 0)),
                # 1-row bottom halo, clamped
                pl.BlockSpec((1, 1, W, Cc),
                             lambda n, h: (n, jnp.minimum(h * th + th, H - 1), 0, 0)),
                # bf16 block-diagonal weight (constant index map -> DMA'd once)
                w_spec,
            ],
            out_specs=pl.BlockSpec((1, th, W, Cc), lambda n, h: (n, h, 0, 0)),
            scratch_shapes=[
                pltpu.VMEM((th + 2, Wp, Cc), jnp.bfloat16),   # zero-bordered staging slab
            ],
        ),
        compiler_params=pltpu.CompilerParams(
            dimension_semantics=("parallel", "parallel"),
            vmem_limit_bytes=48 * 1024 * 1024),
    )(x_nhwc, x_nhwc, x_nhwc, w_dense_bf16)


def build_dense_weight(w_grouped):
    """Expand grouped conv weight (C_out=256, CPG=4, KH, KW) into a dense block-diagonal
    weight of shape (KH*KW, C_in=256, C_out=256) — one 256x256 matrix per tap (f32)."""
    cout = jnp.arange(C)
    g = cout // CPG
    w_dense = jnp.zeros((KH, KW, C, C), jnp.float32)
    for j in range(CPG):
        # w_dense[kh, kw, g*CPG + j, cout] = w_grouped[cout, j, kh, kw]
        w_dense = w_dense.at[:, :, g * CPG + j, cout].set(
            jnp.transpose(w_grouped[:, j, :, :], (1, 2, 0)))
    return w_dense.reshape(KH * KW, C, C)


def split_dense_weight(w_dense9):
    """(9, 256, 256) -> (9, 2, 128, 128): the two nonzero diagonal quadrants
    (groups 0-31 and 32-63) of the block-diagonal weight."""
    h = C // 2
    return jnp.stack([w_dense9[:, :h, :h], w_dense9[:, h:, h:]], axis=1)


def _default_split_128():
    """Use the 2x128 block-diagonal split only on v5e (128-wide MXU)."""
    try:
        kind = jax.devices()[0].device_kind.lower()
    except Exception:
        return False
    return ("v5 lite" in kind) or ("v5e" in kind) or ("v5litepod" in kind)


def module_forward(x_nchw, w_grouped, *, split_128=None, tile_h=28):
    """Matches M.forward: ReLU followed by grouped conv.  NCHW in / NCHW out."""
    if split_128 is None:
        split_128 = _default_split_128()
    # NOTE: keep activations NHWC end-to-end in a real network to avoid these transposes.
    x_nhwc = jnp.transpose(x_nchw, (0, 2, 3, 1))
    w_dense = build_dense_weight(w_grouped)
    if split_128:
        w_arg = split_dense_weight(w_dense).astype(jnp.bfloat16)
    else:
        w_arg = w_dense.astype(jnp.bfloat16)
    out_nhwc = relu_grouped_conv2d_nhwc(x_nhwc, w_arg, tile_h=tile_h, split_128=split_128)
    return jnp.transpose(out_nhwc, (0, 3, 1, 2))


def reference_forward(x_nchw, w_grouped):
    xr = jnp.maximum(x_nchw, 0.0)
    return jax.lax.conv_general_dilated(
        xr, w_grouped,
        window_strides=(1, 1),
        padding=((1, 1), (1, 1)),
        dimension_numbers=("NCHW", "OIHW", "NCHW"),
        feature_group_count=GROUPS)


if __name__ == "__main__":
    key = jax.random.PRNGKey(0)
    k_x, k_w = jax.random.split(key)

    # Small spatial size (module uses 56x56); channel/group structure kept exact.
    N, H, W = 2, 16, 16
    x = jax.random.normal(k_x, (N, C, H, W), dtype=jnp.float32)
    # Shape matches nn.Conv2d(256, 256, 3, groups=64, bias=False).weight: (256, 4, 3, 3)
    w_grouped = 0.05 * jax.random.normal(k_w, (C, CPG, KH, KW), dtype=jnp.float32)

    ref = jax.block_until_ready(reference_forward(x, w_grouped))

    # Exercise both codegen paths so the kernel is validated regardless of which chip
    # this runs on (256-wide path for v6e/v7x, 2x128 split path for v5e).
    for split in (False, True):
        out = jax.block_until_ready(module_forward(x, w_grouped, split_128=split))
        assert out.shape == (N, C, H, W), out.shape
        # MXU operands are bf16 (effective K per output channel is only 4) -> tol ~1e-2.
        max_err = float(jnp.max(jnp.abs(out - ref)))
        assert jnp.allclose(out, ref, atol=2e-2, rtol=2e-2), (split, max_err)

    # Also run the chip-gated default once (matches one of the two above).
    jax.block_until_ready(module_forward(x, w_grouped))

    print("KERNEL_OK")
</pallas_src>

<mosaic_0001>
module attributes {stable_mosaic.version = 11 : i64} {
  func.func @kernel(%arg0: i32, %arg1: i32, %arg2: memref<1x8x16x256xf32, #tpu.memory_space<vmem>>, %arg3: memref<1x1x16x256xf32, #tpu.memory_space<vmem>>, %arg4: memref<1x1x16x256xf32, #tpu.memory_space<vmem>>, %arg5: memref<9x256x256xbf16, #tpu.memory_space<vmem>>, %arg6: memref<1x8x16x256xf32, #tpu.memory_space<vmem>>, %arg7: memref<10x32x256xbf16, #tpu.memory_space<vmem>>) attributes {dimension_semantics = [#tpu.dimension_semantics<parallel>, #tpu.dimension_semantics<parallel>], iteration_bounds = array<i64: 2, 2>, scalar_prefetch = 0 : i64, scratch_operands = 1 : i64, tpu.core_type = #tpu.core_type<tc>, window_params = [{transform_indices = @transform_0, window_bounds = array<i64: 1, 8, 16, 256>}, {transform_indices = @transform_1, window_bounds = array<i64: 1, 1, 16, 256>}, {transform_indices = @transform_2, window_bounds = array<i64: 1, 1, 16, 256>}, {pipeline_mode = #tpu.pipeline_mode<synchronous>, transform_indices = @transform_3, window_bounds = array<i64: 9, 256, 256>}, {transform_indices = @transform_4, window_bounds = array<i64: 1, 8, 16, 256>}]} {
    %cst = arith.constant 0.000000e+00 : bf16
    %0 = vector.broadcast %cst : bf16 to vector<10x1x256xbf16>
    %c0 = arith.constant 0 : index
    %c7 = arith.constant 7 : index
    %c0_0 = arith.constant 0 : index
    %1 = vector.load %arg7[%c0, %c7, %c0_0] : memref<10x32x256xbf16, #tpu.memory_space<vmem>>, vector<10x1x256xbf16>
    tpu.vector_store %arg7[%c0, %c7, %c0_0], %0 {strides = array<i32>} : memref<10x32x256xbf16, #tpu.memory_space<vmem>>, vector<10x1x256xbf16>,
    %c0_1 = arith.constant 0 : index
    %c24 = arith.constant 24 : index
    %c0_2 = arith.constant 0 : index
    %2 = vector.load %arg7[%c0_1, %c24, %c0_2] : memref<10x32x256xbf16, #tpu.memory_space<vmem>>, vector<10x1x256xbf16>
    tpu.vector_store %arg7[%c0_1, %c24, %c0_2], %0 {strides = array<i32>} : memref<10x32x256xbf16, #tpu.memory_space<vmem>>, vector<10x1x256xbf16>,
    %c0_3 = arith.constant 0 : index
    %c0_4 = arith.constant 0 : index
    %c0_5 = arith.constant 0 : index
    %c0_6 = arith.constant 0 : index
    %3 = vector.load %arg2[%c0_3, %c0_4, %c0_5, %c0_6] : memref<1x8x16x256xf32, #tpu.memory_space<vmem>>, vector<1x8x16x256xf32>
    %cst_7 = arith.constant 0.000000e+00 : f32
    %4 = vector.broadcast %cst_7 : f32 to vector<1x8x16x256xf32>
    %5 = arith.maximumf %3, %4 : vector<1x8x16x256xf32>
    %6 = arith.truncf %5 : vector<1x8x16x256xf32> to vector<1x8x16x256xbf16>
    %7 = vector.shape_cast %6 : vector<1x8x16x256xbf16> to vector<8x16x256xbf16>
    %c0_8 = arith.constant 0 : index
    %c0_9 = arith.constant 0 : index
    %c0_10 = arith.constant 0 : index
    %c0_11 = arith.constant 0 : index
    %8 = vector.load %arg3[%c0_8, %c0_9, %c0_10, %c0_11] : memref<1x1x16x256xf32, #tpu.memory_space<vmem>>, vector<1x1x16x256xf32>
    %cst_12 = arith.constant 0.000000e+00 : f32
    %9 = vector.broadcast %cst_12 : f32 to vector<1x1x16x256xf32>
    %10 = arith.maximumf %8, %9 : vector<1x1x16x256xf32>
    %11 = vector.shape_cast %10 : vector<1x1x16x256xf32> to vector<1x16x256xf32>
    %c0_13 = arith.constant 0 : index
    %c0_14 = arith.constant 0 : index
    %c0_15 = arith.constant 0 : index
    %c0_16 = arith.constant 0 : index
    %12 = vector.load %arg4[%c0_13, %c0_14, %c0_15, %c0_16] : memref<1x1x16x256xf32, #tpu.memory_space<vmem>>, vector<1x1x16x256xf32>
    %cst_17 = arith.constant 0.000000e+00 : f32
    %13 = vector.broadcast %cst_17 : f32 to vector<1x1x16x256xf32>
    %14 = arith.maximumf %12, %13 : vector<1x1x16x256xf32>
    %15 = vector.shape_cast %14 : vector<1x1x16x256xf32> to vector<1x16x256xf32>
    %c0_i32 = arith.constant 0 : i32
    %16 = arith.cmpi sgt, %arg1, %c0_i32 : i32
    %cst_18 = arith.constant 0.000000e+00 : f32
    %17 = vector.broadcast %cst_18 : f32 to vector<1x16x256xf32>
    %18 = arith.select %16, %11, %17 : vector<1x16x256xf32>
    %19 = arith.truncf %18 : vector<1x16x256xf32> to vector<1x16x256xbf16>
    %c1_i32 = arith.constant 1 : i32
    %20 = arith.cmpi slt, %arg1, %c1_i32 : i32
    %cst_19 = arith.constant 0.000000e+00 : f32
    %21 = vector.broadcast %cst_19 : f32 to vector<1x16x256xf32>
    %22 = arith.select %20, %15, %21 : vector<1x16x256xf32>
    %23 = arith.truncf %22 : vector<1x16x256xf32> to vector<1x16x256xbf16>
    %c0_20 = arith.constant 0 : index
    %c8 = arith.constant 8 : index
    %c0_21 = arith.constant 0 : index
    %24 = vector.load %arg7[%c0_20, %c8, %c0_21] : memref<10x32x256xbf16, #tpu.memory_space<vmem>>, vector<1x16x256xbf16>
    tpu.vector_store %arg7[%c0_20, %c8, %c0_21], %19 {strides = array<i32>} : memref<10x32x256xbf16, #tpu.memory_space<vmem>>, vector<1x16x256xbf16>,
    %c1 = arith.constant 1 : index
    %c8_22 = arith.constant 8 : index
    %c0_23 = arith.constant 0 : index
    %25 = vector.load %arg7[%c1, %c8_22, %c0_23] : memref<10x32x256xbf16, #tpu.memory_space<vmem>>, vector<8x16x256xbf16>
    tpu.vector_store %arg7[%c1, %c8_22, %c0_23], %7 {strides = array<i32>} : memref<10x32x256xbf16, #tpu.memory_space<vmem>>, vector<8x16x256xbf16>,
    %c9 = arith.constant 9 : index
    %c8_24 = arith.constant 8 : index
    %c0_25 = arith.constant 0 : index
    %26 = vector.load %arg7[%c9, %c8_24, %c0_25] : memref<10x32x256xbf16, #tpu.memory_space<vmem>>, vector<1x16x256xbf16>
    tpu.vector_store %arg7[%c9, %c8_24, %c0_25], %23 {strides = array<i32>} : memref<10x32x256xbf16, #tpu.memory_space<vmem>>, vector<1x16x256xbf16>,
    %c0_26 = arith.constant 0 : index
    %c7_27 = arith.constant 7 : index
    %c0_28 = arith.constant 0 : index
    %27 = vector.load %arg7[%c0_26, %c7_27, %c0_28] : memref<10x32x256xbf16, #tpu.memory_space<vmem>>, vector<8x16x256xbf16>
    %28 = vector.shape_cast %27 : vector<8x16x256xbf16> to vector<128x256xbf16>
    %c0_29 = arith.constant 0 : index
    %c0_30 = arith.constant 0 : index
    %c0_31 = arith.constant 0 : index
    %29 = vector.load %arg5[%c0_29, %c0_30, %c0_31] : memref<9x256x256xbf16, #tpu.memory_space<vmem>>, vector<1x256x256xbf16>
    %30 = vector.shape_cast %29 : vector<1x256x256xbf16> to vector<256x256xbf16>
    %cst_32 = arith.constant dense<0.000000e+00> : vector<128x256xf32>
    %31 = tpu.matmul %28, %30, %cst_32 {dimension_numbers = #tpu.dot_dimension_numbers<[1], [0], [0], [1], [0, 0, 1, 1], [], []>} : vector<128x256xbf16>, vector<256x256xbf16>, vector<128x256xf32> -> vector<128x256xf32>
    %c0_33 = arith.constant 0 : index
    %c8_34 = arith.constant 8 : index
    %c0_35 = arith.constant 0 : index
    %32 = vector.load %arg7[%c0_33, %c8_34, %c0_35] : memref<10x32x256xbf16, #tpu.memory_space<vmem>>, vector<8x16x256xbf16>
    %33 = vector.shape_cast %32 : vector<8x16x256xbf16> to vector<128x256xbf16>
    %c1_36 = arith.constant 1 : index
    %c0_37 = arith.constant 0 : index
    %c0_38 = arith.constant 0 : index
    %34 = vector.load %arg5[%c1_36, %c0_37, %c0_38] : memref<9x256x256xbf16, #tpu.memory_space<vmem>>, vector<1x256x256xbf16>
    %35 = vector.shape_cast %34 : vector<1x256x256xbf16> to vector<256x256xbf16>
    %cst_39 = arith.constant dense<0.000000e+00> : vector<128x256xf32>
    %36 = tpu.matmul %33, %35, %cst_39 {dimension_numbers = #tpu.dot_dimension_numbers<[1], [0], [0], [1], [0, 0, 1, 1], [], []>} : vector<128x256xbf16>, vector<256x256xbf16>, vector<128x256xf32> -> vector<128x256xf32>
    %37 = arith.addf %31, %36 : vector<128x256xf32>
    %c0_40 = arith.constant 0 : index
    %c9_41 = arith.constant 9 : index
    %c0_42 = arith.constant 0 : index
    %38 = vector.load %arg7[%c0_40, %c9_41, %c0_42] : memref<10x32x256xbf16, #tpu.memory_space<vmem>>, vector<8x16x256xbf16>
    %39 = vector.shape_cast %38 : vector<8x16x256xbf16> to vector<128x256xbf16>
    %c2 = arith.constant 2 : index
    %c0_43 = arith.constant 0 : index
    %c0_44 = arith.constant 0 : index
    %40 = vector.load %arg5[%c2, %c0_43, %c0_44] : memref<9x256x256xbf16, #tpu.memory_space<vmem>>, vector<1x256x256xbf16>
    %41 = vector.shape_cast %40 : vector<1x256x256xbf16> to vector<256x256xbf16>
    %cst_45 = arith.constant dense<0.000000e+00> : vector<128x256xf32>
    %42 = tpu.matmul %39, %41, %cst_45 {dimension_numbers = #tpu.dot_dimension_numbers<[1], [0], [0], [1], [0, 0, 1, 1], [], []>} : vector<128x256xbf16>, vector<256x256xbf16>, vector<128x256xf32> -> vector<128x256xf32>
    %43 = arith.addf %37, %42 : vector<128x256xf32>
    %c1_46 = arith.constant 1 : index
    %c7_47 = arith.constant 7 : index
    %c0_48 = arith.constant 0 : index
    %44 = vector.load %arg7[%c1_46, %c7_47, %c0_48] : memref<10x32x256xbf16, #tpu.memory_space<vmem>>, vector<8x16x256xbf16>
    %45 = vector.shape_cast %44 : vector<8x16x256xbf16> to vector<128x256xbf16>
    %c3 = arith.constant 3 : index
    %c0_49 = arith.constant 0 : index
    %c0_50 = arith.constant 0 : index
    %46 = vector.load %arg5[%c3, %c0_49, %c0_50] : memref<9x256x256xbf16, #tpu.memory_space<vmem>>, vector<1x256x256xbf16>
    %47 = vector.shape_cast %46 : vector<1x256x256xbf16> to vector<256x256xbf16>
    %cst_51 = arith.constant dense<0.000000e+00> : vector<128x256xf32>
    %48 = tpu.matmul %45, %47, %cst_51 {dimension_numbers = #tpu.dot_dimension_numbers<[1], [0], [0], [1], [0, 0, 1, 1], [], []>} : vector<128x256xbf16>, vector<256x256xbf16>, vector<128x256xf32> -> vector<128x256xf32>
    %49 = arith.addf %43, %48 : vector<128x256xf32>
    %c1_52 = arith.constant 1 : index
    %c8_53 = arith.constant 8 : index
    %c0_54 = arith.constant 0 : index
    %50 = vector.load %arg7[%c1_52, %c8_53, %c0_54] : memref<10x32x256xbf16, #tpu.memory_space<vmem>>, vector<8x16x256xbf16>
    %51 = vector.shape_cast %50 : vector<8x16x256xbf16> to vector<128x256xbf16>
    %c4 = arith.constant 4 : index
    %c0_55 = arith.constant 0 : index
    %c0_56 = arith.constant 0 : index
    %52 = vector.load %arg5[%c4, %c0_55, %c0_56] : memref<9x256x256xbf16, #tpu.memory_space<vmem>>, vector<1x256x256xbf16>
    %53 = vector.shape_cast %52 : vector<1x256x256xbf16> to vector<256x256xbf16>
    %cst_57 = arith.constant dense<0.000000e+00> : vector<128x256xf32>
    %54 = tpu.matmul %51, %53, %cst_57 {dimension_numbers = #tpu.dot_dimension_numbers<[1], [0], [0], [1], [0, 0, 1, 1], [], []>} : vector<128x256xbf16>, vector<256x256xbf16>, vector<128x256xf32> -> vector<128x256xf32>
    %55 = arith.addf %49, %54 : vector<128x256xf32>
    %c1_58 = arith.constant 1 : index
    %c9_59 = arith.constant 9 : index
    %c0_60 = arith.constant 0 : index
    %56 = vector.load %arg7[%c1_58, %c9_59, %c0_60] : memref<10x32x256xbf16, #tpu.memory_space<vmem>>, vector<8x16x256xbf16>
    %57 = vector.shape_cast %56 : vector<8x16x256xbf16> to vector<128x256xbf16>
    %c5 = arith.constant 5 : index
    %c0_61 = arith.constant 0 : index
    %c0_62 = arith.constant 0 : index
    %58 = vector.load %arg5[%c5, %c0_61, %c0_62] : memref<9x256x256xbf16, #tpu.memory_space<vmem>>, vector<1x256x256xbf16>
    %59 = vector.shape_cast %58 : vector<1x256x256xbf16> to vector<256x256xbf16>
    %cst_63 = arith.constant dense<0.000000e+00> : vector<128x256xf32>
    %60 = tpu.matmul %57, %59, %cst_63 {dimension_numbers = #tpu.dot_dimension_numbers<[1], [0], [0], [1], [0, 0, 1, 1], [], []>} : vector<128x256xbf16>, vector<256x256xbf16>, vector<128x256xf32> -> vector<128x256xf32>
    %61 = arith.addf %55, %60 : vector<128x256xf32>
    %c2_64 = arith.constant 2 : index
    %c7_65 = arith.constant 7 : index
    %c0_66 = arith.constant 0 : index
    %62 = vector.load %arg7[%c2_64, %c7_65, %c0_66] : memref<10x32x256xbf16, #tpu.memory_space<vmem>>, vector<8x16x256xbf16>
    %63 = vector.shape_cast %62 : vector<8x16x256xbf16> to vector<128x256xbf16>
    %c6 = arith.constant 6 : index
    %c0_67 = arith.constant 0 : index
    %c0_68 = arith.constant 0 : index
    %64 = vector.load %arg5[%c6, %c0_67, %c0_68] : memref<9x256x256xbf16, #tpu.memory_space<vmem>>, vector<1x256x256xbf16>
    %65 = vector.shape_cast %64 : vector<1x256x256xbf16> to vector<256x256xbf16>
    %cst_69 = arith.constant dense<0.000000e+00> : vector<128x256xf32>
    %66 = tpu.matmul %63, %65, %cst_69 {dimension_numbers = #tpu.dot_dimension_numbers<[1], [0], [0], [1], [0, 0, 1, 1], [], []>} : vector<128x256xbf16>, vector<256x256xbf16>, vector<128x256xf32> -> vector<128x256xf32>
    %67 = arith.addf %61, %66 : vector<128x256xf32>
    %c2_70 = arith.constant 2 : index
    %c8_71 = arith.constant 8 : index
    %c0_72 = arith.constant 0 : index
    %68 = vector.load %arg7[%c2_70, %c8_71, %c0_72] : memref<10x32x256xbf16, #tpu.memory_space<vmem>>, vector<8x16x256xbf16>
    %69 = vector.shape_cast %68 : vector<8x16x256xbf16> to vector<128x256xbf16>
    %c7_73 = arith.constant 7 : index
    %c0_74 = arith.constant 0 : index
    %c0_75 = arith.constant 0 : index
    %70 = vector.load %arg5[%c7_73, %c0_74, %c0_75] : memref<9x256x256xbf16, #tpu.memory_space<vmem>>, vector<1x256x256xbf16>
    %71 = vector.shape_cast %70 : vector<1x256x256xbf16> to vector<256x256xbf16>
    %cst_76 = arith.constant dense<0.000000e+00> : vector<128x256xf32>
    %72 = tpu.matmul %69, %71, %cst_76 {dimension_numbers = #tpu.dot_dimension_numbers<[1], [0], [0], [1], [0, 0, 1, 1], [], []>} : vector<128x256xbf16>, vector<256x256xbf16>, vector<128x256xf32> -> vector<128x256xf32>
    %73 = arith.addf %67, %72 : vector<128x256xf32>
    %c2_77 = arith.constant 2 : index
    %c9_78 = arith.constant 9 : index
    %c0_79 = arith.constant 0 : index
    %74 = vector.load %arg7[%c2_77, %c9_78, %c0_79] : memref<10x32x256xbf16, #tpu.memory_space<vmem>>, vector<8x16x256xbf16>
    %75 = vector.shape_cast %74 : vector<8x16x256xbf16> to vector<128x256xbf16>
    %c8_80 = arith.constant 8 : index
    %c0_81 = arith.constant 0 : index
    %c0_82 = arith.constant 0 : index
    %76 = vector.load %arg5[%c8_80, %c0_81, %c0_82] : memref<9x256x256xbf16, #tpu.memory_space<vmem>>, vector<1x256x256xbf16>
    %77 = vector.shape_cast %76 : vector<1x256x256xbf16> to vector<256x256xbf16>
    %cst_83 = arith.constant dense<0.000000e+00> : vector<128x256xf32>
    %78 = tpu.matmul %75, %77, %cst_83 {dimension_numbers = #tpu.dot_dimension_numbers<[1], [0], [0], [1], [0, 0, 1, 1], [], []>} : vector<128x256xbf16>, vector<256x256xbf16>, vector<128x256xf32> -> vector<128x256xf32>
    %79 = arith.addf %73, %78 : vector<128x256xf32>
    %80 = vector.shape_cast %79 : vector<128x256xf32> to vector<8x16x256xf32>
    %c0_84 = arith.constant 0 : index
    %c0_85 = arith.constant 0 : index
    %c0_86 = arith.constant 0 : index
    %c0_87 = arith.constant 0 : index
    %81 = vector.load %arg6[%c0_84, %c0_85, %c0_86, %c0_87] : memref<1x8x16x256xf32, #tpu.memory_space<vmem>>, vector<1x8x16x256xf32>
    %82 = vector.shape_cast %81 : vector<1x8x16x256xf32> to vector<8x16x256xf32>
    %83 = vector.shape_cast %80 : vector<8x16x256xf32> to vector<1x8x16x256xf32>
    tpu.vector_store %arg6[%c0_84, %c0_85, %c0_86, %c0_87], %83 {strides = array<i32>} : memref<1x8x16x256xf32, #tpu.memory_space<vmem>>, vector<1x8x16x256xf32>,
    return
  }
  func.func @transform_0(%arg0: i32, %arg1: i32) -> (i32, i32, i32, i32) {
    %c0_i32 = arith.constant 0 : i32
    %c0_i32_0 = arith.constant 0 : i32
    %c0_i32_1 = arith.constant 0 : i32
    return %arg0, %arg1, %c0_i32, %c0_i32_0 : i32, i32, i32, i32
  }
  func.func @transform_1(%arg0: i32, %arg1: i32) -> (i32, i32, i32, i32) {
    %c8_i32 = arith.constant 8 : i32
    %0 = arith.muli %arg1, %c8_i32 : i32
    %c1_i32 = arith.constant 1 : i32
    %1 = arith.subi %0, %c1_i32 : i32
    %c0_i32 = arith.constant 0 : i32
    %2 = arith.maxsi %1, %c0_i32 : i32
    %c0_i32_0 = arith.constant 0 : i32
    %c0_i32_1 = arith.constant 0 : i32
    %c0_i32_2 = arith.constant 0 : i32
    return %arg0, %2, %c0_i32_0, %c0_i32_1 : i32, i32, i32, i32
  }
  func.func @transform_2(%arg0: i32, %arg1: i32) -> (i32, i32, i32, i32) {
    %c8_i32 = arith.constant 8 : i32
    %0 = arith.muli %arg1, %c8_i32 : i32
    %c8_i32_0 = arith.constant 8 : i32
    %1 = arith.addi %0, %c8_i32_0 : i32
    %c15_i32 = arith.constant 15 : i32
    %2 = arith.minsi %1, %c15_i32 : i32
    %c0_i32 = arith.constant 0 : i32
    %c0_i32_1 = arith.constant 0 : i32
    %c0_i32_2 = arith.constant 0 : i32
    return %arg0, %2, %c0_i32, %c0_i32_1 : i32, i32, i32, i32
  }
  func.func @transform_3(%arg0: i32, %arg1: i32) -> (i32, i32, i32) {
    %c0_i32 = arith.constant 0 : i32
    %c0_i32_0 = arith.constant 0 : i32
    %c0_i32_1 = arith.constant 0 : i32
    %c0_i32_2 = arith.constant 0 : i32
    return %c0_i32, %c0_i32_0, %c0_i32_1 : i32, i32, i32
  }
  func.func @transform_4(%arg0: i32, %arg1: i32) -> (i32, i32, i32, i32) {
    %c0_i32 = arith.constant 0 : i32
    %c0_i32_0 = arith.constant 0 : i32
    %c0_i32_1 = arith.constant 0 : i32
    return %arg0, %arg1, %c0_i32, %c0_i32_0 : i32, i32, i32, i32
  }
}

</mosaic_0001>

<bundles_post_ra>
// kernel: tpu_custom_call.1
= control target key start
LH: loop header
LB: loop body
LE: loop exit
PB: predicated region body
PF: predicated region fallthrough
CT: control target
= control target key end

     0   :  { %s9156_s0 = inlined_call_operand.hbm [shape: f32[2,16,16,256], index: 0, kind: input, shape index: {}]   ;;  %s9157_s1 = inlined_call_operand.hbm [shape: f32[2,16,16,256], index: 1, kind: input, shape index: {}]   ;;  %s9158_s2 = inlined_call_operand.hbm [shape: f32[2,16,16,256], index: 2, kind: input, shape index: {}]   ;;  %s9159_s3 = inlined_call_operand.hbm [shape: bf16[9,256,256], index: 3, kind: input, shape index: {}]   ;;  %s9160_s4 = inlined_call_operand.hbm [shape: f32[2,16,16,256], index: 4, kind: output, shape index: {}]  }
   0x1   :  { %9187 = sst [smem:[#allocation33_spill]] %s9156_s0 }
   0x2   :  { %9188 = sst [smem:[#allocation34_spill]] %s9157_s1 }
   0x3   :  { %9189 = sst [smem:[#allocation35_spill]] %s9158_s2 }
   0x4   :  { %9190 = sst [smem:[#allocation36_spill]] %s9159_s3 }
   0x5   :  { %9191 = sst [smem:[#allocation37_spill]] %s9160_s4 }
   0x6   :  { %9 = vsyncpa [#allocation4], 0 }
   0x7   :  { %11 = vsyncpa [#allocation4 + $0x1], 0 }
   0x8   :  { %12 = vsyncpa [#allocation7], 0 }
   0x9   :  { %14 = vsyncpa [#allocation7 + $0x1], 0 }
   0xa   :  { %15 = vsyncpa [#allocation10], 0 }
   0xb   :  { %16 = vsyncpa [#allocation5], 0 }
   0xc   :  { %18 = vsyncpa [#allocation5 + $0x1], 0  ;;  %s7680_s15 = smov 0   ;;  %s7682_s16 = smov 0  }
   0xd   :  { %s7684_s17 = smov 0   ;;  %s7686_s18 = smov 0  }
   0xe   :  { %s7688_s19 = smov 0   ;;  %s7690_s20 = smov 0  }
   0xf   :  { %s7692_s21 = smov 0   ;;  %s7694_s22 = smov 0  }
  0x10   :  { %s7696_s23 = smov 0   ;;  %s7698_s24 = smov 0  }
  0x11   :  { %s7700_s25 = smov 0   ;;  %s7702_s26 = smov 0  }
  0x12   :  { %s7704_s27 = smov 0   ;;  %s7706_s28 = smov 0  }
  0x13 LB: > { %9192 = sst [smem:[#allocation17_spill]] %s7590_s15  ;;  %s33_s29 = sadd.s32 1, %s7634_s26  ;;  %s7642_s28 = sphi %s7706_s28, %s24_s28   ;;  %s7638_s27 = sphi %s7704_s27, %s9271_s27   ;;  %s7634_s26 = sphi %s7702_s26, %s9270_s26   ;;  %s7630_s25 = sphi %s7700_s25, %s9269_s25   ;;  %s7626_s24 = sphi %s7698_s24, %s9268_s24   ;;  %s7622_s23 = sphi %s7696_s23, %s9267_s23   ;;  %s7618_s22 = sphi %s7694_s22, %s9276_s22   ;;  %s7614_s21 = sphi %s7692_s21, %s9275_s21   ;;  %s7610_s20 = sphi %s7690_s20, %s9265_s20   ;;  %s7606_s19 = sphi %s7688_s19, %s9274_s19   ;;  %s7602_s18 = sphi %s7686_s18, %s9273_s18   ;;  %s7598_s17 = sphi %s7684_s17, %s9272_s17   ;;  %s7594_s16 = sphi %s7682_s16, %s9263_s16   ;;  %s7590_s15 = sphi %s7680_s15, %s9262_s15  }
  0x14   : > { %9193 = sst [smem:[#allocation18_spill]] %s7594_s16  ;;  %s36_s30 = sadd.s32 1, %s7638_s27 }
  0x15   : > { %9194 = sst [smem:[#allocation19_spill]] %s7598_s17  ;;  %p34_p0 = scmp.ge.s32.totalorder %s33_s29, 2 }
  0x16   : > { %9195 = sst [smem:[#allocation20_spill]] %s7610_s20  ;;  %p9172_p1 = scmp.eq.s32.totalorder %s7642_s28, 0 }
  0x17   : > { %9196 = sst [smem:[#allocation21_spill]] %s7622_s23  ;;  %s6102_s5 = sshll.u32 %s7634_s26, 3 }
  0x18   : > { %9197 = sst [smem:[#allocation22_spill]] %s7626_s24  ;;  %s81_s6 = sadd.s32 1, %s7610_s20 }
  0x19   : > { %9198 = sst [smem:[#allocation23_spill]] %s7630_s25  ;;  %s9278_s29 = smov (%p34_p0, %s33_s29), 0 }
  0x1a   : > { %9199 = sst [smem:[#allocation24_spill]] %s7634_s26  ;;  %s9280_s30 = smov (!%p34_p0, %s36_s30), %s7638_s27 }
  0x1b   : > { %9200 = sst [smem:[#allocation25_spill]] %s7638_s27  ;;  %s41_s7 = ssub.s32 %s7634_s26, %s9278_s29 }
  0x1c   : > { %9201 = sst [smem:[#allocation26_spill]] %s9278_s29  ;;  %s6103_s8 = sadd.s32 4294967295, %s6102_s5 }
  0x1d   : > { %p38_p2 = scmp.ge.s32.totalorder %s9280_s30, 2  ;;  %p70_p3 = scmp.gt.s32.totalorder %s6103_s8, 0 }
  0x1e   : > { %s6104_s9 = sshll.u32 %s9278_s29, 3  ;;  %p88_p4 = scmp.ne.s32.totalorder %s7610_s20, %s7606_s19 }
  0x1f   : > { %s9282_s30 = smov (%p38_p2, %s9280_s30), 0  ;;  %s9284_s8 = smov (!%p70_p3, %s6103_s8), 0 }
  0x20   : > { %9202 = sst [smem:[#allocation27_spill]] %s9282_s30  ;;  %s7767_s10 = ssub.s32 %s7638_s27, %s9282_s30 }
  0x21   : > { %9203 = sst [smem:[#allocation28_spill]] %s7767_s10  ;;  %s6105_s11 = sadd.s32 4294967295, %s6104_s9 }
  0x22   : > { %s7770_s12 = sor.u32 %s41_s7, %s7767_s10  ;;  %p74_p5 = scmp.gt.s32.totalorder %s6105_s11, 0 }
  0x23   : > { %p7775_p7 = por %p88_p4, %p9172_p1  ;;  %p94_p8 = scmp.ne.s32.totalorder %s7606_s19, %s7602_s18 }
  0x24   : > { %s9286_s11 = smov (!%p74_p5, %s6105_s11), 0  ;;  %s7781_s14 = sadd.s32 8, %s6102_s5 }
  0x25   : > { %9205 = sst [smem:[#allocation29_spill]] %s7781_s14  ;;  %s77_s30 = ssub.s32 %s9284_s8, %s9286_s11 }
  0x26   : > { %s78_s29 = sor.u32 %s77_s30, %s7767_s10  ;;  %s7785_s7 = sadd.s32 8, %s6104_s9 }
  0x27   : > { %p79_p10 = scmp.eq.s32.totalorder %s78_s29, 0  ;;  %p9171_p12 = scmp.lt.s32.totalorder %s7642_s28, 4 }
  0x28   : > { %s7793_s25 = sshll.u32 %s7638_s27, 6  ;;  %s240_s24 = sand.u32 1, %s7642_s28  }
  0x29   : > { %s7790_s4 = scalar_select %p79_p10, %s7610_s20, %s81_s6  }
  0x2a   : > { %s242_s5 = sand.u32 1, %s7610_s20   ;;  %s6119_s15 = sshll.u32 %s9284_s8, 2 }
  0x2b   : > { %9206 = sst [smem:[#allocation30_spill]] %s7790_s4  ;;  %s6116_s2 = sshll.u32 %s242_s5, 5 }
  0x2c   : > { %s254_s11 = sadd.s32 %s6119_s15, %s7793_s25  ;;  %s244_s30 = scalar_lea.vmem [#allocation6], %s6116_s2 }
  0x2d   : > { %s6121_s16 = sshll.u32 %s254_s11, 7  ;;  %s257_s9 = sshll.u32 %s244_s30, 4  ;;  %s7803_s9 = int_to_ptr.vmem [resolvable:$true] %s257_s9 }
  0x2e   : > { %s9207_s1 = sld [smem:[#allocation34_spill]]  ;;  %p7809_p13 = pnand %p9171_p12, %p7775_p7 }
  0x2f   : > { %s7813_s2 = scalar_lea.sflag [#allocation7], %s240_s24 }
  0x30   : > { %p7368_p2 = pneg %p7809_p13 }
  0x34   : > { %s7801_s17 = scalar_lea.hbm %s9207_s1, %s6121_s16  ;;  %s7371_s8 = scalar_lea.hbm %s9207_s1, 16384 }
  0x35   : > { %s7366_s15 = scalar_lea.hbm %s7801_s17, 512  ;;  %p7372_p5 = scmp.lt.u32.totalorder %s7801_s17, %s9207_s1 }
  0x36   : > { %p7367_p0 = scmp.ne.s32.totalorder %s7801_s17, %s7366_s15  ;;  %p7373_p7 = scmp.lt.u32.totalorder %s7371_s8, %s7366_s15 }
  0x37   : > { %p7375_p11 = scmp.lt.u32.totalorder %s7366_s15, %s7801_s17 }
  0x38   : > { %p7369_p3 = pnand %p7368_p2, %p7367_p0  ;;  %p7374_p10 = por %p7373_p7, %p7372_p5 }
  0x3a   : > { %p7370_p4 = pneg %p7369_p3  ;;  %p7376_p9 = por %p7375_p11, %p7374_p10 }
  0x3c   : > { %p7377_p12 = pnand %p7376_p9, %p7370_p4 }
  0x3e   : > { %7380 = shalt.err (!%p7377_p12)
}
  0x3f   : > { %s7381_s24 = scalar_lea.vmem %s7803_s9, 512  ;;  %s7644_s14 = smov [#allocation6]  }
  0x40   : > { %p7382_p0 = scmp.ne.s32.totalorder %s7803_s9, %s7381_s24  ;;  %s7386_s5 = sshll.u32 %s7644_s14, 4  ;;  %s7387_s5 = int_to_ptr.vmem [resolvable:$false] %s7386_s5 }
  0x41   : > { %s7388_s11 = scalar_lea.vmem %s7387_s5, 1024  ;;  %p7389_p6 = scmp.lt.s32.totalorder %s7803_s9, %s7387_s5 }
  0x42   : > { %p7384_p3 = pnand %p7382_p0, %p7368_p2  ;;  %p7390_p5 = scmp.lt.s32.totalorder %s7388_s11, %s7381_s24 }
  0x44   : > { %p7385_p1 = pneg %p7384_p3  ;;  %p7391_p7 = por %p7390_p5, %p7389_p6 }
  0x46   : > { %p7392_p11 = pnand %p7391_p7, %p7385_p1 }
  0x48   : > { %7395 = shalt.err (!%p7392_p11)
}
  0x49   : > { %s9176_s30 = smov 256   ;;  %s9178_s15 = smov 16  }
  0x4a   : > { %6740 = dma.hbm_to_vmem [thread:$0]  (!%p7809_p13), %s7801_s17, 512, %s7803_s9, %s7813_s2, %s9176_s30, %s9176_s30, %s9178_s15  }
  0x4b   : > { %s7845_s16 = sadd.s32 4294967295, %s7642_s28   ;;  %p6108_p1 = scmp.ge.s32.totalorder %s7642_s28, 1 }
  0x4c   : > { %p9173_p6 = scmp.eq.s32.totalorder %s7845_s16, 0  ;;  %p190_p12 = scmp.lt.s32.totalorder %s7642_s28, 5 }
  0x4d   : > { %s7647_s17 = smov [#allocation9]   ;;  %s9212_s3 = sld [smem:[#allocation36_spill]] }
  0x4e   : > { %p7856_p2 = por %p94_p8, %p9173_p6  ;;  %p7860_p4 = pnand %p6108_p1, %p190_p12 }
  0x4f   : > { %s202_s9 = sshll.u32 %s7647_s17, 4  ;;  %s203_s9 = int_to_ptr.vmem [resolvable:$true] %s202_s9 }
  0x50   : > { %s9209_s6 = scalar_select %p7856_p2, 1, 0 }
  0x51   : > { %s9210_s29 = scalar_select %p7860_p4, 1, 0 }
  0x52   : > { %p6730_p13 = pneg %p7860_p4 }
  0x53   : > { %s7396_s13 = scalar_lea.hbm %s9212_s3, 36864 }
  0x54   : > { %p7868_p10 = pnand %p6730_p13, %p9173_p6  ;;  %p7397_p8 = scmp.ne.s32.totalorder %s9212_s3, %s7396_s13 }
  0x55   : > { %p7403_p7 = scmp.lt.u32.totalorder %s7396_s13, %s9212_s3 }
  0x56   : > { %p7398_p0 = pneg %p7868_p10 }
  0x58   : > { %p7399_p3 = pnand %p7398_p0, %p7397_p8 }
  0x5a   : > { %p7400_p5 = pneg %p7399_p3 }
  0x5c   : > { %p7405_p11 = pnand %p7403_p7, %p7400_p5 }
  0x5e   : > { %7408 = shalt.err (!%p7405_p11)
}
  0x5f   : > { %s7409_s17 = scalar_lea.vmem %s203_s9, 36864  ;;  %p7417_p9 = scmp.lt.s32.totalorder %s203_s9, %s203_s9 }
  0x60   : > { %p7410_p1 = scmp.ne.s32.totalorder %s203_s9, %s7409_s17  ;;  %p7418_p6 = scmp.lt.s32.totalorder %s7409_s17, %s7409_s17 }
  0x62   : > { %p7412_p12 = pnand %p7410_p1, %p7398_p0  ;;  %p7419_p2 = por %p7418_p6, %p7417_p9 }
  0x64   : > { %p7413_p13 = pneg %p7412_p12 }
  0x66   : > { %p7420_p4 = pnand %p7419_p2, %p7413_p13 }
  0x68   : > { %7423 = shalt.err (!%p7420_p4)
}
  0x69   : > { %s7648_s18 = smov 128   ;;  %s7649_s10 = smov 8  }
  0x6a   : > { %6733 = dma.hbm_to_vmem [thread:$0]  (!%p7868_p10), %s9212_s3, 36864, %s203_s9, [#allocation10], %s7648_s18, %s7648_s18, %s7649_s10  }
  0x6b   : > { %s6101_s14 = sadd.s32 4294967294, %s7642_s28   ;;  %s45_s5 = sadd.s32 1, %s7622_s23 }
  0x6c   : > { %p9213_p6 = scmp.eq.s32.totalorder %s7770_s12, 0  ;;  %p52_p9 = scmp.ne.s32.totalorder %s7622_s23, %s7618_s22 }
  0x6d   : > { %p58_p2 = scmp.ne.s32.totalorder %s7618_s22, %s7614_s21  ;;  %p183_p4 = scmp.eq.s32.totalorder %s6101_s14, 3 }
  0x6e   : > { %s7893_s11 = scalar_select %p9213_p6, %s7622_s23, %s45_s5  }
  0x6f   : > { %s216_s17 = sand.u32 1, %s7622_s23   ;;  %p9215_p8 = scmp.eq.s32.totalorder %s7642_s28, 0 }
  0x70   : > { %9214 = sst [smem:[#allocation31_spill]] %s7893_s11  ;;  %p9216_p3 = scmp.eq.s32.totalorder %s7845_s16, 0 }
  0x71   : > { %p54_p0 = por %p9215_p8, %p52_p9  ;;  %p9218_p7 = scmp.eq.s32.totalorder %s7845_s16, 3 }
  0x72   : > { %p7904_p5 = por %p9216_p3, %p58_p2  ;;  %p7914_p10 = por %p183_p4, %p58_p2 }
  0x73   : > { %p7910_p11 = por %p9218_p7, %p52_p9  ;;  %s6111_s8 = sshll.u32 %s216_s17, 8 }
  0x74   : > { %s9220_s12 = scalar_select %p7914_p10, 1, 0 }
  0x75   : > { %s9219_s9 = scalar_select %p7910_p11, 1, 0 }
  0x76   : > { %9221 = sst [smem:[#allocation32_spill]] %s9220_s12  ;;  %s6428_s18 = sshll.u32 %s7634_s26, 5 }
  0x77   : > { %s227_s10 = sadd.s32 %s6428_s18, %s7793_s25  ;;  %s220_s13 = scalar_lea.vmem [#allocation3], %s6111_s8 }
  0x78   : > { %s230_s24 = sshll.u32 %s220_s13, 4  ;;  %s6115_s14 = sshll.u32 %s227_s10, 7  ;;  %s7920_s24 = int_to_ptr.vmem [resolvable:$true] %s230_s24 }
  0x79   : > { %s9222_s0 = sld [smem:[#allocation33_spill]]  ;;  %p9223_p1 = scmp.lt.s32.totalorder %s7642_s28, 4 }
  0x7a   : > { %s7933_s8 = scalar_lea.sflag [#allocation4], %s216_s17 }
  0x7b   : > { %p7929_p12 = pnand %p9223_p1, %p54_p0 }
  0x7d   : > { %p7426_p6 = pneg %p7929_p12 }
  0x7f   : > { %s7925_s1 = scalar_lea.hbm %s9222_s0, %s6115_s14  ;;  %s7429_s13 = scalar_lea.hbm %s9222_s0, 16384 }
  0x80   : > { %s7424_s18 = scalar_lea.hbm %s7925_s1, 4096  ;;  %p7430_p4 = scmp.lt.u32.totalorder %s7925_s1, %s9222_s0 }
  0x81   : > { %p7425_p13 = scmp.ne.s32.totalorder %s7925_s1, %s7424_s18  ;;  %p7431_p8 = scmp.lt.u32.totalorder %s7429_s13, %s7424_s18 }
  0x82   : > { %p7433_p3 = scmp.lt.u32.totalorder %s7424_s18, %s7925_s1 }
  0x83   : > { %p7427_p9 = pnand %p7426_p6, %p7425_p13  ;;  %p7432_p0 = por %p7431_p8, %p7430_p4 }
  0x85   : > { %p7428_p2 = pneg %p7427_p9  ;;  %p7434_p7 = por %p7433_p3, %p7432_p0 }
  0x87   : > { %p7435_p1 = pnand %p7434_p7, %p7428_p2 }
  0x89   : > { %7438 = shalt.err (!%p7435_p1)
}
  0x8a   : > { %s7439_s17 = scalar_lea.vmem %s7920_s24, 4096  ;;  %s7650_s15 = smov [#allocation3]  }
  0x8b   : > { %p7440_p13 = scmp.ne.s32.totalorder %s7920_s24, %s7439_s17  ;;  %s7444_s10 = sshll.u32 %s7650_s15, 4  ;;  %s7445_s10 = int_to_ptr.vmem [resolvable:$false] %s7444_s10 }
  0x8c   : > { %s7446_s14 = scalar_lea.vmem %s7445_s10, 8192  ;;  %p7447_p11 = scmp.lt.s32.totalorder %s7920_s24, %s7445_s10 }
  0x8d   : > { %p7442_p9 = pnand %p7440_p13, %p7426_p6  ;;  %p7448_p4 = scmp.lt.s32.totalorder %s7446_s14, %s7439_s17 }
  0x8f   : > { %p7443_p10 = pneg %p7442_p9  ;;  %p7449_p8 = por %p7448_p4, %p7447_p11 }
  0x91   : > { %p7450_p0 = pnand %p7449_p8, %p7443_p10 }
  0x93   : > { %7453 = shalt.err (!%p7450_p0)
}
  0x94   : > { %s9225_s18 = smov 16   ;;  %s9226_s13 = smov 256  }
  0x95   : > { %s9227_s5 = sld [smem:[#allocation19_spill]]  ;;  %s9228_s0 = sld [smem:[#allocation29_spill]] }
  0x96   : > { %s9229_s15 = sld [smem:[#allocation18_spill]]  ;;  %s9230_s10 = sld [smem:[#allocation17_spill]] }
  0x97   : > { %s9231_s17 = sld [smem:[#allocation28_spill]]  ;;  %p9233_p10 = scmp.lt.s32.totalorder %s7785_s7, 15 }
  0x98   : > { %6737 = dma.hbm_to_vmem [thread:$0]  (!%p7929_p12), %s7925_s1, 4096, %s7920_s24, %s7933_s8, %s9226_s13, %s9226_s13, %s9225_s18  }
  0x99   : > { %s9290_s7 = smov (!%p9233_p10, %s7785_s7), 15  ;;  %p9234_p3 = scmp.eq.s32.totalorder %s7642_s28, 0 }
  0x9a   : > { %p9235_p13 = scmp.eq.s32.totalorder %s7845_s16, 0  ;;  %s9237_s20 = sld [smem:[#allocation35_spill]] }
  0x9b   : > { %s117_s3 = sadd.s32 1, %s9227_s5  ;;  %p9232_p11 = scmp.lt.s32.totalorder %s9228_s0, 15 }
  0x9c   : > { %p124_p6 = scmp.ne.s32.totalorder %s9227_s5, %s9229_s15  ;;  %p130_p2 = scmp.ne.s32.totalorder %s9229_s15, %s9230_s10 }
  0x9d   : > { %s9288_s0 = smov (!%p9232_p11, %s9228_s0), 15  ;;  %s269_s27 = sand.u32 1, %s9227_s5  }
  0x9e   : > { %s113_s14 = ssub.s32 %s9288_s0, %s9290_s7  ;;  %p126_p7 = por %p124_p6, %p9234_p3 }
  0x9f   : > { %s114_s26 = sor.u32 %s113_s14, %s9231_s17  ;;  %p7981_p9 = por %p130_p2, %p9235_p13 }
  0xa0   : > { %p115_p1 = scmp.eq.s32.totalorder %s114_s26, 0  ;;  %s6122_s1 = sshll.u32 %s269_s27, 5 }
  0xa1   : > { %s9236_s11 = scalar_select %p7981_p9, 1, 0 }
  0xa2   : > { %s6124_s24 = sshll.u32 %s9288_s0, 2  ;;  %s9292_s5 = smov (!%p115_p1, %s9227_s5), %s117_s3 }
  0xa3   : > { %s281_s8 = sadd.s32 %s6124_s24, %s7793_s25  ;;  %s271_s4 = scalar_lea.vmem [#allocation8], %s6122_s1 }
  0xa4   : > { %s6126_s23 = sshll.u32 %s281_s8, 7  ;;  %s284_s15 = sshll.u32 %s271_s4, 4  ;;  %s7994_s15 = int_to_ptr.vmem [resolvable:$true] %s284_s15 }
  0xa5   : > { %s9238_s12 = smov %s9237_s20  ;;  %s7992_s17 = scalar_lea.hbm %s9237_s20, %s6126_s23 }
  0xa6   : > { %p9239_p12 = scmp.lt.s32.totalorder %s7642_s28, 4  ;;  %s7454_s25 = scalar_lea.hbm %s7992_s17, 512 }
  0xa7   : > { %p7455_p8 = scmp.ne.s32.totalorder %s7992_s17, %s7454_s25  ;;  %s7459_s23 = scalar_lea.hbm %s9238_s12, 16384 }
  0xa8   : > { %p7998_p4 = pnand %p9239_p12, %p126_p7  ;;  %p7460_p6 = scmp.lt.u32.totalorder %s7992_s17, %s9238_s12 }
  0xa9   : > { %p7461_p2 = scmp.lt.u32.totalorder %s7459_s23, %s7454_s25  ;;  %p7463_p7 = scmp.lt.u32.totalorder %s7454_s25, %s7992_s17 }
  0xaa   : > { %p7456_p0 = pneg %p7998_p4 }
  0xab   : > { %p7462_p3 = por %p7461_p2, %p7460_p6 }
  0xac   : > { %p7457_p11 = pnand %p7456_p0, %p7455_p8 }
  0xad   : > { %p7464_p1 = por %p7463_p7, %p7462_p3 }
  0xae   : > { %p7458_p10 = pneg %p7457_p11 }
  0xb0   : > { %p7465_p13 = pnand %p7464_p1, %p7458_p10 }
  0xb2   : > { %7468 = shalt.err (!%p7465_p13)
}
  0xb3   : > { %s7469_s3 = scalar_lea.vmem %s7994_s15, 512  ;;  %s7651_s14 = smov [#allocation8]  }
  0xb4   : > { %p7470_p12 = scmp.ne.s32.totalorder %s7994_s15, %s7469_s3  ;;  %s7474_s1 = sshll.u32 %s7651_s14, 4  ;;  %s7475_s1 = int_to_ptr.vmem [resolvable:$false] %s7474_s1 }
  0xb5   : > { %s7476_s24 = scalar_lea.vmem %s7475_s1, 1024  ;;  %p7477_p9 = scmp.lt.s32.totalorder %s7994_s15, %s7475_s1 }
  0xb6   : > { %p7472_p8 = pnand %p7470_p12, %p7456_p0  ;;  %p7478_p6 = scmp.lt.s32.totalorder %s7476_s24, %s7469_s3 }
  0xb8   : > { %p7473_p11 = pneg %p7472_p8  ;;  %p7479_p2 = por %p7478_p6, %p7477_p9 }
  0xba   : > { %p7480_p3 = pnand %p7479_p2, %p7473_p11 }
  0xbc   : > { %7483 = shalt.err (!%p7480_p3)
}
  0xbd   : > { %6743 = dma.hbm_to_vmem [thread:$0]  (!%p7998_p4), %s7992_s17, 512, %s7994_s15, %s7813_s2, %s9226_s13, %s9226_s13, %s9225_s18  }
  0xbe   : > { %p9241_p0 = scmp.ne.s32.totalorder %s9210_s29, 0 }
  0xbf   : > { %s8034_s8 = sand.u32 (!%p9241_p0), 1, %s7618_s22  }
  0xc0   : > { %296 = sbr.rel (%p9241_p0) target bundleno = 893 (0x37d), region = 36  ;;  %s6128_s10 = sshll.u32 (!%p9241_p0), %s8034_s8, 8 }
  0xc1   : > { %s299_s7 = scalar_lea.sflag (!%p9241_p0), [#allocation4], %s8034_s8  ;;  %s8040_s0 = scalar_lea.vmem (!%p9241_p0), [#allocation3], %s6128_s10 }
  0xc7   : > { %7569 = dma.done.wait (%p7904_p5), %s299_s7, 4096  }
  0xc8   : > { %7571 = vsyncadd (%p7904_p5), %s299_s7, 4294963200  ;;  %s307_s2 = sand.u32 1, %s7845_s16   ;;  %s309_s29 = sand.u32 1, %s7606_s19  }
  0xc9   : > { %s6129_s18 = sshll.u32 %s309_s29, 5  ;;  %s308_s13 = scalar_lea.sflag [#allocation7], %s307_s2 }
  0xca   : > { %s8048_s15 = scalar_lea.vmem [#allocation6], %s6129_s18  ;;  %p9242_p9 = scmp.ne.s32.totalorder %s9209_s6, 0 }
  0xcc   : > { %7573 = dma.done.wait (%p9242_p9), %s308_s13, 512  }
  0xcd   : > { %7575 = vsyncadd (%p9242_p9), %s308_s13, 4294966784  ;;  %s9243_s17 = sld [smem:[#allocation18_spill]]  ;;  %p9244_p5 = scmp.ne.s32.totalorder %s9236_s11, 0 }
  0xd3   : > { %s318_s25 = sand.u32 1, %s9243_s17  }
  0xd4   : > { %s6130_s4 = sshll.u32 %s318_s25, 5 }
  0xd5   : > { %s8055_s30 = scalar_lea.vmem [#allocation8], %s6130_s4 }
  0xd6   : > { %7577 = dma.done.wait (%p9244_p5), %s308_s13, 512  }
  0xd7   : > { %7579 = vsyncadd (%p9244_p5), %s308_s13, 4294966784  ;;  %p9245_p4 = scmp.eq.s32.totalorder %s7845_s16, 0 }
  0xd9   : > { %7581 = dma.done.wait (%p9245_p4), [#allocation10], 36864   ;;  %p9246_p10 = pmov %p9245_p4 }
  0xda   : > { %v6871_v0 = vld [vmem:[#allocation9 + $0x104] ss:$8 sps:$4 sm:$0xff]   ;;  %v6875_v2 = vld [vmem:[#allocation9 + $0x100] ss:$8 sps:$4 sm:$0xff]   ;;  %v6877_v4 = vld [vmem:[#allocation9 + $0x114] ss:$8 sps:$4 sm:$0xff]  }
  0xdb   : > { %7583 = vsyncadd (%p9246_p10), [#allocation10], 4294930432  ;;  %v6873_v1 = vld [vmem:[#allocation9 + $0x404] ss:$8 sps:$4 sm:$0xff]   ;;  %1372 = vmatprep.subr.bf16.mxu1 %v6871_v0  ;;  %v6876_v3 = vld [vmem:[#allocation9 + $0x400] ss:$8 sps:$4 sm:$0xff]  }
  0xdc   : > { %3364 = vmatprep.subr.bf16.mxu0 %v6873_v1  ;;  %1373 = vmatpush1.bf16.msra.mxu1 %v6875_v2  ;;  %v6879_v5 = vld [vmem:[#allocation9 + $0x414] ss:$8 sps:$4 sm:$0xff]   ;;  %v6881_v6 = vld [vmem:[#allocation9 + $0x110] ss:$8 sps:$4 sm:$0xff]   ;;  %v6883_v8 = vld [vmem:[#allocation9 + $0x124] ss:$8 sps:$4 sm:$0xff]  }
  0xdd   : > { %3365 = vmatpush1.bf16.msra.mxu0 %v6876_v3  ;;  %1374 = vmatprep.subr.bf16.mxu1 %v6877_v4  ;;  %v6882_v7 = vld [vmem:[#allocation9 + $0x410] ss:$8 sps:$4 sm:$0xff]   ;;  %v6885_v9 = vld [vmem:[#allocation9 + $0x424] ss:$8 sps:$4 sm:$0xff]   ;;  %v6887_v10 = vld [vmem:[#allocation9 + $0x120] ss:$8 sps:$4 sm:$0xff]  }
  0xde   : > { %3366 = vmatprep.subr.bf16.mxu0 %v6879_v5  ;;  %v6888_v11 = vld [vmem:[#allocation9 + $0x420] ss:$8 sps:$4 sm:$0xff]   ;;  %v6889_v12 = vld [vmem:[#allocation9 + $0x134] ss:$8 sps:$4 sm:$0xff]   ;;  %v6893_v14 = vld [vmem:[#allocation9 + $0x130] ss:$8 sps:$4 sm:$0xff]  }
  0xdf   : > { %v6891_v13 = vld [vmem:[#allocation9 + $0x434] ss:$8 sps:$4 sm:$0xff]   ;;  %v6894_v15 = vld [vmem:[#allocation9 + $0x430] ss:$8 sps:$4 sm:$0xff]   ;;  %v6895_v16 = vld [vmem:[#allocation9 + $0x144] ss:$8 sps:$4 sm:$0xff]  }
  0xe0   : > { %1375 = vmatpush1.bf16.msra.mxu1 %v6881_v6  ;;  %v6897_v17 = vld [vmem:[#allocation9 + $0x444] ss:$8 sps:$4 sm:$0xff]   ;;  %v6899_v18 = vld [vmem:[#allocation9 + $0x140] ss:$8 sps:$4 sm:$0xff]   ;;  %v6901_v20 = vld [vmem:[#allocation9 + $0x154] ss:$8 sps:$4 sm:$0xff]  }
  0xe1   : > { %3367 = vmatpush1.bf16.msra.mxu0 %v6882_v7  ;;  %1376 = vmatprep.subr.bf16.mxu1 %v6883_v8  ;;  %v6900_v19 = vld [vmem:[#allocation9 + $0x440] ss:$8 sps:$4 sm:$0xff]   ;;  %v6903_v21 = vld [vmem:[#allocation9 + $0x454] ss:$8 sps:$4 sm:$0xff]   ;;  %v6905_v22 = vld [vmem:[#allocation9 + $0x150] ss:$8 sps:$4 sm:$0xff]  }
  0xe2   : > { %3368 = vmatprep.subr.bf16.mxu0 %v6885_v9  ;;  %v6906_v23 = vld [vmem:[#allocation9 + $0x450] ss:$8 sps:$4 sm:$0xff]   ;;  %v6907_v24 = vld [vmem:[#allocation9 + $0x164] ss:$8 sps:$4 sm:$0xff]   ;;  %v6911_v26 = vld [vmem:[#allocation9 + $0x160] ss:$8 sps:$4 sm:$0xff]  }
  0xe3   : > { %v6909_v25 = vld [vmem:[#allocation9 + $0x464] ss:$8 sps:$4 sm:$0xff]   ;;  %v6912_v27 = vld [vmem:[#allocation9 + $0x460] ss:$8 sps:$4 sm:$0xff]   ;;  %s9247_s16 = sld [smem:[#allocation22_spill]]  ;;  %v579_v52 = vld [vmem:[%s8048_s15 + $0x18] sm:$0xff] }
  0xe4   : > { %1377 = vmatpush1.bf16.msra.mxu1 %v6887_v10  ;;  %v6913_v28 = vld [vmem:[#allocation9 + $0x174] ss:$8 sps:$4 sm:$0xff]   ;;  %v6917_v30 = vld [vmem:[#allocation9 + $0x170] ss:$8 sps:$4 sm:$0xff]   ;;  %v6919_v32 = vld [vmem:[#allocation9 + $0x184] ss:$8 sps:$4 sm:$0xff]  }
  0xe5   : > { %3369 = vmatpush1.bf16.msra.mxu0 %v6888_v11  ;;  %1378 = vmatprep.subr.bf16.mxu1 %v6889_v12  ;;  %v6915_v29 = vld [vmem:[#allocation9 + $0x474] ss:$8 sps:$4 sm:$0xff]   ;;  %v6918_v31 = vld [vmem:[#allocation9 + $0x470] ss:$8 sps:$4 sm:$0xff]   ;;  %v6921_v33 = vld [vmem:[#allocation9 + $0x484] ss:$8 sps:$4 sm:$0xff]  }
  0xe6   : > { %3370 = vmatprep.subr.bf16.mxu0 %v6891_v13  ;;  %v6923_v34 = vld [vmem:[#allocation9 + $0x180] ss:$8 sps:$4 sm:$0xff]   ;;  %v6925_v36 = vld [vmem:[#allocation9 + $0x194] ss:$8 sps:$4 sm:$0xff]   ;;  %v6929_v38 = vld [vmem:[#allocation9 + $0x190] ss:$8 sps:$4 sm:$0xff]  }
  0xe7   : > { %v6924_v35 = vld [vmem:[#allocation9 + $0x480] ss:$8 sps:$4 sm:$0xff]   ;;  %v6927_v37 = vld [vmem:[#allocation9 + $0x494] ss:$8 sps:$4 sm:$0xff]   ;;  %v6930_v39 = vld [vmem:[#allocation9 + $0x490] ss:$8 sps:$4 sm:$0xff]  }
  0xe8   : > { %1379 = vmatpush1.bf16.msra.mxu1 %v6893_v14  ;;  %v6931_v40 = vld [vmem:[#allocation9 + $0x1a4] ss:$8 sps:$4 sm:$0xff]   ;;  %v6935_v42 = vld [vmem:[#allocation9 + $0x1a0] ss:$8 sps:$4 sm:$0xff]   ;;  %v6937_v45 = vld [vmem:[#allocation9 + $0x1b4] ss:$8 sps:$4 sm:$0xff]  }
  0xe9   : > { %3371 = vmatpush1.bf16.msra.mxu0 %v6894_v15  ;;  %1380 = vmatprep.subr.bf16.mxu1 %v6895_v16  ;;  %p592_p7 = scmp.gt.s32.totalorder %s9247_s16, 0  ;;  %v6933_v41 = vld [vmem:[#allocation9 + $0x4a4] ss:$8 sps:$4 sm:$0xff]   ;;  %v6936_v43 = vld [vmem:[#allocation9 + $0x4a0] ss:$8 sps:$4 sm:$0xff]   ;;  %v499_v55 = vld [vmem:[%s8040_s0 + $0x18] sm:$0xff] }
  0xea   : > { %3372 = vmatprep.subr.bf16.mxu0 %v6897_v17  ;;  %v6939_v46 = vld [vmem:[#allocation9 + $0x4b4] ss:$8 sps:$4 sm:$0xff]   ;;  %v6941_v47 = vld [vmem:[#allocation9 + $0x1b0] ss:$8 sps:$4 sm:$0xff]   ;;  %v577_v49 = vld [vmem:[%s8048_s15 + $0x8] sm:$0xff]  ;;  %v583_v56 = vmax.f32 %v579_v52, 0.0 }
  0xeb   : > { %s593_s6 = scalar_select %p592_p7, 1, 0  ;;  %v6942_v48 = vld [vmem:[#allocation9 + $0x4b0] ss:$8 sps:$4 sm:$0xff]   ;;  %v6943_v51 = vld [vmem:[#allocation9 + $0x1c4] ss:$8 sps:$4 sm:$0xff]  }
  0xec   : > { %1381 = vmatpush1.bf16.msra.mxu1 %v6899_v18  ;;  %v581_v53 = vmax.f32 %v577_v49, 0.0  ;;  %v497_v54 = vld [vmem:[%s8040_s0 + $0x8] sm:$0xff]  ;;  %v531_v58 = vmax.f32 %v499_v55, 0.0  ;;  %v576_v59 = vld [vmem:[%s8048_s15] sm:$0xff]  ;;  %v578_v60 = vld [vmem:[%s8048_s15 + $0x10] sm:$0xff]  ;;  %vm1114_vm1 = vcmask 1043456  }
  0xed   : > { %3373 = vmatpush1.bf16.msra.mxu0 %v6900_v19  ;;  %1382 = vmatprep.subr.bf16.mxu1 %v6901_v20  ;;  %v594_v44 = vstv %s593_s6  ;;  %v529_v57 = vmax.f32 %v497_v54, 0.0  ;;  %v6945_v61 = vld [vmem:[#allocation9 + $0x4c4] ss:$8 sps:$4 sm:$0xff]   ;;  %v580_v63 = vmax.f32 %v576_v59, 0.0  ;;  %v582_v0 = vmax.f32 %v578_v60, 0.0  ;;  %v498_v4 = vld [vmem:[%s8040_s0 + $0x10] sm:$0xff] }
  0xee   : > { %3374 = vmatprep.subr.bf16.mxu0 %v6903_v21  ;;  %vm8067_vm0 = vcmp.eq.s32.totalorder %v594_v44, 1  ;;  %v496_v3 = vld [vmem:[%s8040_s0] sm:$0xff]  ;;  %v530_v13 = vmax.f32 %v498_v4, 0.0  ;;  %v6949_v14 = vld [vmem:[#allocation9 + $0x1d4] ss:$8 sps:$4 sm:$0xff]   ;;  %v501_v21 = vld [vmem:[%s8040_s0 + $0x28] sm:$0xff] }
  0xef   : > { %v597_v62 = vsel %vm8067_vm0, %v581_v53, 0.0  ;;  %v599_v1 = vsel %vm8067_vm0, %v583_v56, 0.0  ;;  %v561_v2 = vpack.c.bf16 %v531_v58, %v529_v57  ;;  %v596_v6 = vsel %vm8067_vm0, %v580_v63, 0.0  ;;  %v6947_v9 = vld [vmem:[#allocation9 + $0x1c0] ss:$8 sps:$4 sm:$0xff]   ;;  %p602_p1 = scmp.lt.s32.totalorder %s9247_s16, 1 }
  0xf0   : > { %1383 = vmatpush1.bf16.msra.mxu1 %v6905_v22  ;;  %v601_v5 = vpack.c.bf16 %v599_v1, %v597_v62  ;;  %v598_v7 = vsel %vm8067_vm0, %v582_v0, 0.0  ;;  %v528_v8 = vmax.f32 %v496_v3, 0.0  ;;  %v6948_v10 = vld [vmem:[#allocation9 + $0x4c0] ss:$8 sps:$4 sm:$0xff]   ;;  %v6951_v15 = vld [vmem:[#allocation9 + $0x4d4] ss:$8 sps:$4 sm:$0xff]  }
  0xf1   : > { %3375 = vmatpush1.bf16.msra.mxu0 %v6906_v23  ;;  %1384 = vmatprep.subr.bf16.mxu1 %v6907_v24  ;;  %v639_v11 = vrot.slane %v561_v2, 4  ;;  %v600_v12 = vpack.c.bf16 %v598_v7, %v596_v6  ;;  %v6953_v17 = vld [vmem:[#allocation9 + $0x1d0] ss:$8 sps:$4 sm:$0xff]   ;;  %v533_v24 = vmax.f32 %v501_v21, 0.0  ;;  %v6969_v52 = vld [vmem:[#allocation9 + $0x4] ss:$8 sps:$4 sm:$0xff]  }
  0xf2   : > { %3376 = vmatprep.subr.bf16.mxu0 %v6909_v25  ;;  %v615_v16 = vrot.slane %v601_v5, 4  ;;  %v560_v19 = vpack.c.bf16 %v530_v13, %v528_v8  ;;  %v6954_v20 = vld [vmem:[#allocation9 + $0x4d0] ss:$8 sps:$4 sm:$0xff]   ;;  %v6972_v56 = vld [vmem:[#allocation9 + $0x504] ss:$8 sps:$4 sm:$0xff]   ;;  %vm370_vm2 = vcmask 1043459  }
  0xf3   : > { %672 = vst [vmem:[#allocation2 + $0x38] ss:$-12 sps:$4 sm:$0xff] %v639_v11   ;;  %v614_v18 = vrot.slane %v600_v12, 4  ;;  %v503_v22 = vld [vmem:[%s8040_s0 + $0x38] sm:$0xff]  ;;  %v6967_v57 = vld [vmem:[#allocation9] ss:$8 sps:$4 sm:$0xff]  }
  0xf4   : > { %1385 = vmatpush1.bf16.msra.mxu1 %v6911_v26  ;;  %619 = vst [vmem:[#allocation2 + $0x18] ss:$-12 sps:$4 sm:$0xff] %v615_v16   ;;  %v638_v23 = vrot.slane %v560_v19, 4  ;;  %v535_v25 = vmax.f32 %v503_v22, 0.0  ;;  %v6955_v26 = vld [vmem:[#allocation9 + $0x1e4] ss:$8 sps:$4 sm:$0xff]  }
  0xf5   : > { %3377 = vmatpush1.bf16.msra.mxu0 %v6912_v27  ;;  %1386 = vmatprep.subr.bf16.mxu1 %v6913_v28  ;;  %618 = vst [vmem:[#allocation2 + $0x10] ss:$-12 sps:$4 sm:$0xff] %v614_v18   ;;  %v6957_v27 = vld [vmem:[#allocation9 + $0x4e4] ss:$8 sps:$4 sm:$0xff]   ;;  %v6966_v49 = vld [vmem:[#allocation9 + $0x4f0] ss:$8 sps:$4 sm:$0xff]  }
  0xf6   : > { %3378 = vmatprep.subr.bf16.mxu0 %v6915_v29  ;;  %v500_v28 = vld [vmem:[%s8040_s0 + $0x20] sm:$0xff]  ;;  %671 = vst [vmem:[#allocation2 + $0x30] ss:$-12 sps:$4 sm:$0xff] %v638_v23   ;;  %v6975_v63 = vld [vmem:[#allocation9 + $0x14] ss:$8 sps:$4 sm:$0xff]   ;;  %v505_v13 = vld [vmem:[%s8040_s0 + $0x48] sm:$0xff] }
  0xf7   : > { %v6959_v29 = vld [vmem:[#allocation9 + $0x1e0] ss:$8 sps:$4 sm:$0xff]   ;;  %v6978_v3 = vld [vmem:[#allocation9 + $0x514] ss:$8 sps:$4 sm:$0xff]   ;;  %vm371_vm3 = vsmask.f32 7950 }
  0xf8   : > { %1387 = vmatpush1.bf16.msra.mxu1 %v6917_v30  ;;  %v563_v30 = vpack.c.bf16 %v535_v25, %v533_v24  ;;  %v6970_v62 = vld [vmem:[#allocation9 + $0x500] ss:$8 sps:$4 sm:$0xff]   ;;  %v507_v18 = vld [vmem:[%s8040_s0 + $0x58] sm:$0xff]  ;;  %v6981_v24 = vld [vmem:[#allocation9 + $0x24] ss:$8 sps:$4 sm:$0xff]   ;;  %vm433_vm5 = vcmask 1044484  }
  0xf9   : > { %3379 = vmatpush1.bf16.msra.mxu0 %v6918_v31  ;;  %1388 = vmatprep.subr.bf16.mxu1 %v6919_v32  ;;  %v502_v31 = vld [vmem:[%s8040_s0 + $0x30] sm:$0xff]  ;;  %v6960_v32 = vld [vmem:[#allocation9 + $0x4e0] ss:$8 sps:$4 sm:$0xff]   ;;  %v6984_v25 = vld [vmem:[#allocation9 + $0x524] ss:$8 sps:$4 sm:$0xff]   ;;  %s9007_s20 = scalar_lea.vmem [#allocation11], %s6128_s10 }
  0xfa   : > { %3380 = vmatprep.subr.bf16.mxu0 %v6921_v33  ;;  %v6961_v33 = vld [vmem:[#allocation9 + $0x1f4] ss:$8 sps:$4 sm:$0xff]   ;;  %v8108_v59 = vld [vmem:[#allocation2 + $0x38] sm:$0xf]  ;;  %v1069_v60 = vld [vmem:[#allocation2 + $0x28] sm:$0xf0] }
  0xfb   : > { %v1124_v5 = vrot.slane %v1069_v60, 4  ;;  %v1125_v6 = vrot.slane %v8108_v59, 4  ;;  %vm434_vm4 = vsmask.f32 4352  ;;  %vm8224_vm6 = vmand %vm370_vm2, %vm371_vm3  ;;  %vm1774_vm8 = vsmask.f32 3328 }
  0xfc   : > { %1389 = vmatpush1.bf16.msra.mxu1 %v6923_v34  ;;  %v6963_v34 = vld [vmem:[#allocation9 + $0x4f4] ss:$8 sps:$4 sm:$0xff]   ;;  %vm8230_vm7 = vmand %vm433_vm5, %vm434_vm4  ;;  %s603_s11 = scalar_select %p602_p1, 1, 0 }
  0xfd   : > { %3381 = vmatpush1.bf16.msra.mxu0 %v6924_v35  ;;  %1390 = vmatprep.subr.bf16.mxu1 %v6925_v36  ;;  %v641_v35 = vrot.slane %v563_v30, 4  ;;  %v2404_v36 = vld [vmem:[#allocation2 + $0x38] sm:$0xf]  ;;  %v8104_v55 = vld [vmem:[#allocation2 + $0x30] sm:$0xf]  ;;  %s9256_s23 = sld [smem:[#allocation23_spill]] }
  0xfe   : > { %3382 = vmatprep.subr.bf16.mxu0 %v6927_v37  ;;  %v8090_v37 = vld [vmem:[#allocation2 + $0x28] sm:$0xf0]  ;;  %v3111_v44 = vrot.slane %v2404_v36, 4  ;;  %v8106_v58 = vld [vmem:[#allocation2 + $0x20] sm:$0xf0]  ;;  %v3108_v2 = vrot.slane %v8104_v55, 4 }
  0xff   : > { %676 = vst [vmem:[#allocation2 + $0x58] ss:$-12 sps:$4 sm:$0xff] %v641_v35   ;;  %v8113_v4 = vld [vmem:[#allocation2 + $0x30] sm:$0xf]  ;;  %v1068_v8 = vld [vmem:[#allocation2 + $0x20] sm:$0xf0] }
 0x100   : > { %1391 = vmatpush1.bf16.msra.mxu1 %v6929_v38  ;;  %v532_v38 = vmax.f32 %v500_v28, 0.0  ;;  %v1121_v19 = vrot.slane %v1068_v8, 4  ;;  %v6979_v28 = vld [vmem:[#allocation9 + $0x20] ss:$8 sps:$4 sm:$0xff]   ;;  %v506_v30 = vld [vmem:[%s8040_s0 + $0x50] sm:$0xff]  ;;  %s6429_s26 = sshll.u32 %s9247_s16, 5 }
 0x101   : > { %3383 = vmatpush1.bf16.msra.mxu0 %v6930_v39  ;;  %1392 = vmatprep.subr.bf16.mxu1 %v6931_v40  ;;  %v534_v39 = vmax.f32 %v502_v31, 0.0  ;;  %v6965_v40 = vld [vmem:[#allocation9 + $0x1f0] ss:$8 sps:$4 sm:$0xff]   ;;  %v538_v35 = vmax.f32 %v506_v30, 0.0  ;;  %s5951_s1 = sshll.u32 %s9007_s20, 4  ;;  %s9257_s7 = sld [smem:[#allocation37_spill]]  ;;  %s9072_s1 = int_to_ptr.vmem [resolvable:$true] %s5951_s1 }
 0x102   : > { %3384 = vmatprep.subr.bf16.mxu0 %v6933_v41  ;;  %v8092_v41 = vld [vmem:[#allocation2 + $0x18] sm:$0xf]  ;;  %v510_v8 = vld [vmem:[%s8040_s0 + $0x70] sm:$0xff]  ;;  %s5935_s2 = scalar_lea.sflag [#allocation5], %s8034_s8  ;;  %s7484_s29 = scalar_lea.vmem %s9072_s1, 4096 }
 0x103   : > { %v562_v0 = vpack.c.bf16 %v534_v39, %v532_v38  ;;  %v6987_v38 = vld [vmem:[#allocation9 + $0x34] ss:$8 sps:$4 sm:$0xff]   ;;  %s6424_s27 = sshll.u32 %s9256_s23, 6  ;;  %p7485_p13 = scmp.ne.s32.totalorder %s9072_s1, %s7484_s29 }
 0x104   : > { %1393 = vmatpush1.bf16.msra.mxu1 %v6935_v42  ;;  %v1067_v42 = vld [vmem:[#allocation2 + $0x8] sm:$0xf0]  ;;  %s5948_s3 = sadd.s32 %s6429_s26, %s6424_s27  ;;  %p9258_p12 = scmp.ne.s32.totalorder %s9219_s9, 0 }
 0x105   : > { %3385 = vmatpush1.bf16.msra.mxu0 %v6936_v43  ;;  %1394 = vmatprep.subr.bf16.mxu1 %v6937_v45  ;;  %v3110_v43 = vrot.slane %v8090_v37, 4  ;;  %v1118_v45 = vrot.slane %v1067_v42, 4  ;;  %s6425_s14 = sshll.u32 %s5948_s3, 7  ;;  %s7652_s18 = smov [#allocation11]  }
 0x106   : > { %3386 = vmatprep.subr.bf16.mxu0 %v6939_v46  ;;  %v1119_v46 = vrot.slane %v8092_v41, 4  ;;  %v2408_v7 = vld [vmem:[#allocation2 + $0x58] sm:$0xf]  ;;  %v8117_v11 = vld [vmem:[#allocation2 + $0x48] sm:$0xf0]  ;;  %p7486_p8 = pnand %p7485_p13, %p9258_p12  ;;  %s7488_s13 = sshll.u32 %s7652_s18, 4  ;;  %s7489_s13 = int_to_ptr.vmem [resolvable:$false] %s7488_s13 }
 0x107   : > { %v3112_v50 = vsel %vm1114_vm1, %v3110_v43, %v3111_v44  ;;  %v3117_v12 = vrot.slane %v2408_v7, 4  ;;  %v3116_v16 = vrot.slane %v8117_v11, 4  ;;  %v8124_v21 = vld [vmem:[#allocation2 + $0x58] sm:$0xf]  ;;  %v1071_v22 = vld [vmem:[#allocation2 + $0x48] sm:$0xf0]  ;;  %p7491_p6 = scmp.lt.s32.totalorder %s9072_s1, %s7489_s13 }
 0x108   : > { %1395 = vmatpush1.bf16.msra.mxu1 %v6941_v47  ;;  %v8096_v47 = vld [vmem:[#allocation2 + $0x10] sm:$0xf]  ;;  %v1120_v53 = vsel %vm1114_vm1, %v1118_v45, %v1119_v46  ;;  %3396 = vmatprep.mubr.bf16.mxu0 %v3112_v50  ;;  %v509_v45 = vld [vmem:[%s8040_s0 + $0x68] sm:$0xff]  ;;  %p7487_p11 = pneg %p7486_p8  ;;  %s7490_s15 = scalar_lea.vmem %s7489_s13, 8192 }
 0x109   : > { %3387 = vmatpush1.bf16.msra.mxu0 %v6942_v48  ;;  %1396 = vmatprep.subr.bf16.mxu1 %v6943_v51  ;;  %v8098_v48 = vld [vmem:[#allocation2] sm:$0xf0]  ;;  %v1116_v54 = vrot.slane %v8096_v47, 4  ;;  %v3118_v23 = vsel %vm1114_vm1, %v3116_v16, %v3117_v12  ;;  %v6985_v43 = vld [vmem:[#allocation9 + $0x30] ss:$8 sps:$4 sm:$0xff]   ;;  %p7492_p2 = scmp.lt.s32.totalorder %s7490_s15, %s7484_s29 }
 0x10a   : > { %3388 = vmatprep.subr.bf16.mxu0 %v6945_v61  ;;  %v1115_v51 = vrot.slane %v8098_v48, 4  ;;  %1404 = vmatprep.mubr.bf16.mxu1 %v1120_v53  ;;  %v3107_v61 = vrot.slane %v8106_v58, 4  ;;  %v6988_v46 = vld [vmem:[#allocation9 + $0x530] ss:$8 sps:$4 sm:$0xff]   ;;  %v6993_v50 = vld [vmem:[#allocation9 + $0x44] ss:$8 sps:$4 sm:$0xff]  }
 0x10b   : > { %v541_v53 = vmax.f32 %v509_v45, 0.0  ;;  %v1776_v12 = vshrl.u32 %v8098_v48, 16  ;;  %v6994_v16 = vld [vmem:[#allocation9 + $0x540] ss:$8 sps:$4 sm:$0xff]   ;;  %p7493_p3 = por %p7492_p2, %p7491_p6 }
 0x10c   : > { %1397 = vmatpush1.bf16.msra.mxu1 %v6947_v9  ;;  %v1117_v1 = vsel %vm1114_vm1, %v1115_v51, %v1116_v54  ;;  %v3109_v9 = vsel %vm1114_vm1, %v3107_v61, %v3108_v2  ;;  %v7003_v45 = vld [vmem:[#allocation9 + $0x60] ss:$8 sps:$4 sm:$0xff]  }
 0x10d   : > { %3389 = vmatpush1.bf16.msra.mxu0 %v6948_v10  ;;  %1398 = vmatprep.subr.bf16.mxu1 %v6949_v14  ;;  %v6973_v10 = vld [vmem:[#allocation9 + $0x10] ss:$8 sps:$4 sm:$0xff]   ;;  %p7494_p0 = pnand %p7493_p3, %p7487_p11 }
 0x10e   : > { %3390 = vmatprep.subr.bf16.mxu0 %v6951_v15  ;;  %v6976_v14 = vld [vmem:[#allocation9 + $0x510] ss:$8 sps:$4 sm:$0xff]   ;;  %v1126_v15 = vsel %vm1114_vm1, %v1124_v5, %v1125_v6  ;;  %v508_v5 = vld [vmem:[%s8040_s0 + $0x60] sm:$0xff] }
 0x110   : > { %1399 = vmatpush1.bf16.msra.mxu1 %v6953_v17  ;;  %v640_v17 = vrot.slane %v562_v0, 4 }
 0x111   : > { %3391 = vmatpush1.bf16.msra.mxu0 %v6954_v20  ;;  %1400 = vmatprep.subr.bf16.mxu1 %v6955_v26  ;;  %v1122_v20 = vrot.slane %v8113_v4, 4  ;;  %v537_v26 = vmax.f32 %v505_v13, 0.0 }
 0x112   : > { %3392 = vmatprep.subr.bf16.mxu0 %v6957_v27  ;;  %675 = vst [vmem:[#allocation2 + $0x50] ss:$-12 sps:$4 sm:$0xff] %v640_v17   ;;  %v504_v27 = vld [vmem:[%s8040_s0 + $0x40] sm:$0xff]  ;;  %v6999_v17 = vld [vmem:[#allocation9 + $0x54] ss:$8 sps:$4 sm:$0xff]  }
 0x113   : > { %v536_v31 = vmax.f32 %v504_v27, 0.0  ;;  %v1123_v36 = vsel %vm1114_vm1, %v1121_v19, %v1122_v20  ;;  %v1779_v20 = vshll.u32 %v8098_v48, 16 }
 0x114   : > { %1401 = vmatpush1.bf16.msra.mxu1 %v6959_v29  ;;  %v539_v29 = vmax.f32 %v507_v18, 0.0 }
 0x115   : > { %3393 = vmatpush1.bf16.msra.mxu0 %v6960_v32  ;;  %1402 = vmatprep.subr.bf16.mxu1 %v6961_v33  ;;  %v6982_v32 = vld [vmem:[#allocation9 + $0x520] ss:$8 sps:$4 sm:$0xff]   ;;  %v1130_v33 = vrot.slane %v1071_v22, 4  ;;  %v564_v42 = vpack.c.bf16 %v538_v35, %v536_v31  ;;  %v6997_v22 = vld [vmem:[#allocation9 + $0x50] ss:$8 sps:$4 sm:$0xff]  }
 0x116   : > { %3394 = vmatprep.subr.bf16.mxu0 %v6963_v34  ;;  %v1131_v34 = vrot.slane %v8124_v21, 4  ;;  %v565_v39 = vpack.c.bf16 %v539_v29, %v537_v26  ;;  %v7000_v26 = vld [vmem:[#allocation9 + $0x550] ss:$8 sps:$4 sm:$0xff]  }
 0x117   : > { %v642_v51 = vrot.slane %v564_v42, 4 }
 0x118   : > { %1403 = vmatpush1.bf16.msra.mxu1 %v6965_v40  ;;  %v6990_v40 = vld [vmem:[#allocation9 + $0x534] ss:$8 sps:$4 sm:$0xff]   ;;  %v643_v44 = vrot.slane %v565_v39, 4 }
 0x119   : > { %3395 = vmatpush1.bf16.msra.mxu0 %v6966_v49  ;;  %1645 = vmatprep.subr.bf16.mxu1 %v6969_v52  ;;  %v1132_v49 = vsel %vm1114_vm1, %v1130_v33, %v1131_v34  ;;  %v511_v52 = vld [vmem:[%s8040_s0 + $0x78] sm:$0xff]  ;;  %v2407_v54 = vld [vmem:[#allocation2 + $0x50] sm:$0xf]  ;;  %679 = vst [vmem:[#allocation2 + $0x70] ss:$-12 sps:$4 sm:$0xff] %v642_v51  }
 0x11a   : > { %4006 = vmatprep.subr.bf16.mxu0 %v6972_v56  ;;  %v8134_v56 = vld [vmem:[#allocation2 + $0x40] sm:$0xf0]  ;;  %680 = vst [vmem:[#allocation2 + $0x78] ss:$-12 sps:$4 sm:$0xff] %v643_v44   ;;  %v3114_v61 = vrot.slane %v2407_v54, 4  ;;  %v543_v0 = vmax.f32 %v511_v52, 0.0 }
 0x11b   : > { %1405 = vmatmul.mubr.bf16.vlgmr.msra.gmra.mrb[0].mxu1 %v1117_v1  ;;  %v3113_v60 = vrot.slane %v8134_v56, 4  ;;  %v755_v1 = vshrl.u32 %v8096_v47, 16  ;;  %v7008_v33 = vld [vmem:[#allocation9 + $0x564] ss:$8 sps:$4 sm:$0xff]   ;;  %v7006_v52 = vld [vmem:[#allocation9 + $0x560] ss:$8 sps:$4 sm:$0xff]  }
 0x11c   : > { %3397 = vmatmul.mubr.bf16.vlgmr.msra.gmra.mrb[0].mxu0 %v3109_v9  ;;  %1646 = vmatpush1.bf16.msra.mxu1 %v6967_v57  ;;  %v8136_v57 = vld [vmem:[#allocation2 + $0x50] sm:$0xf]  ;;  %v567_v7 = vpack.c.bf16 %v543_v0, %v541_v53  ;;  %v540_v9 = vmax.f32 %v508_v5, 0.0  ;;  %v515_v53 = vld [vmem:[%s8040_s0 + $0x98] sm:$0xff]  ;;  %v2442_v0 = vshrl.u32 %v8104_v55, 16  ;;  %v512_v5 = vld [vmem:[%s8040_s0 + $0x80] sm:$0xff] }
 0x11d   : > { %4007 = vmatpush1.bf16.msra.mxu0 %v6970_v62  ;;  %1647 = vmatprep.subr.bf16.mxu1 %v6975_v63  ;;  %v1070_v62 = vld [vmem:[#allocation2 + $0x40] sm:$0xf0]  ;;  %v1128_v63 = vrot.slane %v8136_v57, 4  ;;  %v3115_v6 = vsel %vm1114_vm1, %v3113_v60, %v3114_v61  ;;  %v8147_v19 = vrot.slane %v755_v1, 3  ;;  %v2445_v1 = vshll.u32 %v8104_v55, 16 }
 0x11e   : > { %4008 = vmatprep.subr.bf16.mxu0 %v6978_v3  ;;  %1414 = vmatprep.mubr.bf16.mxu1 %v1126_v15  ;;  %v1127_v2 = vrot.slane %v1070_v62, 4  ;;  %v6996_v3 = vld [vmem:[#allocation9 + $0x544] ss:$8 sps:$4 sm:$0xff]   ;;  %v542_v15 = vmax.f32 %v510_v8, 0.0  ;;  %v645_v18 = vrot.slane %v567_v7, 4 }
 0x11f   : > { %3406 = vmatprep.mubr.bf16.mxu0 %v3118_v23  ;;  %v7011_v62 = vld [vmem:[#allocation9 + $0x74] ss:$8 sps:$4 sm:$0xff]  }
 0x120   : > { %1648 = vmatpush1.bf16.msra.mxu1 %v6973_v10  ;;  %v758_v10 = vshll.u32 %v8096_v47, 16  ;;  %v1129_v13 = vsel %vm1114_vm1, %v1127_v2, %v1128_v63  ;;  %v7002_v47 = vld [vmem:[#allocation9 + $0x554] ss:$8 sps:$4 sm:$0xff]   ;;  %v566_v23 = vpack.c.bf16 %v542_v15, %v540_v9  ;;  %684 = vst [vmem:[#allocation2 + $0x98] ss:$-12 sps:$4 sm:$0xff] %v645_v18   ;;  %v547_v63 = vmax.f32 %v515_v53, 0.0 }
 0x121   : > { %4009 = vmatpush1.bf16.msra.mxu0 %v6976_v14  ;;  %1649 = vmatprep.subr.bf16.mxu1 %v6981_v24  ;;  %v6991_v14 = vld [vmem:[#allocation9 + $0x40] ss:$8 sps:$4 sm:$0xff]   ;;  %v2412_v24 = vld [vmem:[#allocation2 + $0x78] sm:$0xf]  ;;  %v2411_v30 = vld [vmem:[#allocation2 + $0x70] sm:$0xf] }
 0x122   : > { %4010 = vmatprep.subr.bf16.mxu0 %v6984_v25  ;;  %v8150_v25 = vld [vmem:[#allocation2 + $0x68] sm:$0xf0]  ;;  %v729_v27 = vld [vmem:[#allocation2 + $0x78] sm:$0xf]  ;;  %v3123_v29 = vrot.slane %v2412_v24, 4  ;;  %v3120_v35 = vrot.slane %v2411_v30, 4 }
 0x123   : > { %1415 = vmatmul.mubr.bf16.gmra.mrb[4].mxu1 %v1123_v36  ;;  %v8153_v31 = vld [vmem:[#allocation2 + $0x60] sm:$0xf0]  ;;  %v1073_v36 = vld [vmem:[#allocation2 + $0x68] sm:$0xf0]  ;;  %v644_v39 = vrot.slane %v566_v23, 4  ;;  %v8160_v60 = vrot.slane %v758_v10, 4 }
 0x124   : > { %1650 = vmatpush1.bf16.msra.mxu1 %v6979_v28  ;;  %1424 = vmatprep.mubr.bf16.mxu1 %v1132_v49  ;;  %v3122_v28 = vrot.slane %v8150_v25, 4  ;;  %v3119_v34 = vrot.slane %v8153_v31, 4  ;;  %v1136_v42 = vrot.slane %v1073_v36, 4  ;;  %v1072_v44 = vld [vmem:[#allocation2 + $0x60] sm:$0xf0]  ;;  %v3529_v53 = vshll.u32 %v8106_v58, 16 }
 0x125   : > { %4011 = vmatpush1.bf16.msra.mxu0 %v6982_v32  ;;  %1651 = vmatprep.subr.bf16.mxu1 %v6987_v38  ;;  %v7005_v32 = vld [vmem:[#allocation9 + $0x64] ss:$8 sps:$4 sm:$0xff]   ;;  %v1137_v38 = vrot.slane %v729_v27, 4  ;;  %683 = vst [vmem:[#allocation2 + $0x90] ss:$-12 sps:$4 sm:$0xff] %v644_v39  }
 0x126   : > { %4012 = vmatprep.subr.bf16.mxu0 %v6990_v40  ;;  %3407 = vmatmul.mubr.bf16.gmra.mrb[4].mxu0 %v3115_v6  ;;  %v3124_v40 = vsel %vm1114_vm1, %v3122_v28, %v3123_v29  ;;  %v3121_v49 = vsel %vm1114_vm1, %v3119_v34, %v3120_v35  ;;  %v514_v6 = vld [vmem:[%s8040_s0 + $0x90] sm:$0xff]  ;;  %v7017_v28 = vld [vmem:[#allocation9 + $0x84] ss:$8 sps:$4 sm:$0xff]  }
 0x127   : > { %3416 = vmatprep.mubr.bf16.mxu0 %v3124_v40  ;;  %v1138_v61 = vsel %vm1114_vm1, %v1136_v42, %v1137_v38  ;;  %v2416_v7 = vld [vmem:[#allocation2 + $0x98] sm:$0xf]  ;;  %v3066_v8 = vld [vmem:[#allocation2 + $0x88] sm:$0xf0]  ;;  %v546_v24 = vmax.f32 %v514_v6, 0.0  ;;  %v516_v6 = vld [vmem:[%s8040_s0 + $0xa0] sm:$0xff] }
 0x128   : > { %1652 = vmatpush1.bf16.msra.mxu1 %v6985_v43  ;;  %v728_v43 = vld [vmem:[#allocation2 + $0x70] sm:$0xf]  ;;  %v733_v10 = vld [vmem:[#allocation2 + $0x98] sm:$0xf]  ;;  %v3129_v15 = vrot.slane %v2416_v7, 4 }
 0x129   : > { %4013 = vmatpush1.bf16.msra.mxu0 %v6988_v46  ;;  %1653 = vmatprep.subr.bf16.mxu1 %v6993_v50  ;;  %v513_v46 = vld [vmem:[%s8040_s0 + $0x88] sm:$0xff]  ;;  %v1133_v50 = vrot.slane %v1072_v44, 4  ;;  %v1134_v51 = vrot.slane %v728_v43, 4  ;;  %v7009_v9 = vld [vmem:[#allocation9 + $0x70] ss:$8 sps:$4 sm:$0xff]   ;;  %v1143_v18 = vrot.slane %v733_v10, 4 }
 0x12a   : > { %4014 = vmatprep.subr.bf16.mxu0 %v6996_v3  ;;  %v545_v54 = vmax.f32 %v513_v46, 0.0  ;;  %v7014_v3 = vld [vmem:[#allocation9 + $0x574] ss:$8 sps:$4 sm:$0xff]   ;;  %v7020_v29 = vld [vmem:[#allocation9 + $0x584] ss:$8 sps:$4 sm:$0xff]   ;;  %v8173_v46 = vrot.slane %v1776_v12, 4 }
 0x12b   : > { %1425 = vmatmul.mubr.bf16.gmra.mrb[8].mxu1 %v1129_v13  ;;  %v1135_v2 = vsel %vm1114_vm1, %v1133_v50, %v1134_v51  ;;  %v7015_v43 = vld [vmem:[#allocation9 + $0x80] ss:$8 sps:$4 sm:$0xff]   ;;  %v7023_v50 = vld [vmem:[#allocation9 + $0x94] ss:$8 sps:$4 sm:$0xff]   ;;  %v7029_v7 = vld [vmem:[#allocation9 + $0xa4] ss:$8 sps:$4 sm:$0xff]  }
 0x12c   : > { %1654 = vmatpush1.bf16.msra.mxu1 %v6991_v14  ;;  %1434 = vmatprep.mubr.bf16.mxu1 %v1138_v61  ;;  %v569_v13 = vpack.c.bf16 %v547_v63, %v545_v54  ;;  %v3128_v14 = vrot.slane %v3066_v8, 4  ;;  %v2415_v30 = vld [vmem:[#allocation2 + $0x90] sm:$0xf]  ;;  %v1074_v39 = vld [vmem:[#allocation2 + $0x80] sm:$0xf0]  ;;  %v517_v12 = vld [vmem:[%s8040_s0 + $0xa8] sm:$0xff] }
 0x12d   : > { %4015 = vmatpush1.bf16.msra.mxu0 %v6994_v16  ;;  %1655 = vmatprep.subr.bf16.mxu1 %v6999_v17  ;;  %v7012_v16 = vld [vmem:[#allocation9 + $0x570] ss:$8 sps:$4 sm:$0xff]   ;;  %v1075_v17 = vld [vmem:[#allocation2 + $0x88] sm:$0xf0]  ;;  %v3126_v38 = vrot.slane %v2415_v30, 4  ;;  %v1139_v42 = vrot.slane %v1074_v39, 4 }
 0x12e   : > { %4016 = vmatprep.subr.bf16.mxu0 %v7002_v47  ;;  %3417 = vmatmul.mubr.bf16.gmra.mrb[8].mxu0 %v3121_v49  ;;  %v1142_v47 = vrot.slane %v1075_v17, 4  ;;  %v647_v23 = vrot.slane %v569_v13, 4  ;;  %v3130_v27 = vsel %vm1114_vm1, %v3128_v14, %v3129_v15  ;;  %v732_v34 = vld [vmem:[#allocation2 + $0x90] sm:$0xf]  ;;  %v7026_v51 = vld [vmem:[#allocation9 + $0x594] ss:$8 sps:$4 sm:$0xff]  }
 0x12f   : > { %3426 = vmatprep.mubr.bf16.mxu0 %v3130_v27  ;;  %v1140_v40 = vrot.slane %v732_v34, 4  ;;  %v7021_v61 = vld [vmem:[#allocation9 + $0x90] ss:$8 sps:$4 sm:$0xff]   ;;  %v772_v63 = vshrl.u32 %v8092_v41, 16  ;;  %v3543_v30 = vshrl.u32 %v8090_v37, 16 }
 0x130   : > { %1656 = vmatpush1.bf16.msra.mxu1 %v6997_v22  ;;  %v544_v22 = vmax.f32 %v512_v5, 0.0  ;;  %688 = vst [vmem:[#allocation2 + $0xb8] ss:$-12 sps:$4 sm:$0xff] %v647_v23   ;;  %v518_v8 = vld [vmem:[%s8040_s0 + $0xb0] sm:$0xff] }
 0x131   : > { %4017 = vmatpush1.bf16.msra.mxu0 %v7000_v26  ;;  %1657 = vmatprep.subr.bf16.mxu1 %v7005_v32  ;;  %v3526_v26 = vshrl.u32 %v8106_v58, 16  ;;  %v3065_v32 = vld [vmem:[#allocation2 + $0x80] sm:$0xf0]  ;;  %v1141_v54 = vsel %vm1114_vm1, %v1139_v42, %v1140_v40  ;;  %v548_v58 = vmax.f32 %v516_v6, 0.0 }
 0x132   : > { %4018 = vmatprep.subr.bf16.mxu0 %v7008_v33  ;;  %v1144_v33 = vsel %vm1114_vm1, %v1142_v47, %v1143_v18  ;;  %v568_v35 = vpack.c.bf16 %v546_v24, %v544_v22  ;;  %v3125_v36 = vrot.slane %v3065_v32, 4  ;;  %v550_v47 = vmax.f32 %v518_v8, 0.0  ;;  %v7041_v6 = vld [vmem:[#allocation9 + $0xc4] ss:$8 sps:$4 sm:$0xff]   ;;  %v7039_v8 = vld [vmem:[#allocation9 + $0xc0] ss:$8 sps:$4 sm:$0xff]  }
 0x133   : > { %1435 = vmatmul.mubr.bf16.gmra.mrb[12].mxu1 %v1135_v2  ;;  %v7024_v2 = vld [vmem:[#allocation9 + $0x590] ss:$8 sps:$4 sm:$0xff]  }
 0x134   : > { %1658 = vmatpush1.bf16.msra.mxu1 %v7003_v45  ;;  %1444 = vmatprep.mubr.bf16.mxu1 %v1144_v33  ;;  %v646_v44 = vrot.slane %v568_v35, 4  ;;  %v7018_v45 = vld [vmem:[#allocation9 + $0x580] ss:$8 sps:$4 sm:$0xff]   ;;  %v3127_v49 = vsel %vm1114_vm1, %v3125_v36, %v3126_v38 }
 0x135   : > { %4019 = vmatpush1.bf16.msra.mxu0 %v7006_v52  ;;  %1659 = vmatprep.subr.bf16.mxu1 %v7011_v62  ;;  %v8176_v52 = vrot.slane %v3526_v26, 4  ;;  %v519_v62 = vld [vmem:[%s8040_s0 + $0xb8] sm:$0xff]  ;;  %v7027_v26 = vld [vmem:[#allocation9 + $0xa0] ss:$8 sps:$4 sm:$0xff]  }
 0x136   : > { %4020 = vmatprep.subr.bf16.mxu0 %v7014_v3  ;;  %3427 = vmatmul.mubr.bf16.gmra.mrb[12].mxu0 %v3127_v49  ;;  %687 = vst [vmem:[#allocation2 + $0xb0] ss:$-12 sps:$4 sm:$0xff] %v646_v44   ;;  %v549_v3 = vmax.f32 %v517_v12, 0.0  ;;  %v551_v5 = vmax.f32 %v519_v62, 0.0  ;;  %v7035_v44 = vld [vmem:[#allocation9 + $0xb4] ss:$8 sps:$4 sm:$0xff]  }
 0x137   : > { %v2420_v10 = vld [vmem:[#allocation2 + $0xb8] sm:$0xf]  ;;  %v3068_v13 = vld [vmem:[#allocation2 + $0xa8] sm:$0xf0]  ;;  %v8190_v49 = vrot.slane %v3529_v53, 5 }
 0x138   : > { %1660 = vmatpush1.bf16.msra.mxu1 %v7009_v9  ;;  %v775_v9 = vshll.u32 %v8092_v41, 16  ;;  %v737_v14 = vld [vmem:[#allocation2 + $0xb8] sm:$0xf]  ;;  %v571_v15 = vpack.c.bf16 %v551_v5, %v549_v3  ;;  %v3135_v17 = vrot.slane %v2420_v10, 4  ;;  %v1077_v18 = vld [vmem:[#allocation2 + $0xa8] sm:$0xf0] }
 0x139   : > { %4021 = vmatpush1.bf16.msra.mxu0 %v7012_v16  ;;  %1661 = vmatprep.subr.bf16.mxu1 %v7017_v28  ;;  %v3134_v16 = vrot.slane %v3068_v13, 4  ;;  %v1149_v22 = vrot.slane %v737_v14, 4  ;;  %v1148_v23 = vrot.slane %v1077_v18, 4  ;;  %v570_v28 = vpack.c.bf16 %v550_v47, %v548_v58  ;;  %v7030_v41 = vld [vmem:[#allocation9 + $0x5a0] ss:$8 sps:$4 sm:$0xff]   ;;  %v523_v62 = vld [vmem:[%s8040_s0 + $0xd8] sm:$0xff] }
 0x13a   : > { %4022 = vmatprep.subr.bf16.mxu0 %v7020_v29  ;;  %v649_v24 = vrot.slane %v571_v15, 4  ;;  %v7032_v29 = vld [vmem:[#allocation9 + $0x5a4] ss:$8 sps:$4 sm:$0xff]   ;;  %v8196_v3 = vrot.slane %v772_v63, 3  ;;  %v7036_v53 = vld [vmem:[#allocation9 + $0x5b0] ss:$8 sps:$4 sm:$0xff]  }
 0x13b   : > { %1445 = vmatmul.mubr.bf16.gmra.mrb[16].mxu1 %v1141_v54  ;;  %v3136_v27 = vsel %vm1114_vm1, %v3134_v16, %v3135_v17  ;;  %v1150_v34 = vsel %vm1114_vm1, %v1148_v23, %v1149_v22  ;;  %v648_v42 = vrot.slane %v570_v28, 4  ;;  %v7038_v54 = vld [vmem:[#allocation9 + $0x5b4] ss:$8 sps:$4 sm:$0xff]   ;;  %v555_v5 = vmax.f32 %v523_v62, 0.0  ;;  %v7044_v28 = vld [vmem:[#allocation9 + $0x5c4] ss:$8 sps:$4 sm:$0xff]  }
 0x13c   : > { %1662 = vmatpush1.bf16.msra.mxu1 %v7015_v43  ;;  %3436 = vmatprep.mubr.bf16.mxu0 %v3136_v27  ;;  %692 = vst [vmem:[#allocation2 + $0xd8] ss:$-12 sps:$4 sm:$0xff] %v649_v24   ;;  %v522_v58 = vld [vmem:[%s8040_s0 + $0xd0] sm:$0xff]  ;;  %v8202_v13 = vrot.slane %v3543_v30, 4  ;;  %v7042_v27 = vld [vmem:[#allocation9 + $0x5c0] ss:$8 sps:$4 sm:$0xff]  }
 0x13d   : > { %4023 = vmatpush1.bf16.msra.mxu0 %v7018_v45  ;;  %1663 = vmatprep.subr.bf16.mxu1 %v7023_v50  ;;  %v2419_v32 = vld [vmem:[#allocation2 + $0xb0] sm:$0xf]  ;;  %v3067_v33 = vld [vmem:[#allocation2 + $0xa0] sm:$0xf0]  ;;  %v3546_v45 = vshll.u32 %v8090_v37, 16  ;;  %v8198_v37 = vrot.slane %v775_v9, 4 }
 0x13e   : > { %4024 = vmatprep.subr.bf16.mxu0 %v7026_v51  ;;  %v736_v35 = vld [vmem:[#allocation2 + $0xb0] sm:$0xf]  ;;  %v3131_v36 = vrot.slane %v3067_v33, 4  ;;  %v3132_v38 = vrot.slane %v2419_v32, 4  ;;  %1454 = vmatprep.mubr.bf16.mxu1 %v1150_v34  ;;  %v1076_v39 = vld [vmem:[#allocation2 + $0xa0] sm:$0xf0] }
 0x13f   : > { %v1146_v40 = vrot.slane %v736_v35, 4  ;;  %v1145_v43 = vrot.slane %v1076_v39, 4  ;;  %691 = vst [vmem:[#allocation2 + $0xd0] ss:$-12 sps:$4 sm:$0xff] %v648_v42   ;;  %v7033_v51 = vld [vmem:[#allocation9 + $0xb0] ss:$8 sps:$4 sm:$0xff]  }
 0x140   : > { %1664 = vmatpush1.bf16.msra.mxu1 %v7021_v61  ;;  %v3133_v50 = vsel %vm1114_vm1, %v3131_v36, %v3132_v38  ;;  %v521_v61 = vld [vmem:[%s8040_s0 + $0xc8] sm:$0xff]  ;;  %v8204_v14 = vrot.slane %v3546_v45, 5  ;;  %v554_v23 = vmax.f32 %v522_v58, 0.0  ;;  %v7047_v45 = vld [vmem:[#allocation9 + $0xd4] ss:$8 sps:$4 sm:$0xff]   ;;  %v524_v58 = vld [vmem:[%s8040_s0 + $0xe0] sm:$0xff] }
 0x141   : > { %4025 = vmatpush1.bf16.msra.mxu0 %v7024_v2  ;;  %1665 = vmatprep.subr.bf16.mxu1 %v7029_v7  ;;  %v1147_v12 = vsel %vm1114_vm1, %v1145_v43, %v1146_v40  ;;  %v553_v2 = vmax.f32 %v521_v61, 0.0  ;;  %v520_v7 = vld [vmem:[%s8040_s0 + $0xc0] sm:$0xff]  ;;  %v7045_v43 = vld [vmem:[#allocation9 + $0xd0] ss:$8 sps:$4 sm:$0xff]   ;;  %v7050_v61 = vld [vmem:[#allocation9 + $0x5d4] ss:$8 sps:$4 sm:$0xff]  }
 0x142   : > { %4026 = vmatprep.subr.bf16.mxu0 %v7032_v29  ;;  %3437 = vmatmul.mubr.bf16.gmra.mrb[16].mxu0 %v3133_v50  ;;  %v552_v10 = vmax.f32 %v520_v7, 0.0  ;;  %v7048_v50 = vld [vmem:[#allocation9 + $0x5d0] ss:$8 sps:$4 sm:$0xff]   ;;  %v7051_v7 = vld [vmem:[#allocation9 + $0xe0] ss:$8 sps:$4 sm:$0xff]  }
 0x143   : > { %1455 = vmatmul.mubr.bf16.gmra.mrb[20].mxu1 %v1147_v12  ;;  %v2424_v15 = vld [vmem:[#allocation2 + $0xd8] sm:$0xf]  ;;  %v3070_v16 = vld [vmem:[#allocation2 + $0xc8] sm:$0xf0]  ;;  %v573_v9 = vpack.c.bf16 %v555_v5, %v553_v2  ;;  %v809_v2 = vshll.u32 %v8108_v59, 16 }
 0x144   : > { %1666 = vmatpush1.bf16.msra.mxu1 %v7027_v26  ;;  %v741_v63 = vld [vmem:[#allocation2 + $0xd8] sm:$0xf]  ;;  %v3140_v17 = vrot.slane %v3070_v16, 4  ;;  %v3141_v18 = vrot.slane %v2424_v15, 4  ;;  %v1079_v22 = vld [vmem:[#allocation2 + $0xc8] sm:$0xf0]  ;;  %v572_v33 = vpack.c.bf16 %v554_v23, %v552_v10 }
 0x145   : > { %1667 = vmatprep.subr.bf16.mxu1 %v7035_v44  ;;  %4027 = vmatpush1.bf16.msra.mxu0 %v7030_v41  ;;  %v1155_v47 = vrot.slane %v741_v63, 4  ;;  %v1154_v24 = vrot.slane %v1079_v22, 4  ;;  %v651_v26 = vrot.slane %v573_v9, 4  ;;  %v525_v12 = vld [vmem:[%s8040_s0 + $0xe8] sm:$0xff]  ;;  %v527_v62 = vld [vmem:[%s8040_s0 + $0xf8] sm:$0xff]  ;;  %v526_v10 = vld [vmem:[%s8040_s0 + $0xf0] sm:$0xff]  ;;  %s9070_s0 = scalar_lea.hbm %s9257_s7, %s6425_s14 }
 0x146   : > { %4028 = vmatprep.subr.bf16.mxu0 %v7038_v54  ;;  %v3142_v41 = vsel %vm1114_vm1, %v3140_v17, %v3141_v18  ;;  %v2423_v29 = vld [vmem:[#allocation2 + $0xd0] sm:$0xf]  ;;  %v3069_v30 = vld [vmem:[#allocation2 + $0xc0] sm:$0xf0]  ;;  %v650_v42 = vrot.slane %v572_v33, 4  ;;  %v557_v5 = vmax.f32 %v525_v12, 0.0 }
 0x147   : > { %v740_v32 = vld [vmem:[#allocation2 + $0xd0] sm:$0xf]  ;;  %3446 = vmatprep.mubr.bf16.mxu0 %v3142_v41  ;;  %v3137_v34 = vrot.slane %v3069_v30, 4  ;;  %v3138_v35 = vrot.slane %v2423_v29, 4  ;;  %v1156_v36 = vsel %vm1114_vm1, %v1154_v24, %v1155_v47  ;;  %696 = vst [vmem:[#allocation2 + $0xf8] ss:$-12 sps:$4 sm:$0xff] %v651_v26  }
 0x148   : > { %1668 = vmatpush1.bf16.msra.mxu1 %v7033_v51  ;;  %v1078_v38 = vld [vmem:[#allocation2 + $0xc0] sm:$0xf0]  ;;  %v1152_v39 = vrot.slane %v740_v32, 4  ;;  %1464 = vmatprep.mubr.bf16.mxu1 %v1156_v36  ;;  %v806_v51 = vshrl.u32 %v8108_v59, 16  ;;  %695 = vst [vmem:[#allocation2 + $0xf0] ss:$-12 sps:$4 sm:$0xff] %v650_v42  }
 0x149   : > { %1669 = vmatprep.subr.bf16.mxu1 %v7041_v6  ;;  %4029 = vmatpush1.bf16.msra.mxu0 %v7036_v53  ;;  %v1151_v40 = vrot.slane %v1078_v38, 4  ;;  %v3139_v44 = vsel %vm1114_vm1, %v3137_v34, %v3138_v35  ;;  %v3577_v53 = vshrl.u32 %v8117_v11, 16  ;;  %v559_v6 = vmax.f32 %v527_v62, 0.0  ;;  %v7054_v18 = vld [vmem:[#allocation9 + $0x5e0] ss:$8 sps:$4 sm:$0xff]  }
 0x14a   : > { %4030 = vmatprep.subr.bf16.mxu0 %v7044_v28  ;;  %3447 = vmatmul.mubr.bf16.gmra.mrb[20].mxu0 %v3139_v44  ;;  %v3580_v15 = vshll.u32 %v8117_v11, 16  ;;  %v789_v16 = vshrl.u32 %v8113_v4, 16  ;;  %v556_v9 = vmax.f32 %v524_v58, 0.0  ;;  %v558_v17 = vmax.f32 %v526_v10, 0.0  ;;  %v7056_v32 = vld [vmem:[#allocation9 + $0x5e4] ss:$8 sps:$4 sm:$0xff]  }
 0x14b   : > { %v1153_v54 = vsel %vm1114_vm1, %v1151_v40, %v1152_v39  ;;  %v575_v63 = vpack.c.bf16 %v559_v6, %v557_v5  ;;  %v792_v33 = vshll.u32 %v8113_v4, 16  ;;  %v7059_v12 = vld [vmem:[#allocation9 + $0xf4] ss:$8 sps:$4 sm:$0xff]   ;;  %v7060_v6 = vld [vmem:[#allocation9 + $0x5f0] ss:$8 sps:$4 sm:$0xff]  }
 0x14c   : > { %1670 = vmatpush1.bf16.msra.mxu1 %v7039_v8  ;;  %v7053_v8 = vld [vmem:[#allocation9 + $0xe4] ss:$8 sps:$4 sm:$0xff]   ;;  %v574_v30 = vpack.c.bf16 %v558_v17, %v556_v9  ;;  %v376_v10 = vld [vmem:[#allocation2 + $0x8] sm:$0x8]  ;;  %v373_v9 = vld [vmem:[#allocation2] sm:$0x8] }
 0x14d   : > { %4031 = vmatpush1.bf16.msra.mxu0 %v7042_v27  ;;  %1465 = vmatmul.mubr.bf16.gmra.mrb[24].mxu1 %v1153_v54  ;;  %v653_v41 = vrot.slane %v575_v63, 4  ;;  %v445_v63 = vld [vmem:[#allocation2 + $0x38] sm:$0x10]  ;;  %v377_v17 = vsel %vm8224_vm6, 0, %v376_v10 }
 0x14e   : > { %1671 = vmatprep.subr.bf16.mxu1 %v7047_v45  ;;  %4032 = vmatprep.subr.bf16.mxu0 %v7050_v61  ;;  %v2428_v22 = vld [vmem:[#allocation2 + $0xf8] sm:$0xf]  ;;  %v3072_v47 = vld [vmem:[#allocation2 + $0xe8] sm:$0xf0]  ;;  %v652_v54 = vrot.slane %v574_v30, 4 }
 0x14f   : > { %v745_v23 = vld [vmem:[#allocation2 + $0xf8] sm:$0xf]  ;;  %v3146_v24 = vrot.slane %v3072_v47, 4  ;;  %v3147_v26 = vrot.slane %v2428_v22, 4  ;;  %v1081_v27 = vld [vmem:[#allocation2 + $0xe8] sm:$0xf0] }
 0x150   : > { %1672 = vmatpush1.bf16.msra.mxu1 %v7045_v43  ;;  %v1161_v28 = vrot.slane %v745_v23, 4  ;;  %v1160_v29 = vrot.slane %v1081_v27, 4  ;;  %v2427_v35 = vld [vmem:[#allocation2 + $0xf0] sm:$0xf]  ;;  %v3071_v36 = vld [vmem:[#allocation2 + $0xe0] sm:$0xf0] }
 0x151   : > { %4033 = vmatpush1.bf16.msra.mxu0 %v7048_v50  ;;  %1673 = vmatprep.subr.bf16.mxu1 %v7053_v8  ;;  %v3148_v34 = vsel %vm1114_vm1, %v3146_v24, %v3147_v26  ;;  %700 = vst [vmem:[#allocation2 + $0x118] ss:$-12 sps:$4 sm:$0xff] %v653_v41   ;;  %v744_v38 = vld [vmem:[#allocation2 + $0xf0] sm:$0xf]  ;;  %v3143_v39 = vrot.slane %v3071_v36, 4  ;;  %v3144_v40 = vrot.slane %v2427_v35, 4 }
 0x152   : > { %3456 = vmatprep.mubr.bf16.mxu0 %v3148_v34  ;;  %v1162_v42 = vsel %vm1114_vm1, %v1160_v29, %v1161_v28  ;;  %v1080_v43 = vld [vmem:[#allocation2 + $0xe0] sm:$0xf0]  ;;  %v1158_v44 = vrot.slane %v744_v38, 4  ;;  %4034 = vmatprep.subr.bf16.mxu0 %v7056_v32  ;;  %v7057_v61 = vld [vmem:[#allocation9 + $0xf0] ss:$8 sps:$4 sm:$0xff]   ;;  %v3560_v8 = vshrl.u32 %v8134_v56, 16 }
 0x153   : > { %1474 = vmatprep.mubr.bf16.mxu1 %v1162_v42  ;;  %v1157_v50 = vrot.slane %v1080_v43, 4  ;;  %v3145_v5 = vsel %vm1114_vm1, %v3143_v39, %v3144_v40  ;;  %699 = vst [vmem:[#allocation2 + $0x110] ss:$-12 sps:$4 sm:$0xff] %v652_v54   ;;  %v374_v22 = vsel %vm8224_vm6, 0, %v373_v9  ;;  %378 = vst [vmem:[#allocation2 + $0x8] sm:$0x8] %v377_v17 }
 0x154   : > { %1674 = vmatpush1.bf16.msra.mxu1 %v7051_v7  ;;  %v7062_v7 = vld [vmem:[#allocation9 + $0x5f4] ss:$8 sps:$4 sm:$0xff]   ;;  %3457 = vmatmul.mubr.bf16.gmra.mrb[24].mxu0 %v3145_v5  ;;  %375 = vst [vmem:[#allocation2] sm:$0x8] %v374_v22  ;;  %v7065_v47 = vld [vmem:[#allocation9 + $0x204] ss:$8 sps:$4 sm:$0xff]   ;;  %v761_v5 = vor.u32 %v8160_v60, %v8147_v19 }
 0x155   : > { %4035 = vmatpush1.bf16.msra.mxu0 %v7054_v18  ;;  %v1159_v58 = vsel %vm1114_vm1, %v1157_v50, %v1158_v44  ;;  %1675 = vmatprep.subr.bf16.mxu1 %v7059_v12  ;;  %v446_v18 = vsel %vm8230_vm7, 0, %v445_v63  ;;  %v442_v23 = vld [vmem:[#allocation2 + $0x30] sm:$0x10]  ;;  %v3563_v24 = vshll.u32 %v8134_v56, 16  ;;  %v840_v26 = vshrl.u32 %v8124_v21, 16 }
 0x156   : > { %1475 = vmatmul.mubr.bf16.gmra.mrb[28].mxu1 %v1159_v58  ;;  %4036 = vmatprep.subr.bf16.mxu0 %v7062_v7  ;;  %447 = vst [vmem:[#allocation2 + $0x38] sm:$0x10] %v446_v18  ;;  %v443_v41 = vsel %vm8230_vm7, 0, %v442_v23  ;;  %v7068_v32 = vld [vmem:[#allocation9 + $0x604] ss:$8 sps:$4 sm:$0xff]   ;;  %v8249_v34 = vrot.slane %v806_v51, 3  ;;  %v778_v50 = vor.u32 %v8198_v37, %v8196_v3 }
 0x157   : > { %444 = vst [vmem:[#allocation2 + $0x30] sm:$0x10] %v443_v41  ;;  %v843_v35 = vshll.u32 %v8124_v21, 16  ;;  %v8254_v56 = vrot.slane %v809_v2, 4  ;;  %v8258_v36 = vrot.slane %v3577_v53, 4  ;;  %v8262_v38 = vrot.slane %v3580_v15, 5 }
 0x158   : > { %1676 = vmatpush1.bf16.msra.mxu1 %v7057_v61  ;;  %v2432_v27 = vld [vmem:[#allocation2 + $0x118] sm:$0xf]  ;;  %v3074_v28 = vld [vmem:[#allocation2 + $0x108] sm:$0xf0]  ;;  %v8266_v39 = vrot.slane %v789_v16, 3  ;;  %v8269_v21 = vrot.slane %v792_v33, 4  ;;  %v3549_v61 = vor.u32 %v8204_v14, %v8202_v13 }
 0x159   : > { %4037 = vmatpush1.bf16.msra.mxu0 %v7060_v6  ;;  %v3152_v29 = vrot.slane %v3074_v28, 4  ;;  %v3153_v30 = vrot.slane %v2432_v27, 4  ;;  %2256 = vmatprep.subr.bf16.mxu1 %v7065_v47  ;;  %v8271_v59 = vrot.slane %v3560_v8, 4  ;;  %v8273_v2 = vrot.slane %v3563_v24, 5  ;;  %v382_v42 = vld [vmem:[#allocation2 + $0x28] sm:$0x8] }
 0x15a   : > { %4665 = vmatprep.subr.bf16.mxu0 %v7068_v32  ;;  %v2431_v53 = vld [vmem:[#allocation2 + $0x110] sm:$0xf]  ;;  %v3073_v40 = vld [vmem:[#allocation2 + $0x100] sm:$0xf0]  ;;  %v8275_v11 = vrot.slane %v840_v26, 3  ;;  %v3611_v15 = vshrl.u32 %v8150_v25, 16  ;;  %v3532_v32 = vor.u32 %v8190_v49, %v8176_v52 }
 0x15b   : > { %v3154_v51 = vsel %vm1114_vm1, %v3152_v29, %v3153_v30  ;;  %v3149_v4 = vrot.slane %v3073_v40, 4  ;;  %v3150_v16 = vrot.slane %v2431_v53, 4  ;;  %v8278_v43 = vrot.slane %v843_v35, 4  ;;  %v715_v33 = vld [vmem:[#allocation2 + $0x8] sm:$0xf8] }
 0x15c   : > { %3466 = vmatprep.mubr.bf16.mxu0 %v3154_v51  ;;  %v3614_v44 = vshll.u32 %v8150_v25, 16  ;;  %v714_v12 = vld [vmem:[#allocation2] sm:$0xf8]  ;;  %v764_v7 = vshrl.u32 %v715_v33, 16  ;;  %v767_v8 = vshll.u32 %v715_v33, 16  ;;  %v383_v3 = vsel %vm8224_vm6, 0, %v382_v42 }
 0x15d   : > { %v3510_v54 = vld [vmem:[#allocation2 + $0x38] sm:$0x1f]  ;;  %v3151_v6 = vsel %vm1114_vm1, %v3149_v4, %v3150_v16  ;;  %v747_v63 = vshrl.u32 %v714_v12, 16  ;;  %v750_v9 = vshll.u32 %v714_v12, 16  ;;  %384 = vst [vmem:[#allocation2 + $0x28] sm:$0x8] %v383_v3 }
 0x15e   : > { %v3551_v58 = vshrl.u32 %v3510_v54, 16  ;;  %v451_v10 = vld [vmem:[#allocation2 + $0x58] sm:$0x10]  ;;  %3467 = vmatmul.mubr.bf16.gmra.mrb[28].mxu0 %v3151_v6  ;;  %v3554_v25 = vshll.u32 %v3510_v54, 16  ;;  %v3509_v17 = vld [vmem:[#allocation2 + $0x30] sm:$0x1f] }
 0x15f   : > { %v766_v37 = vrot.slane %v764_v7, 3  ;;  %v769_v13 = vrot.slane %v767_v8, 4  ;;  %v3534_v18 = vshrl.u32 %v3509_v17, 16  ;;  %v379_v19 = vld [vmem:[#allocation2 + $0x20] sm:$0x8]  ;;  %v749_v22 = vrot.slane %v747_v63, 3 }
 0x160   : > { %v3553_v14 = vrot.slane %v3551_v58, 4  ;;  %v3556_v60 = vrot.slane %v3554_v25, 5  ;;  %v752_v47 = vrot.slane %v750_v9, 4  ;;  %v3537_v23 = vshll.u32 %v3509_v17, 16  ;;  %v7063_v30 = vld [vmem:[#allocation9 + $0x200] ss:$8 sps:$4 sm:$0xff]  }
 0x161   : > { %v770_v24 = vor.u32 %v769_v13, %v766_v37  ;;  %v3536_v26 = vrot.slane %v3534_v18, 4  ;;  %v452_v27 = vsel %vm8230_vm7, 0, %v451_v10  ;;  %v380_v28 = vsel %vm8224_vm6, 0, %v379_v19  ;;  %v448_v51 = vld [vmem:[#allocation2 + $0x50] sm:$0x10] }
 0x162   : > { %v3557_v41 = vor.u32 %v3556_v60, %v3553_v14  ;;  %v753_v29 = vor.u32 %v752_v47, %v749_v22  ;;  %v3539_v35 = vrot.slane %v3537_v23, 5  ;;  %453 = vst [vmem:[#allocation2 + $0x58] sm:$0x10] %v452_v27  ;;  %381 = vst [vmem:[#allocation2 + $0x20] sm:$0x8] %v380_v28  ;;  %v449_v4 = vsel %vm8230_vm7, 0, %v448_v51 }
 0x163   : > { %v779_v53 = vsel %vm434_vm4, %v770_v24, %v778_v50  ;;  %v7071_v40 = vld [vmem:[#allocation9 + $0x214] ss:$8 sps:$4 sm:$0xff]   ;;  %v8299_v16 = vrot.slane %v3611_v15, 4  ;;  %v823_v42 = vshrl.u32 %v8136_v57, 16  ;;  %v7066_v49 = vld [vmem:[#allocation9 + $0x600] ss:$8 sps:$4 sm:$0xff]   ;;  %v812_v22 = vor.u32 %v8254_v56, %v8249_v34 }
 0x164   : > { %1677 = vmatprep.mubr.bf16.mxu1 %v779_v53  ;;  %v3558_v33 = vsel %vm1774_vm8, %v3549_v61, %v3557_v41  ;;  %v762_v54 = vsel %vm434_vm4, %v753_v29, %v761_v5  ;;  %v3540_v52 = vor.u32 %v3539_v35, %v3536_v26  ;;  %v7069_v12 = vld [vmem:[#allocation9 + $0x210] ss:$8 sps:$4 sm:$0xff]   ;;  %450 = vst [vmem:[#allocation2 + $0x50] sm:$0x10] %v449_v4  ;;  %v826_v6 = vshll.u32 %v8136_v57, 16 }
 0x165   : > { %4038 = vmatprep.mubr.bf16.mxu0 %v3558_v33  ;;  %1678 = vmatmul.mubr.bf16.vlgmr.msra.gmra.mrb[0].mxu1 %v762_v54  ;;  %v7074_v50 = vld [vmem:[#allocation9 + $0x614] ss:$8 sps:$4 sm:$0xff]   ;;  %v7077_v7 = vld [vmem:[#allocation9 + $0x224] ss:$8 sps:$4 sm:$0xff]   ;;  %v8305_v8 = vrot.slane %v3614_v44, 5  ;;  %v8314_v13 = vrot.slane %v823_v42, 3  ;;  %v3583_v23 = vor.u32 %v8262_v38, %v8258_v36  ;;  %v795_v35 = vor.u32 %v8269_v21, %v8266_v39 }
 0x166   : > { %v3541_v15 = vsel %vm1774_vm8, %v3532_v32, %v3540_v52  ;;  %2257 = vmatpush1.bf16.msra.mxu1 %v7063_v30  ;;  %v7072_v58 = vld [vmem:[#allocation9 + $0x610] ss:$8 sps:$4 sm:$0xff]   ;;  %v719_v10 = vld [vmem:[#allocation2 + $0x28] sm:$0xf8]  ;;  %v457_v25 = vld [vmem:[#allocation2 + $0x78] sm:$0x10]  ;;  %v3566_v34 = vor.u32 %v8273_v2, %v8271_v59 }
 0x167   : > { %v388_v61 = vld [vmem:[#allocation2 + $0x48] sm:$0x8]  ;;  %4039 = vmatmul.mubr.bf16.vlgmr.msra.gmra.mrb[0].mxu0 %v3541_v15  ;;  %2258 = vmatprep.subr.bf16.mxu1 %v7071_v40  ;;  %v798_v5 = vshrl.u32 %v719_v10, 16  ;;  %v801_v63 = vshll.u32 %v719_v10, 16  ;;  %v7080_v9 = vld [vmem:[#allocation9 + $0x624] ss:$8 sps:$4 sm:$0xff]  }
 0x168   : > { %v389_v57 = vsel %vm8224_vm6, 0, %v388_v61  ;;  %v458_v17 = vsel %vm8230_vm7, 0, %v457_v25  ;;  %v385_v44 = vld [vmem:[#allocation2 + $0x40] sm:$0x8]  ;;  %4666 = vmatpush1.bf16.msra.mxu0 %v7066_v49  ;;  %v8316_v14 = vrot.slane %v826_v6, 4  ;;  %v3594_v18 = vshrl.u32 %v8153_v31, 16 }
 0x169   : > { %v7075_v3 = vld [vmem:[#allocation9 + $0x220] ss:$8 sps:$4 sm:$0xff]   ;;  %390 = vst [vmem:[#allocation2 + $0x48] sm:$0x8] %v389_v57  ;;  %459 = vst [vmem:[#allocation2 + $0x78] sm:$0x10] %v458_v17  ;;  %4667 = vmatprep.subr.bf16.mxu0 %v7074_v50  ;;  %v3617_v61 = vor.u32 %v8305_v8, %v8299_v16 }
 0x16a   : > { %v386_v37 = vsel %vm8224_vm6, 0, %v385_v44  ;;  %v800_v19 = vrot.slane %v798_v5, 3  ;;  %v803_v60 = vrot.slane %v801_v63, 4  ;;  %v3512_v47 = vld [vmem:[#allocation2 + $0x58] sm:$0x1f]  ;;  %2259 = vmatpush1.bf16.msra.mxu1 %v7069_v12  ;;  %v3597_v36 = vshll.u32 %v8153_v31, 16 }
 0x16b   : > { %v718_v24 = vld [vmem:[#allocation2 + $0x20] sm:$0xf8]  ;;  %387 = vst [vmem:[#allocation2 + $0x40] sm:$0x8] %v386_v37  ;;  %v3585_v26 = vshrl.u32 %v3512_v47, 16  ;;  %v3588_v27 = vshll.u32 %v3512_v47, 16  ;;  %2260 = vmatprep.subr.bf16.mxu1 %v7077_v7 }
 0x16c   : > { %v781_v28 = vshrl.u32 %v718_v24, 16  ;;  %v784_v41 = vshll.u32 %v718_v24, 16  ;;  %v7078_v29 = vld [vmem:[#allocation9 + $0x620] ss:$8 sps:$4 sm:$0xff]   ;;  %v7083_v30 = vld [vmem:[#allocation9 + $0x234] ss:$8 sps:$4 sm:$0xff]   ;;  %v804_v32 = vor.u32 %v803_v60, %v800_v19  ;;  %4668 = vmatpush1.bf16.msra.mxu0 %v7072_v58  ;;  %v846_v58 = vor.u32 %v8278_v43, %v8275_v11 }
 0x16d   : > { %v3511_v51 = vld [vmem:[#allocation2 + $0x50] sm:$0x1f]  ;;  %v3587_v38 = vrot.slane %v3585_v26, 4  ;;  %v3590_v53 = vrot.slane %v3588_v27, 5  ;;  %4669 = vmatprep.subr.bf16.mxu0 %v7080_v9  ;;  %v7089_v31 = vld [vmem:[#allocation9 + $0x244] ss:$8 sps:$4 sm:$0xff]   ;;  %v829_v19 = vor.u32 %v8316_v14, %v8314_v13 }
 0x16e   : > { %v454_v56 = vld [vmem:[#allocation2 + $0x70] sm:$0x10]  ;;  %v783_v40 = vrot.slane %v781_v28, 3  ;;  %v786_v4 = vrot.slane %v784_v41, 4  ;;  %v7081_v42 = vld [vmem:[#allocation9 + $0x230] ss:$8 sps:$4 sm:$0xff]   ;;  %v813_v33 = vsel %vm434_vm4, %v804_v32, %v812_v22  ;;  %2261 = vmatpush1.bf16.msra.mxu1 %v7075_v3 }
 0x16f   : > { %v3568_v54 = vshrl.u32 %v3511_v51, 16  ;;  %v3571_v52 = vshll.u32 %v3511_v51, 16  ;;  %v7086_v39 = vld [vmem:[#allocation9 + $0x634] ss:$8 sps:$4 sm:$0xff]   ;;  %v455_v21 = vsel %vm8230_vm7, 0, %v454_v56  ;;  %1687 = vmatprep.mubr.bf16.mxu1 %v813_v33  ;;  %v3591_v59 = vor.u32 %v3590_v53, %v3587_v38  ;;  %2262 = vmatprep.subr.bf16.mxu1 %v7083_v30 }
 0x170   : > { %v787_v2 = vor.u32 %v786_v4, %v783_v40  ;;  %456 = vst [vmem:[#allocation2 + $0x70] sm:$0x10] %v455_v21  ;;  %v8331_v49 = vrot.slane %v3594_v18, 4  ;;  %v8333_v12 = vrot.slane %v3597_v36, 5  ;;  %v7084_v7 = vld [vmem:[#allocation9 + $0x630] ss:$8 sps:$4 sm:$0xff]   ;;  %4670 = vmatpush1.bf16.msra.mxu0 %v7078_v29 }
 0x171   : > { %v3570_v6 = vrot.slane %v3568_v54, 4  ;;  %v3573_v50 = vrot.slane %v3571_v52, 5  ;;  %v723_v15 = vld [vmem:[#allocation2 + $0x48] sm:$0xf8]  ;;  %v3514_v10 = vld [vmem:[#allocation2 + $0x78] sm:$0x1f]  ;;  %v3592_v25 = vsel %vm1774_vm8, %v3583_v23, %v3591_v59  ;;  %4671 = vmatprep.subr.bf16.mxu0 %v7086_v39 }
 0x172   : > { %v796_v5 = vsel %vm434_vm4, %v787_v2, %v795_v35  ;;  %v832_v63 = vshrl.u32 %v723_v15, 16  ;;  %v835_v9 = vshll.u32 %v723_v15, 16  ;;  %v722_v57 = vld [vmem:[#allocation2 + $0x40] sm:$0xf8]  ;;  %4048 = vmatprep.mubr.bf16.mxu0 %v3592_v25  ;;  %v3619_v3 = vshrl.u32 %v3514_v10, 16  ;;  %2263 = vmatpush1.bf16.msra.mxu1 %v7081_v42 }
 0x173   : > { %v7087_v17 = vld [vmem:[#allocation9 + $0x240] ss:$8 sps:$4 sm:$0xff]   ;;  %1688 = vmatmul.mubr.bf16.gmra.mrb[4].mxu1 %v796_v5  ;;  %v3574_v44 = vor.u32 %v3573_v50, %v3570_v6  ;;  %v3622_v37 = vshll.u32 %v3514_v10, 16  ;;  %v815_v18 = vshrl.u32 %v722_v57, 16  ;;  %v7092_v11 = vld [vmem:[#allocation9 + $0x644] ss:$8 sps:$4 sm:$0xff]   ;;  %2264 = vmatprep.subr.bf16.mxu1 %v7089_v31  ;;  %v3600_v39 = vor.u32 %v8333_v12, %v8331_v49 }
 0x174   : > { %v834_v43 = vrot.slane %v832_v63, 3  ;;  %v837_v16 = vrot.slane %v835_v9, 4  ;;  %v818_v8 = vshll.u32 %v722_v57, 16  ;;  %v7095_v60 = vld [vmem:[#allocation9 + $0x254] ss:$8 sps:$4 sm:$0xff]   ;;  %v3621_v47 = vrot.slane %v3619_v3, 4  ;;  %4672 = vmatpush1.bf16.msra.mxu0 %v7084_v7 }
 0x175   : > { %v3575_v22 = vsel %vm1774_vm8, %v3566_v34, %v3574_v44  ;;  %v3624_v23 = vrot.slane %v3622_v37, 5  ;;  %v817_v24 = vrot.slane %v815_v18, 3  ;;  %v7090_v26 = vld [vmem:[#allocation9 + $0x640] ss:$8 sps:$4 sm:$0xff]   ;;  %v7093_v29 = vld [vmem:[#allocation9 + $0x250] ss:$8 sps:$4 sm:$0xff]   ;;  %4673 = vmatprep.subr.bf16.mxu0 %v7092_v11 }
 0x176   : > { %v394_v27 = vld [vmem:[#allocation2 + $0x68] sm:$0x8]  ;;  %4049 = vmatmul.mubr.bf16.gmra.mrb[4].mxu0 %v3575_v22  ;;  %v838_v28 = vor.u32 %v837_v16, %v834_v43  ;;  %v820_v41 = vrot.slane %v818_v8, 4  ;;  %v7303_v32 = vld [vmem:[#allocation2 + $0x78] sm:$0xf]  ;;  %2265 = vmatpush1.bf16.msra.mxu1 %v7087_v17  ;;  %v8371_v8 = vrot.slane %v1779_v20, 5 }
 0x177   : > { %v395_v30 = vsel %vm8224_vm6, 0, %v394_v27  ;;  %v874_v35 = vshrl.u32 %v7303_v32, 16  ;;  %v463_v51 = vld [vmem:[#allocation2 + $0x98] sm:$0x10]  ;;  %v3625_v13 = vor.u32 %v3624_v23, %v3621_v47  ;;  %v3513_v14 = vld [vmem:[#allocation2 + $0x70] sm:$0x1f]  ;;  %2266 = vmatprep.subr.bf16.mxu1 %v7095_v60 }
 0x178   : > { %396 = vst [vmem:[#allocation2 + $0x68] sm:$0x8] %v395_v30  ;;  %v877_v34 = vshll.u32 %v7303_v32, 16  ;;  %v464_v56 = vsel %vm8230_vm7, 0, %v463_v51  ;;  %v7304_v36 = vld [vmem:[#allocation2 + $0x88] sm:$0xf0]  ;;  %v847_v53 = vsel %vm434_vm4, %v838_v28, %v846_v58  ;;  %v821_v40 = vor.u32 %v820_v41, %v817_v24  ;;  %4674 = vmatpush1.bf16.msra.mxu0 %v7090_v26 }
 0x179   : > { %v3645_v38 = vshrl.u32 %v7304_v36, 16  ;;  %v3602_v4 = vshrl.u32 %v3513_v14, 16  ;;  %v3605_v42 = vshll.u32 %v3513_v14, 16  ;;  %v7098_v33 = vld [vmem:[#allocation9 + $0x654] ss:$8 sps:$4 sm:$0xff]   ;;  %1697 = vmatprep.mubr.bf16.mxu1 %v847_v53  ;;  %v3626_v52 = vsel %vm1774_vm8, %v3617_v61, %v3625_v13 }
 0x17a   : > { %465 = vst [vmem:[#allocation2 + $0x98] sm:$0x10] %v464_v56  ;;  %v391_v54 = vld [vmem:[#allocation2 + $0x60] sm:$0x8]  ;;  %v8352_v21 = vrot.slane %v874_v35, 3  ;;  %v8354_v59 = vrot.slane %v877_v34, 4  ;;  %4058 = vmatprep.mubr.bf16.mxu0 %v3626_v52  ;;  %v830_v31 = vsel %vm434_vm4, %v821_v40, %v829_v19  ;;  %4675 = vmatprep.subr.bf16.mxu0 %v7098_v33 }
 0x17b   : > { %v7101_v2 = vld [vmem:[#allocation9 + $0x264] ss:$8 sps:$4 sm:$0xff]   ;;  %v3604_v6 = vrot.slane %v3602_v4, 4  ;;  %v3607_v50 = vrot.slane %v3605_v42, 5  ;;  %v7096_v7 = vld [vmem:[#allocation9 + $0x650] ss:$8 sps:$4 sm:$0xff]   ;;  %1698 = vmatmul.mubr.bf16.gmra.mrb[8].mxu1 %v830_v31 }
 0x17c   : > { %v3648_v15 = vshll.u32 %v7304_v36, 16  ;;  %v460_v58 = vld [vmem:[#allocation2 + $0x90] sm:$0x10]  ;;  %v8357_v10 = vrot.slane %v3645_v38, 4  ;;  %v392_v49 = vsel %vm8224_vm6, 0, %v391_v54  ;;  %2267 = vmatpush1.bf16.msra.mxu1 %v7093_v29  ;;  %v880_v28 = vor.u32 %v8354_v59, %v8352_v21  ;;  %4676 = vmatpush1.bf16.msra.mxu0 %v7096_v7 }
 0x17d   : > { %v7305_v12 = vld [vmem:[#allocation2 + $0x70] sm:$0xf]  ;;  %v3608_v5 = vor.u32 %v3607_v50, %v3604_v6  ;;  %393 = vst [vmem:[#allocation2 + $0x60] sm:$0x8] %v392_v49  ;;  %v7099_v9 = vld [vmem:[#allocation9 + $0x260] ss:$8 sps:$4 sm:$0xff]   ;;  %2268 = vmatprep.subr.bf16.mxu1 %v7101_v2 }
 0x17e   : > { %v857_v61 = vshrl.u32 %v7305_v12, 16  ;;  %v860_v25 = vshll.u32 %v7305_v12, 16  ;;  %v8361_v63 = vrot.slane %v3648_v15, 5  ;;  %v461_v57 = vsel %vm8230_vm7, 0, %v460_v58  ;;  %v7306_v17 = vld [vmem:[#allocation2 + $0x80] sm:$0xf0] }
 0x17f   : > { %v3628_v44 = vshrl.u32 %v7306_v17, 16  ;;  %462 = vst [vmem:[#allocation2 + $0x90] sm:$0x10] %v461_v57  ;;  %v3631_v18 = vshll.u32 %v7306_v17, 16  ;;  %v7104_v11 = vld [vmem:[#allocation9 + $0x664] ss:$8 sps:$4 sm:$0xff]   ;;  %v3609_v19 = vsel %vm1774_vm8, %v3600_v39, %v3608_v5 }
 0x180   : > { %v8365_v3 = vrot.slane %v857_v61, 3  ;;  %v8367_v37 = vrot.slane %v860_v25, 4  ;;  %v7307_v43 = vld [vmem:[#allocation2 + $0x98] sm:$0xf]  ;;  %v727_v60 = vld [vmem:[#allocation2 + $0x68] sm:$0xf8]  ;;  %4059 = vmatmul.mubr.bf16.gmra.mrb[8].mxu0 %v3609_v19  ;;  %v3651_v29 = vor.u32 %v8361_v63, %v8357_v10  ;;  %2269 = vmatpush1.bf16.msra.mxu1 %v7099_v9 }
 0x181   : > { %v908_v16 = vshrl.u32 %v7307_v43, 16  ;;  %v7102_v22 = vld [vmem:[#allocation9 + $0x660] ss:$8 sps:$4 sm:$0xff]   ;;  %v7105_v47 = vld [vmem:[#allocation9 + $0x270] ss:$8 sps:$4 sm:$0xff]   ;;  %v911_v24 = vshll.u32 %v7307_v43, 16  ;;  %4677 = vmatprep.subr.bf16.mxu0 %v7104_v11 }
 0x182   : > { %v7107_v23 = vld [vmem:[#allocation9 + $0x274] ss:$8 sps:$4 sm:$0xff]   ;;  %v866_v26 = vshrl.u32 %v727_v60, 16  ;;  %v869_v27 = vshll.u32 %v727_v60, 16  ;;  %v8378_v30 = vrot.slane %v3628_v44, 4  ;;  %v8380_v32 = vrot.slane %v3631_v18, 5  ;;  %4678 = vmatpush1.bf16.msra.mxu0 %v7102_v22 }
 0x183   : > { %v3516_v41 = vld [vmem:[#allocation2 + $0x98] sm:$0x1f]  ;;  %v863_v14 = vor.u32 %v8367_v37, %v8365_v3  ;;  %2270 = vmatprep.subr.bf16.mxu1 %v7107_v23  ;;  %v400_v34 = vld [vmem:[#allocation2 + $0x88] sm:$0x8]  ;;  %v8384_v56 = vrot.slane %v908_v16, 3  ;;  %v8388_v4 = vrot.slane %v911_v24, 4 }
 0x184   : > { %v3653_v48 = vshrl.u32 %v3516_v41, 16  ;;  %v3656_v20 = vshll.u32 %v3516_v41, 16  ;;  %v7110_v35 = vld [vmem:[#allocation9 + $0x674] ss:$8 sps:$4 sm:$0xff]   ;;  %v868_v51 = vrot.slane %v866_v26, 3  ;;  %v871_v13 = vrot.slane %v869_v27, 4  ;;  %2271 = vmatpush1.bf16.msra.mxu1 %v7105_v47 }
 0x185   : > { %v7108_v53 = vld [vmem:[#allocation9 + $0x670] ss:$8 sps:$4 sm:$0xff]   ;;  %v401_v40 = vsel %vm8224_vm6, 0, %v400_v34  ;;  %v469_v42 = vld [vmem:[#allocation2 + $0xb8] sm:$0x10]  ;;  %v3634_v7 = vor.u32 %v8380_v32, %v8378_v30  ;;  %4679 = vmatprep.subr.bf16.mxu0 %v7110_v35 }
 0x186   : > { %v3655_v36 = vrot.slane %v3653_v48, 4  ;;  %v3658_v38 = vrot.slane %v3656_v20, 5  ;;  %v872_v33 = vor.u32 %v871_v13, %v868_v51  ;;  %v726_v54 = vld [vmem:[#allocation2 + $0x60] sm:$0xf8]  ;;  %402 = vst [vmem:[#allocation2 + $0x88] sm:$0x8] %v401_v40  ;;  %4680 = vmatpush1.bf16.msra.mxu0 %v7108_v53 }
 0x187   : > { %v470_v52 = vsel %vm8230_vm7, 0, %v469_v42  ;;  %v7308_v39 = vld [vmem:[#allocation2 + $0xa8] sm:$0xf0]  ;;  %v849_v31 = vshrl.u32 %v726_v54, 16  ;;  %v852_v6 = vshll.u32 %v726_v54, 16 }
 0x188   : > { %v3679_v21 = vshrl.u32 %v7308_v39, 16  ;;  %v3682_v59 = vshll.u32 %v7308_v39, 16  ;;  %v3659_v2 = vor.u32 %v3658_v38, %v3655_v36  ;;  %v3515_v50 = vld [vmem:[#allocation2 + $0x90] sm:$0x1f]  ;;  %471 = vst [vmem:[#allocation2 + $0xb8] sm:$0x10] %v470_v52  ;;  %v881_v58 = vsel %vm434_vm4, %v872_v33, %v880_v28 }
 0x189   : > { %v397_v15 = vld [vmem:[#allocation2 + $0x80] sm:$0x8]  ;;  %v3636_v10 = vshrl.u32 %v3515_v50, 16  ;;  %v3639_v49 = vshll.u32 %v3515_v50, 16  ;;  %1707 = vmatprep.mubr.bf16.mxu1 %v881_v58  ;;  %v851_v5 = vrot.slane %v849_v31, 3  ;;  %v854_v63 = vrot.slane %v852_v6, 4 }
 0x18a   : > { %v8395_v12 = vrot.slane %v3679_v21, 4  ;;  %v7111_v61 = vld [vmem:[#allocation9 + $0x280] ss:$8 sps:$4 sm:$0xff]   ;;  %v3660_v25 = vsel %vm1774_vm8, %v3651_v29, %v3659_v2  ;;  %v8398_v9 = vrot.slane %v3682_v59, 5  ;;  %v7113_v57 = vld [vmem:[#allocation9 + $0x284] ss:$8 sps:$4 sm:$0xff]   ;;  %v914_v38 = vor.u32 %v8388_v4, %v8384_v56 }
 0x18b   : > { %4068 = vmatprep.mubr.bf16.mxu0 %v3660_v25  ;;  %v3638_v17 = vrot.slane %v3636_v10, 4  ;;  %v3641_v44 = vrot.slane %v3639_v49, 5  ;;  %v398_v18 = vsel %vm8224_vm6, 0, %v397_v15  ;;  %v7309_v11 = vld [vmem:[#allocation2 + $0x90] sm:$0xf]  ;;  %v855_v19 = vor.u32 %v854_v63, %v851_v5  ;;  %2272 = vmatprep.subr.bf16.mxu1 %v7113_v57 }
 0x18c   : > { %v891_v43 = vshrl.u32 %v7309_v11, 16  ;;  %v466_v16 = vld [vmem:[#allocation2 + $0xb0] sm:$0x10]  ;;  %399 = vst [vmem:[#allocation2 + $0x80] sm:$0x8] %v398_v18  ;;  %v894_v60 = vshll.u32 %v7309_v11, 16  ;;  %2273 = vmatpush1.bf16.msra.mxu1 %v7111_v61  ;;  %v3685_v33 = vor.u32 %v8398_v9, %v8395_v12 }
 0x18d   : > { %v467_v22 = vsel %vm8230_vm7, 0, %v466_v16  ;;  %v7114_v47 = vld [vmem:[#allocation9 + $0x680] ss:$8 sps:$4 sm:$0xff]   ;;  %v7116_v23 = vld [vmem:[#allocation9 + $0x684] ss:$8 sps:$4 sm:$0xff]   ;;  %v3642_v24 = vor.u32 %v3641_v44, %v3638_v17  ;;  %v864_v48 = vsel %vm434_vm4, %v855_v19, %v863_v14 }
 0x18e   : > { %v8404_v26 = vrot.slane %v891_v43, 3  ;;  %468 = vst [vmem:[#allocation2 + $0xb0] sm:$0x10] %v467_v22  ;;  %v7310_v27 = vld [vmem:[#allocation2 + $0xa0] sm:$0xf0]  ;;  %v8410_v30 = vrot.slane %v894_v60, 4  ;;  %4681 = vmatprep.subr.bf16.mxu0 %v7116_v23  ;;  %1708 = vmatmul.mubr.bf16.gmra.mrb[12].mxu1 %v864_v48 }
 0x18f   : > { %v3662_v28 = vshrl.u32 %v7310_v27, 16  ;;  %v3665_v41 = vshll.u32 %v7310_v27, 16  ;;  %v7117_v29 = vld [vmem:[#allocation9 + $0x290] ss:$8 sps:$4 sm:$0xff]   ;;  %v731_v20 = vld [vmem:[#allocation2 + $0x88] sm:$0xf8]  ;;  %v3643_v35 = vsel %vm1774_vm8, %v3634_v7, %v3642_v24  ;;  %4682 = vmatpush1.bf16.msra.mxu0 %v7114_v47 }
 0x190   : > { %v7119_v32 = vld [vmem:[#allocation9 + $0x294] ss:$8 sps:$4 sm:$0xff]   ;;  %v900_v51 = vshrl.u32 %v731_v20, 16  ;;  %v903_v13 = vshll.u32 %v731_v20, 16  ;;  %4069 = vmatmul.mubr.bf16.gmra.mrb[12].mxu0 %v3643_v35  ;;  %v7120_v53 = vld [vmem:[#allocation9 + $0x690] ss:$8 sps:$4 sm:$0xff]   ;;  %v897_v54 = vor.u32 %v8410_v30, %v8404_v26 }
 0x191   : > { %v3518_v34 = vld [vmem:[#allocation2 + $0xb8] sm:$0x1f]  ;;  %v8413_v36 = vrot.slane %v3662_v28, 4  ;;  %v8417_v14 = vrot.slane %v3665_v41, 5  ;;  %2274 = vmatprep.subr.bf16.mxu1 %v7119_v32  ;;  %v406_v39 = vld [vmem:[#allocation2 + $0xa8] sm:$0x8] }
 0x192   : > { %v3687_v3 = vshrl.u32 %v3518_v34, 16  ;;  %v3690_v37 = vshll.u32 %v3518_v34, 16  ;;  %v902_v40 = vrot.slane %v900_v51, 3  ;;  %v905_v42 = vrot.slane %v903_v13, 4  ;;  %v7122_v52 = vld [vmem:[#allocation9 + $0x694] ss:$8 sps:$4 sm:$0xff]   ;;  %2275 = vmatpush1.bf16.msra.mxu1 %v7117_v29 }
 0x193   : > { %v3668_v4 = vor.u32 %v8417_v14, %v8413_v36  ;;  %v407_v59 = vsel %vm8224_vm6, 0, %v406_v39  ;;  %v475_v2 = vld [vmem:[#allocation2 + $0xd8] sm:$0x10]  ;;  %v730_v6 = vld [vmem:[#allocation2 + $0x80] sm:$0xf8]  ;;  %4683 = vmatprep.subr.bf16.mxu0 %v7122_v52 }
 0x194   : > { %v3689_v21 = vrot.slane %v3687_v3, 4  ;;  %v3692_v56 = vrot.slane %v3690_v37, 5  ;;  %v906_v31 = vor.u32 %v905_v42, %v902_v40  ;;  %408 = vst [vmem:[#allocation2 + $0xa8] sm:$0x8] %v407_v59  ;;  %v7311_v50 = vld [vmem:[#allocation2 + $0xb8] sm:$0xf]  ;;  %4684 = vmatpush1.bf16.msra.mxu0 %v7120_v53 }
 0x195   : > { %v942_v7 = vshrl.u32 %v7311_v50, 16  ;;  %v945_v15 = vshll.u32 %v7311_v50, 16  ;;  %v476_v58 = vsel %vm8230_vm7, 0, %v475_v2  ;;  %v883_v49 = vshrl.u32 %v730_v6, 16  ;;  %v3517_v61 = vld [vmem:[#allocation2 + $0xb0] sm:$0x1f] }
 0x196   : > { %v3693_v10 = vor.u32 %v3692_v56, %v3689_v21  ;;  %v886_v12 = vshll.u32 %v730_v6, 16  ;;  %477 = vst [vmem:[#allocation2 + $0xd8] sm:$0x10] %v476_v58  ;;  %v7312_v25 = vld [vmem:[#allocation2 + $0xc8] sm:$0xf0]  ;;  %v915_v63 = vsel %vm434_vm4, %v906_v31, %v914_v38  ;;  %v3670_v9 = vshrl.u32 %v3517_v61, 16 }
 0x197   : > { %v3713_v5 = vshrl.u32 %v7312_v25, 16  ;;  %v3673_v57 = vshll.u32 %v3517_v61, 16  ;;  %v8430_v17 = vrot.slane %v942_v7, 3  ;;  %v403_v44 = vld [vmem:[#allocation2 + $0xa0] sm:$0x8]  ;;  %1717 = vmatprep.mubr.bf16.mxu1 %v915_v63  ;;  %v885_v11 = vrot.slane %v883_v49, 3 }
 0x198   : > { %v3694_v18 = vsel %vm1774_vm8, %v3685_v33, %v3693_v10  ;;  %v888_v43 = vrot.slane %v886_v12, 4  ;;  %v8433_v16 = vrot.slane %v945_v15, 4  ;;  %v7123_v19 = vld [vmem:[#allocation9 + $0x2a0] ss:$8 sps:$4 sm:$0xff]   ;;  %v3672_v60 = vrot.slane %v3670_v9, 4 }
 0x199   : > { %4078 = vmatprep.mubr.bf16.mxu0 %v3694_v18  ;;  %v3675_v22 = vrot.slane %v3673_v57, 5  ;;  %v8435_v47 = vrot.slane %v3713_v5, 4  ;;  %v3716_v23 = vshll.u32 %v7312_v25, 16  ;;  %v7125_v24 = vld [vmem:[#allocation9 + $0x2a4] ss:$8 sps:$4 sm:$0xff]   ;;  %v404_v27 = vsel %vm8224_vm6, 0, %v403_v44 }
 0x19a   : > { %v889_v26 = vor.u32 %v888_v43, %v885_v11  ;;  %v7313_v28 = vld [vmem:[#allocation2 + $0xb0] sm:$0xf]  ;;  %v472_v29 = vld [vmem:[#allocation2 + $0xd0] sm:$0x10]  ;;  %v7126_v48 = vld [vmem:[#allocation9 + $0x6a0] ss:$8 sps:$4 sm:$0xff]   ;;  %2276 = vmatprep.subr.bf16.mxu1 %v7125_v24  ;;  %v948_v42 = vor.u32 %v8433_v16, %v8430_v17 }
 0x19b   : > { %v925_v41 = vshrl.u32 %v7313_v28, 16  ;;  %v3676_v20 = vor.u32 %v3675_v22, %v3672_v60  ;;  %v8439_v30 = vrot.slane %v3716_v23, 5  ;;  %405 = vst [vmem:[#allocation2 + $0xa0] sm:$0x8] %v404_v27  ;;  %v928_v32 = vshll.u32 %v7313_v28, 16  ;;  %2277 = vmatpush1.bf16.msra.mxu1 %v7123_v19 }
 0x19c   : > { %v473_v35 = vsel %vm8230_vm7, 0, %v472_v29  ;;  %v7128_v51 = vld [vmem:[#allocation9 + $0x6a4] ss:$8 sps:$4 sm:$0xff]   ;;  %v898_v13 = vsel %vm434_vm4, %v889_v26, %v897_v54  ;;  %v7129_v52 = vld [vmem:[#allocation9 + $0x2b0] ss:$8 sps:$4 sm:$0xff]  }
 0x19d   : > { %v735_v34 = vld [vmem:[#allocation2 + $0xa8] sm:$0xf8]  ;;  %v8444_v36 = vrot.slane %v925_v41, 3  ;;  %474 = vst [vmem:[#allocation2 + $0xd0] sm:$0x10] %v473_v35  ;;  %1718 = vmatmul.mubr.bf16.gmra.mrb[16].mxu1 %v898_v13  ;;  %v3677_v14 = vsel %vm1774_vm8, %v3668_v4, %v3676_v20  ;;  %4685 = vmatprep.subr.bf16.mxu0 %v7128_v51  ;;  %v8449_v21 = vrot.slane %v928_v32, 4  ;;  %v3719_v15 = vor.u32 %v8439_v30, %v8435_v47 }
 0x19e   : > { %v7314_v38 = vld [vmem:[#allocation2 + $0xc0] sm:$0xf0]  ;;  %v934_v53 = vshrl.u32 %v735_v34, 16  ;;  %v937_v40 = vshll.u32 %v735_v34, 16  ;;  %v3520_v33 = vld [vmem:[#allocation2 + $0xd8] sm:$0x1f]  ;;  %4079 = vmatmul.mubr.bf16.gmra.mrb[16].mxu0 %v3677_v14 }
 0x19f   : > { %v3696_v3 = vshrl.u32 %v7314_v38, 16  ;;  %v3699_v37 = vshll.u32 %v7314_v38, 16  ;;  %v3721_v54 = vshrl.u32 %v3520_v33, 16  ;;  %v3724_v39 = vshll.u32 %v3520_v33, 16  ;;  %v7131_v59 = vld [vmem:[#allocation9 + $0x2b4] ss:$8 sps:$4 sm:$0xff]   ;;  %4686 = vmatpush1.bf16.msra.mxu0 %v7126_v48 }
 0x1a0   : > { %v936_v2 = vrot.slane %v934_v53, 3  ;;  %v939_v31 = vrot.slane %v937_v40, 4  ;;  %v7132_v4 = vld [vmem:[#allocation9 + $0x6b0] ss:$8 sps:$4 sm:$0xff]   ;;  %2278 = vmatprep.subr.bf16.mxu1 %v7131_v59  ;;  %v7134_v49 = vld [vmem:[#allocation9 + $0x6b4] ss:$8 sps:$4 sm:$0xff]   ;;  %v931_v25 = vor.u32 %v8449_v21, %v8444_v36 }
 0x1a1   : > { %v8451_v56 = vrot.slane %v3696_v3, 4  ;;  %v8453_v6 = vrot.slane %v3699_v37, 5  ;;  %v7315_v50 = vld [vmem:[#allocation2 + $0xd8] sm:$0xf]  ;;  %v3723_v58 = vrot.slane %v3721_v54, 4  ;;  %v3726_v10 = vrot.slane %v3724_v39, 5  ;;  %2279 = vmatpush1.bf16.msra.mxu1 %v7129_v52  ;;  %4687 = vmatprep.subr.bf16.mxu0 %v7134_v49 }
 0x1a2   : > { %v976_v7 = vshrl.u32 %v7315_v50, 16  ;;  %v412_v12 = vld [vmem:[#allocation2 + $0xc8] sm:$0x8]  ;;  %v940_v61 = vor.u32 %v939_v31, %v936_v2  ;;  %v481_v9 = vld [vmem:[#allocation2 + $0xf8] sm:$0x10]  ;;  %v979_v18 = vshll.u32 %v7315_v50, 16 }
 0x1a3   : > { %v413_v5 = vsel %vm8224_vm6, 0, %v412_v12  ;;  %v409_v57 = vld [vmem:[#allocation2 + $0xc0] sm:$0x8]  ;;  %v3727_v17 = vor.u32 %v3726_v10, %v3723_v58  ;;  %v482_v11 = vsel %vm8230_vm7, 0, %v481_v9  ;;  %v7316_v43 = vld [vmem:[#allocation2 + $0xe8] sm:$0xf0]  ;;  %4688 = vmatpush1.bf16.msra.mxu0 %v7132_v4  ;;  %v3702_v35 = vor.u32 %v8453_v6, %v8451_v56 }
 0x1a4   : > { %v8461_v63 = vrot.slane %v976_v7, 3  ;;  %v734_v44 = vld [vmem:[#allocation2 + $0xa0] sm:$0xf8]  ;;  %414 = vst [vmem:[#allocation2 + $0xc8] sm:$0x8] %v413_v5  ;;  %v3747_v16 = vshrl.u32 %v7316_v43, 16  ;;  %v949_v19 = vsel %vm434_vm4, %v940_v61, %v948_v42 }
 0x1a5   : > { %v917_v60 = vshrl.u32 %v734_v44, 16  ;;  %v920_v22 = vshll.u32 %v734_v44, 16  ;;  %v3519_v47 = vld [vmem:[#allocation2 + $0xd0] sm:$0x1f]  ;;  %483 = vst [vmem:[#allocation2 + $0xf8] sm:$0x10] %v482_v11  ;;  %1727 = vmatprep.mubr.bf16.mxu1 %v949_v19  ;;  %v3728_v24 = vsel %vm1774_vm8, %v3719_v15, %v3727_v17 }
 0x1a6   : > { %v3750_v23 = vshll.u32 %v7316_v43, 16  ;;  %v3704_v26 = vshrl.u32 %v3519_v47, 16  ;;  %v3707_v27 = vshll.u32 %v3519_v47, 16  ;;  %v8467_v28 = vrot.slane %v979_v18, 4  ;;  %v7135_v41 = vld [vmem:[#allocation9 + $0x2c0] ss:$8 sps:$4 sm:$0xff]   ;;  %4088 = vmatprep.mubr.bf16.mxu0 %v3728_v24 }
 0x1a7   : > { %v919_v29 = vrot.slane %v917_v60, 3  ;;  %v922_v48 = vrot.slane %v920_v22, 4  ;;  %v8469_v20 = vrot.slane %v3747_v16, 4  ;;  %v7137_v32 = vld [vmem:[#allocation9 + $0x2c4] ss:$8 sps:$4 sm:$0xff]   ;;  %v410_v34 = vsel %vm8224_vm6, 0, %v409_v57 }
 0x1a8   : > { %v8471_v30 = vrot.slane %v3750_v23, 5  ;;  %v3706_v51 = vrot.slane %v3704_v26, 4  ;;  %v3709_v13 = vrot.slane %v3707_v27, 5  ;;  %v478_v36 = vld [vmem:[#allocation2 + $0xf0] sm:$0x10]  ;;  %2280 = vmatprep.subr.bf16.mxu1 %v7137_v32  ;;  %v982_v5 = vor.u32 %v8467_v28, %v8461_v63 }
 0x1a9   : > { %v923_v38 = vor.u32 %v922_v48, %v919_v29  ;;  %411 = vst [vmem:[#allocation2 + $0xc0] sm:$0x8] %v410_v34  ;;  %v7317_v3 = vld [vmem:[#allocation2 + $0xd0] sm:$0xf]  ;;  %v7138_v53 = vld [vmem:[#allocation9 + $0x6c0] ss:$8 sps:$4 sm:$0xff]   ;;  %2281 = vmatpush1.bf16.msra.mxu1 %v7135_v41 }
 0x1aa   : > { %v959_v37 = vshrl.u32 %v7317_v3, 16  ;;  %v962_v14 = vshll.u32 %v7317_v3, 16  ;;  %v7140_v40 = vld [vmem:[#allocation9 + $0x6c4] ss:$8 sps:$4 sm:$0xff]   ;;  %v3710_v42 = vor.u32 %v3709_v13, %v3706_v51  ;;  %v479_v33 = vsel %vm8230_vm7, 0, %v478_v36 }
 0x1ab   : > { %v7318_v52 = vld [vmem:[#allocation2 + $0xe0] sm:$0xf0]  ;;  %v932_v21 = vsel %vm434_vm4, %v923_v38, %v931_v25  ;;  %v739_v56 = vld [vmem:[#allocation2 + $0xc8] sm:$0xf8]  ;;  %480 = vst [vmem:[#allocation2 + $0xf0] sm:$0x10] %v479_v33  ;;  %4689 = vmatprep.subr.bf16.mxu0 %v7140_v40  ;;  %v3753_v17 = vor.u32 %v8471_v30, %v8469_v20 }
 0x1ac   : > { %v3730_v54 = vshrl.u32 %v7318_v52, 16  ;;  %v3733_v39 = vshll.u32 %v7318_v52, 16  ;;  %v8480_v59 = vrot.slane %v959_v37, 3  ;;  %v8482_v2 = vrot.slane %v962_v14, 4  ;;  %v7141_v31 = vld [vmem:[#allocation9 + $0x2d0] ss:$8 sps:$4 sm:$0xff]   ;;  %1728 = vmatmul.mubr.bf16.gmra.mrb[20].mxu1 %v932_v21  ;;  %4690 = vmatpush1.bf16.msra.mxu0 %v7138_v53 }
 0x1ad   : > { %v3711_v6 = vsel %vm1774_vm8, %v3702_v35, %v3710_v42  ;;  %v968_v4 = vshrl.u32 %v739_v56, 16  ;;  %v971_v50 = vshll.u32 %v739_v56, 16  ;;  %v3522_v7 = vld [vmem:[#allocation2 + $0xf8] sm:$0x1f]  ;;  %v418_v11 = vld [vmem:[#allocation2 + $0xe8] sm:$0x8] }
 0x1ae   : > { %v8485_v15 = vrot.slane %v3730_v54, 4  ;;  %4089 = vmatmul.mubr.bf16.gmra.mrb[20].mxu0 %v3711_v6  ;;  %v3755_v58 = vshrl.u32 %v3522_v7, 16  ;;  %v3758_v10 = vshll.u32 %v3522_v7, 16  ;;  %v8487_v49 = vrot.slane %v3733_v39, 5  ;;  %v7143_v12 = vld [vmem:[#allocation9 + $0x2d4] ss:$8 sps:$4 sm:$0xff]  }
 0x1af   : > { %v970_v61 = vrot.slane %v968_v4, 3  ;;  %v973_v25 = vrot.slane %v971_v50, 4  ;;  %v7144_v9 = vld [vmem:[#allocation9 + $0x6d0] ss:$8 sps:$4 sm:$0xff]   ;;  %v7146_v57 = vld [vmem:[#allocation9 + $0x6d4] ss:$8 sps:$4 sm:$0xff]   ;;  %2282 = vmatprep.subr.bf16.mxu1 %v7143_v12  ;;  %v965_v22 = vor.u32 %v8482_v2, %v8480_v59 }
 0x1b0   : > { %v3757_v44 = vrot.slane %v3755_v58, 4  ;;  %v3760_v18 = vrot.slane %v3758_v10, 5  ;;  %v7319_v43 = vld [vmem:[#allocation2 + $0xf8] sm:$0xf]  ;;  %v738_v60 = vld [vmem:[#allocation2 + $0xc0] sm:$0xf8]  ;;  %4691 = vmatprep.subr.bf16.mxu0 %v7146_v57  ;;  %2283 = vmatpush1.bf16.msra.mxu1 %v7141_v31  ;;  %v3736_v3 = vor.u32 %v8487_v49, %v8485_v15 }
 0x1b1   : > { %v1010_v16 = vshrl.u32 %v7319_v43, 16  ;;  %v974_v19 = vor.u32 %v973_v25, %v970_v61  ;;  %v419_v63 = vsel %vm8224_vm6, 0, %v418_v11  ;;  %v1013_v47 = vshll.u32 %v7319_v43, 16  ;;  %v487_v23 = vld [vmem:[#allocation2 + $0x118] sm:$0x10]  ;;  %4692 = vmatpush1.bf16.msra.mxu0 %v7144_v9 }
 0x1b2   : > { %v3761_v24 = vor.u32 %v3760_v18, %v3757_v44  ;;  %v951_v26 = vshrl.u32 %v738_v60, 16  ;;  %v954_v27 = vshll.u32 %v738_v60, 16  ;;  %420 = vst [vmem:[#allocation2 + $0xe8] sm:$0x8] %v419_v63  ;;  %v415_v41 = vld [vmem:[#allocation2 + $0xe0] sm:$0x8] }
 0x1b3   : > { %v8497_v28 = vrot.slane %v1010_v16, 3  ;;  %v983_v29 = vsel %vm434_vm4, %v974_v19, %v982_v5  ;;  %v3521_v48 = vld [vmem:[#allocation2 + $0xf0] sm:$0x1f]  ;;  %v8500_v20 = vrot.slane %v1013_v47, 4  ;;  %v488_v30 = vsel %vm8230_vm7, 0, %v487_v23 }
 0x1b4   : > { %v7320_v32 = vld [vmem:[#allocation2 + $0x108] sm:$0xf0]  ;;  %1737 = vmatprep.mubr.bf16.mxu1 %v983_v29  ;;  %v3762_v51 = vsel %vm1774_vm8, %v3753_v17, %v3761_v24  ;;  %v953_v13 = vrot.slane %v951_v26, 3  ;;  %v956_v34 = vrot.slane %v954_v27, 4  ;;  %v3738_v36 = vshrl.u32 %v3521_v48, 16 }
 0x1b5   : > { %v3781_v35 = vshrl.u32 %v7320_v32, 16  ;;  %489 = vst [vmem:[#allocation2 + $0x118] sm:$0x10] %v488_v30  ;;  %v7147_v38 = vld [vmem:[#allocation9 + $0x2e0] ss:$8 sps:$4 sm:$0xff]   ;;  %4098 = vmatprep.mubr.bf16.mxu0 %v3762_v51  ;;  %v3741_v37 = vshll.u32 %v3521_v48, 16  ;;  %v1016_v16 = vor.u32 %v8500_v20, %v8497_v28 }
 0x1b6   : > { %v3784_v53 = vshll.u32 %v7320_v32, 16  ;;  %v7149_v40 = vld [vmem:[#allocation9 + $0x2e4] ss:$8 sps:$4 sm:$0xff]   ;;  %v957_v42 = vor.u32 %v956_v34, %v953_v13  ;;  %v3740_v33 = vrot.slane %v3738_v36, 4  ;;  %v416_v52 = vsel %vm8224_vm6, 0, %v415_v41 }
 0x1b7   : > { %v8507_v14 = vrot.slane %v3781_v35, 4  ;;  %v7321_v54 = vld [vmem:[#allocation2 + $0xf0] sm:$0xf]  ;;  %v484_v21 = vld [vmem:[#allocation2 + $0x110] sm:$0x10]  ;;  %v3743_v56 = vrot.slane %v3741_v37, 5  ;;  %2284 = vmatprep.subr.bf16.mxu1 %v7149_v40 }
 0x1b8   : > { %v993_v39 = vshrl.u32 %v7321_v54, 16  ;;  %v8511_v59 = vrot.slane %v3784_v53, 5  ;;  %417 = vst [vmem:[#allocation2 + $0xe0] sm:$0x8] %v416_v52  ;;  %v996_v2 = vshll.u32 %v7321_v54, 16  ;;  %v485_v31 = vsel %vm8230_vm7, 0, %v484_v21  ;;  %2285 = vmatpush1.bf16.msra.mxu1 %v7147_v38 }
 0x1b9   : > { %v7150_v6 = vld [vmem:[#allocation9 + $0x6e0] ss:$8 sps:$4 sm:$0xff]   ;;  %v966_v4 = vsel %vm434_vm4, %v957_v42, %v965_v22  ;;  %486 = vst [vmem:[#allocation2 + $0x110] sm:$0x10] %v485_v31  ;;  %v7322_v7 = vld [vmem:[#allocation2 + $0x100] sm:$0xf0]  ;;  %v3744_v49 = vor.u32 %v3743_v56, %v3740_v33 }
 0x1ba   : > { %v8516_v50 = vrot.slane %v993_v39, 3  ;;  %v3764_v15 = vshrl.u32 %v7322_v7, 16  ;;  %v3767_v58 = vshll.u32 %v7322_v7, 16  ;;  %v7152_v10 = vld [vmem:[#allocation9 + $0x6e4] ss:$8 sps:$4 sm:$0xff]   ;;  %1738 = vmatmul.mubr.bf16.gmra.mrb[24].mxu1 %v966_v4  ;;  %v8518_v61 = vrot.slane %v996_v2, 4 }
 0x1bb   : > { %v743_v12 = vld [vmem:[#allocation2 + $0xe8] sm:$0xf8]  ;;  %v7153_v25 = vld [vmem:[#allocation9 + $0x2f0] ss:$8 sps:$4 sm:$0xff]   ;;  %4693 = vmatprep.subr.bf16.mxu0 %v7152_v10  ;;  %v7155_v11 = vld [vmem:[#allocation9 + $0x2f4] ss:$8 sps:$4 sm:$0xff]   ;;  %v3745_v43 = vsel %vm1774_vm8, %v3736_v3, %v3744_v49  ;;  %v3787_v60 = vor.u32 %v8511_v59, %v8507_v14 }
 0x1bc   : > { %v7323_v5 = vld [vmem:[#allocation2 + $0x8] sm:$0xf0]  ;;  %v1002_v57 = vshrl.u32 %v743_v12, 16  ;;  %v1005_v17 = vshll.u32 %v743_v12, 16  ;;  %v8520_v44 = vrot.slane %v3764_v15, 4  ;;  %v8522_v18 = vrot.slane %v3767_v58, 5  ;;  %4694 = vmatpush1.bf16.msra.mxu0 %v7150_v6  ;;  %2286 = vmatprep.subr.bf16.mxu1 %v7155_v11 }
 0x1bd   : > { %v1793_v9 = vshrl.u32 %v7323_v5, 16  ;;  %v3524_v19 = vld [vmem:[#allocation2 + $0x118] sm:$0x1f]  ;;  %4099 = vmatmul.mubr.bf16.gmra.mrb[24].mxu0 %v3745_v43  ;;  %v999_v41 = vor.u32 %v8518_v61, %v8516_v50  ;;  %2287 = vmatpush1.bf16.msra.mxu1 %v7153_v25  ;;  %v1796_v48 = vshll.u32 %v7323_v5, 16  ;;  %v4153_v20 = vld [vmem:[#allocation2 + $0x48] sm:$0xf8] }
 0x1be   : > { %v7156_v22 = vld [vmem:[#allocation9 + $0x6f0] ss:$8 sps:$4 sm:$0xff]   ;;  %v7158_v63 = vld [vmem:[#allocation9 + $0x6f4] ss:$8 sps:$4 sm:$0xff]   ;;  %v1004_v47 = vrot.slane %v1002_v57, 3  ;;  %v1007_v23 = vrot.slane %v1005_v17, 4  ;;  %v3770_v13 = vor.u32 %v8522_v18, %v8520_v44 }
 0x1bf   : > { %v3789_v24 = vshrl.u32 %v3524_v19, 16  ;;  %v3792_v26 = vshll.u32 %v3524_v19, 16  ;;  %v439_v27 = vld [vmem:[#allocation2 + $0x18] sm:$0x10]  ;;  %4695 = vmatprep.subr.bf16.mxu0 %v7158_v63  ;;  %v8533_v29 = vrot.slane %v1793_v9, 4  ;;  %v8537_v37 = vrot.slane %v1796_v48, 5 }
 0x1c0   : > { %v440_v28 = vsel %vm8230_vm7, 0, %v439_v27  ;;  %v1008_v30 = vor.u32 %v1007_v23, %v1004_v47  ;;  %v742_v51 = vld [vmem:[#allocation2 + $0xe0] sm:$0xf8]  ;;  %v4155_v34 = vld [vmem:[#allocation2 + $0x58] sm:$0xf]  ;;  %4696 = vmatpush1.bf16.msra.mxu0 %v7156_v22  ;;  %v4202_v14 = vshrl.u32 %v4153_v20, 16 }
 0x1c1   : > { %v3791_v32 = vrot.slane %v3789_v24, 4  ;;  %v3794_v35 = vrot.slane %v3792_v26, 5  ;;  %441 = vst [vmem:[#allocation2 + $0x18] sm:$0x10] %v440_v28  ;;  %v985_v36 = vshrl.u32 %v742_v51, 16  ;;  %v988_v38 = vshll.u32 %v742_v51, 16 }
 0x1c2   : > { %v3523_v3 = vld [vmem:[#allocation2 + $0x110] sm:$0x1f]  ;;  %v1017_v53 = vsel %vm434_vm4, %v1008_v30, %v1016_v16  ;;  %v1799_v21 = vor.u32 %v8537_v37, %v8533_v29  ;;  %v4204_v56 = vrot.slane %v4202_v14, 3  ;;  %v4205_v6 = vshll.u32 %v4153_v20, 16  ;;  %v7161_v4 = vld [vmem:[#allocation9 + $0x304] ss:$8 sps:$4 sm:$0xff]  }
 0x1c3   : > { %v3795_v40 = vor.u32 %v3794_v35, %v3791_v32  ;;  %v3772_v42 = vshrl.u32 %v3523_v3, 16  ;;  %v3775_v33 = vshll.u32 %v3523_v3, 16  ;;  %v436_v52 = vld [vmem:[#allocation2 + $0x10] sm:$0x10]  ;;  %1747 = vmatprep.mubr.bf16.mxu1 %v1017_v53  ;;  %v987_v54 = vrot.slane %v985_v36, 3  ;;  %2914 = vmatprep.subr.bf16.mxu1 %v7161_v4 }
 0x1c4   : > { %v990_v39 = vrot.slane %v988_v38, 4  ;;  %v4210_v7 = vshrl.u32 %v4155_v34, 16  ;;  %v4213_v15 = vshll.u32 %v4155_v34, 16  ;;  %v437_v58 = vsel %vm8230_vm7, 0, %v436_v52  ;;  %v4152_v10 = vld [vmem:[#allocation2 + $0x40] sm:$0xf8] }
 0x1c5   : > { %v3796_v59 = vsel %vm1774_vm8, %v3787_v60, %v3795_v40  ;;  %v3774_v2 = vrot.slane %v3772_v42, 4  ;;  %v3777_v31 = vrot.slane %v3775_v33, 5  ;;  %v4207_v12 = vrot.slane %v4205_v6, 4  ;;  %438 = vst [vmem:[#allocation2 + $0x10] sm:$0x10] %v437_v58 }
 0x1c6   : > { %4108 = vmatprep.mubr.bf16.mxu0 %v3796_v59  ;;  %v991_v50 = vor.u32 %v990_v39, %v987_v54  ;;  %v4154_v61 = vld [vmem:[#allocation2 + $0x50] sm:$0xf]  ;;  %v4185_v25 = vshrl.u32 %v4152_v10, 16  ;;  %v4188_v5 = vshll.u32 %v4152_v10, 16  ;;  %v4212_v17 = vrot.slane %v4210_v7, 3 }
 0x1c7   : > { %v3778_v49 = vor.u32 %v3777_v31, %v3774_v2  ;;  %v4215_v44 = vrot.slane %v4213_v15, 4  ;;  %v4193_v18 = vshrl.u32 %v4154_v61, 16  ;;  %v4208_v19 = vor.u32 %v4207_v12, %v4204_v56  ;;  %v7164_v60 = vld [vmem:[#allocation9 + $0x704] ss:$8 sps:$4 sm:$0xff]   ;;  %v1761_v30 = vld [vmem:[#allocation2 + $0x38] sm:$0x1f] }
 0x1c8   : > { %v1000_v9 = vsel %vm434_vm4, %v991_v50, %v999_v41  ;;  %v1759_v57 = vld [vmem:[#allocation2 + $0x18] sm:$0x1f]  ;;  %v4187_v63 = vrot.slane %v4185_v25, 3  ;;  %v4190_v47 = vrot.slane %v4188_v5, 4  ;;  %v4196_v27 = vshll.u32 %v4154_v61, 16  ;;  %5115 = vmatprep.subr.bf16.mxu0 %v7164_v60 }
 0x1c9   : > { %1748 = vmatmul.mubr.bf16.gmra.mrb[28].mxu1 %v1000_v9  ;;  %v3779_v11 = vsel %vm1774_vm8, %v3770_v13, %v3778_v49  ;;  %v1801_v43 = vshrl.u32 %v1759_v57, 16  ;;  %v1804_v16 = vshll.u32 %v1759_v57, 16  ;;  %v4216_v22 = vor.u32 %v4215_v44, %v4212_v17  ;;  %v7324_v41 = vld [vmem:[#allocation2 + $0x28] sm:$0xf0]  ;;  %v7162_v40 = vld [vmem:[#allocation9 + $0x700] ss:$8 sps:$4 sm:$0xff]  }
 0x1ca   : > { %4109 = vmatmul.mubr.bf16.gmra.mrb[28].mxu0 %v3779_v11  ;;  %v4195_v23 = vrot.slane %v4193_v18, 3  ;;  %v1827_v28 = vshrl.u32 %v7324_v41, 16  ;;  %v8549_v29 = vrot.slane %v2442_v0, 3  ;;  %v8553_v48 = vrot.slane %v2445_v1, 4  ;;  %v4157_v34 = vld [vmem:[#allocation2 + $0x68] sm:$0xf8] }
 0x1cb   : > { %v1803_v24 = vrot.slane %v1801_v43, 4  ;;  %v1806_v26 = vrot.slane %v1804_v16, 5  ;;  %v4217_v20 = vsel %vm434_vm4, %v4208_v19, %v4216_v22  ;;  %v4191_v35 = vor.u32 %v4190_v47, %v4187_v63  ;;  %v4159_v42 = vld [vmem:[#allocation2 + $0x78] sm:$0xf]  ;;  %v7170_v33 = vld [vmem:[#allocation9 + $0x714] ss:$8 sps:$4 sm:$0xff]  }
 0x1cc   : > { %4697 = vmatprep.mubr.bf16.mxu0 %v4217_v20  ;;  %v4198_v51 = vrot.slane %v4196_v27, 4  ;;  %v1830_v13 = vshll.u32 %v7324_v41, 16  ;;  %v1758_v36 = vld [vmem:[#allocation2 + $0x10] sm:$0x1f]  ;;  %v1782_v38 = vor.u32 %v8371_v8, %v8173_v46  ;;  %v1829_v3 = vrot.slane %v1827_v28, 4 }
 0x1cd   : > { %v1807_v32 = vor.u32 %v1806_v26, %v1803_v24  ;;  %v1835_v0 = vshrl.u32 %v1761_v30, 16  ;;  %v1838_v37 = vshll.u32 %v1761_v30, 16  ;;  %v1784_v1 = vshrl.u32 %v1758_v36, 16  ;;  %v7159_v31 = vld [vmem:[#allocation9 + $0x300] ss:$8 sps:$4 sm:$0xff]  }
 0x1ce   : > { %v1787_v14 = vshll.u32 %v1758_v36, 16  ;;  %v4199_v53 = vor.u32 %v4198_v51, %v4195_v23  ;;  %v1832_v52 = vrot.slane %v1830_v13, 5  ;;  %v4236_v56 = vshrl.u32 %v4157_v34, 16  ;;  %v1760_v6 = vld [vmem:[#allocation2 + $0x30] sm:$0x1f] }
 0x1cf   : > { %v1808_v55 = vsel %vm1774_vm8, %v1799_v21, %v1807_v32  ;;  %v1837_v54 = vrot.slane %v1835_v0, 4  ;;  %v1840_v39 = vrot.slane %v1838_v37, 5  ;;  %v1786_v59 = vrot.slane %v1784_v1, 4  ;;  %v7167_v21 = vld [vmem:[#allocation9 + $0x314] ss:$8 sps:$4 sm:$0xff]  }
 0x1d0   : > { %2288 = vmatprep.mubr.bf16.mxu1 %v1808_v55  ;;  %v1789_v2 = vrot.slane %v1787_v14, 5  ;;  %v4200_v46 = vsel %vm434_vm4, %v4191_v35, %v4199_v53  ;;  %v4239_v8 = vshll.u32 %v4157_v34, 16  ;;  %v7168_v4 = vld [vmem:[#allocation9 + $0x710] ss:$8 sps:$4 sm:$0xff]   ;;  %v1833_v50 = vor.u32 %v1832_v52, %v1829_v3  ;;  %v7325_v61 = vld [vmem:[#allocation2 + $0x20] sm:$0xf0] }
 0x1d1   : > { %v1841_v7 = vor.u32 %v1840_v39, %v1837_v54  ;;  %v4238_v15 = vrot.slane %v4236_v56, 3  ;;  %v4244_v58 = vshrl.u32 %v4159_v42, 16  ;;  %v4247_v12 = vshll.u32 %v4159_v42, 16  ;;  %v4156_v5 = vld [vmem:[#allocation2 + $0x60] sm:$0xf8] }
 0x1d2   : > { %4698 = vmatmul.mubr.bf16.vlgmr.msra.gmra.mrb[0].mxu0 %v4200_v46  ;;  %v1790_v10 = vor.u32 %v1789_v2, %v1786_v59  ;;  %v4241_v49 = vrot.slane %v4239_v8, 4  ;;  %v1810_v25 = vshrl.u32 %v7325_v61, 16  ;;  %v1813_v17 = vshll.u32 %v7325_v61, 16  ;;  %v4158_v18 = vld [vmem:[#allocation2 + $0x70] sm:$0xf] }
 0x1d3   : > { %5116 = vmatpush1.bf16.msra.mxu0 %v7162_v40  ;;  %v1842_v9 = vsel %vm1774_vm8, %v1833_v50, %v1841_v7  ;;  %v4246_v57 = vrot.slane %v4244_v58, 3  ;;  %v1818_v44 = vshrl.u32 %v1760_v6, 16  ;;  %v7165_v43 = vld [vmem:[#allocation9 + $0x310] ss:$8 sps:$4 sm:$0xff]   ;;  %v4249_v19 = vrot.slane %v4247_v12, 4 }
 0x1d4   : > { %5117 = vmatprep.subr.bf16.mxu0 %v7170_v33  ;;  %v1791_v11 = vsel %vm1774_vm8, %v1782_v38, %v1790_v10  ;;  %v4242_v16 = vor.u32 %v4241_v49, %v4238_v15  ;;  %v1812_v60 = vrot.slane %v1810_v25, 4  ;;  %v7176_v22 = vld [vmem:[#allocation9 + $0x724] ss:$8 sps:$4 sm:$0xff]   ;;  %v1815_v63 = vrot.slane %v1813_v17, 5  ;;  %v7174_v30 = vld [vmem:[#allocation9 + $0x720] ss:$8 sps:$4 sm:$0xff]  }
 0x1d5   : > { %2289 = vmatmul.mubr.bf16.vlgmr.msra.gmra.mrb[0].mxu1 %v1791_v11  ;;  %v1820_v47 = vrot.slane %v1818_v44, 4  ;;  %v1821_v23 = vshll.u32 %v1760_v6, 16  ;;  %v7173_v24 = vld [vmem:[#allocation9 + $0x324] ss:$8 sps:$4 sm:$0xff]   ;;  %v4219_v26 = vshrl.u32 %v4156_v5, 16  ;;  %v4250_v27 = vor.u32 %v4249_v19, %v4246_v57 }
 0x1d6   : > { %2915 = vmatpush1.bf16.msra.mxu1 %v7159_v31  ;;  %v4222_v41 = vshll.u32 %v4156_v5, 16  ;;  %v4227_v28 = vshrl.u32 %v4158_v18, 16  ;;  %v4230_v20 = vshll.u32 %v4158_v18, 16  ;;  %2298 = vmatprep.mubr.bf16.mxu1 %v1842_v9  ;;  %v1816_v32 = vor.u32 %v1815_v63, %v1812_v60  ;;  %v7182_v13 = vld [vmem:[#allocation9 + $0x734] ss:$8 sps:$4 sm:$0xff]  }
 0x1d7   : > { %5118 = vmatpush1.bf16.msra.mxu0 %v7168_v4  ;;  %2916 = vmatprep.subr.bf16.mxu1 %v7167_v21  ;;  %v1823_v35 = vrot.slane %v1821_v23, 5  ;;  %v4221_v51 = vrot.slane %v4219_v26, 3  ;;  %v1763_v34 = vld [vmem:[#allocation2 + $0x58] sm:$0x1f]  ;;  %v4251_v36 = vsel %vm434_vm4, %v4242_v16, %v4250_v27  ;;  %v7171_v38 = vld [vmem:[#allocation9 + $0x320] ss:$8 sps:$4 sm:$0xff]  }
 0x1d8   : > { %v4224_v3 = vrot.slane %v4222_v41, 4  ;;  %v4229_v0 = vrot.slane %v4227_v28, 3  ;;  %v4232_v37 = vrot.slane %v4230_v20, 4  ;;  %5119 = vmatprep.subr.bf16.mxu0 %v7176_v22  ;;  %v4161_v55 = vld [vmem:[#allocation2 + $0x88] sm:$0xf8]  ;;  %4707 = vmatprep.mubr.bf16.mxu0 %v4251_v36  ;;  %v1869_v33 = vshrl.u32 %v1763_v34, 16 }
 0x1d9   : > { %v1824_v1 = vor.u32 %v1823_v35, %v1820_v47  ;;  %v7179_v14 = vld [vmem:[#allocation9 + $0x334] ss:$8 sps:$4 sm:$0xff]   ;;  %v7326_v53 = vld [vmem:[#allocation2 + $0x48] sm:$0xf0]  ;;  %v7180_v39 = vld [vmem:[#allocation9 + $0x730] ss:$8 sps:$4 sm:$0xff]  }
 0x1da   : > { %v1861_v40 = vshrl.u32 %v7326_v53, 16  ;;  %v1864_v42 = vshll.u32 %v7326_v53, 16  ;;  %2917 = vmatpush1.bf16.msra.mxu1 %v7165_v43  ;;  %v4225_v52 = vor.u32 %v4224_v3, %v4221_v51  ;;  %v4233_v54 = vor.u32 %v4232_v37, %v4229_v0  ;;  %v4163_v59 = vld [vmem:[#allocation2 + $0x98] sm:$0xf]  ;;  %v1762_v21 = vld [vmem:[#allocation2 + $0x50] sm:$0x1f] }
 0x1db   : > { %5120 = vmatpush1.bf16.msra.mxu0 %v7174_v30  ;;  %v1872_v56 = vshll.u32 %v1763_v34, 16  ;;  %v4270_v2 = vshrl.u32 %v4161_v55, 16  ;;  %v1825_v31 = vsel %vm1774_vm8, %v1816_v32, %v1824_v1  ;;  %2918 = vmatprep.subr.bf16.mxu1 %v7173_v24  ;;  %v1871_v6 = vrot.slane %v1869_v33, 4  ;;  %v7177_v50 = vld [vmem:[#allocation9 + $0x330] ss:$8 sps:$4 sm:$0xff]  }
 0x1dc   : > { %5121 = vmatprep.subr.bf16.mxu0 %v7182_v13  ;;  %v1863_v46 = vrot.slane %v1861_v40, 4  ;;  %v1866_v8 = vrot.slane %v1864_v42, 5  ;;  %v4234_v4 = vsel %vm434_vm4, %v4225_v52, %v4233_v54  ;;  %v4273_v58 = vshll.u32 %v4161_v55, 16  ;;  %v4160_v10 = vld [vmem:[#allocation2 + $0x80] sm:$0xf8] }
 0x1dd   : > { %v1874_v7 = vrot.slane %v1872_v56, 5  ;;  %v4272_v15 = vrot.slane %v4270_v2, 3  ;;  %2299 = vmatmul.mubr.bf16.gmra.mrb[4].mxu1 %v1825_v31  ;;  %4708 = vmatmul.mubr.bf16.gmra.mrb[4].mxu0 %v4234_v4  ;;  %v4278_v12 = vshrl.u32 %v4163_v59, 16  ;;  %v4281_v61 = vshll.u32 %v4163_v59, 16  ;;  %v7327_v25 = vld [vmem:[#allocation2 + $0x40] sm:$0xf0] }
 0x1de   : > { %v1867_v49 = vor.u32 %v1866_v8, %v1863_v46  ;;  %v1844_v5 = vshrl.u32 %v7327_v25, 16  ;;  %v7185_v9 = vld [vmem:[#allocation9 + $0x344] ss:$8 sps:$4 sm:$0xff]   ;;  %v4162_v57 = vld [vmem:[#allocation2 + $0x90] sm:$0xf]  ;;  %2919 = vmatpush1.bf16.msra.mxu1 %v7171_v38  ;;  %v4275_v44 = vrot.slane %v4273_v58, 4 }
 0x1df   : > { %5122 = vmatpush1.bf16.msra.mxu0 %v7180_v39  ;;  %v1875_v17 = vor.u32 %v1874_v7, %v1871_v6  ;;  %v1847_v18 = vshll.u32 %v7327_v25, 16  ;;  %v1852_v11 = vshrl.u32 %v1762_v21, 16  ;;  %v7186_v43 = vld [vmem:[#allocation9 + $0x740] ss:$8 sps:$4 sm:$0xff]   ;;  %2920 = vmatprep.subr.bf16.mxu1 %v7179_v14  ;;  %v4280_v16 = vrot.slane %v4278_v12, 3 }
 0x1e0   : > { %v4283_v19 = vrot.slane %v4281_v61, 4  ;;  %v1846_v60 = vrot.slane %v1844_v5, 4  ;;  %v1855_v22 = vshll.u32 %v1762_v21, 16  ;;  %v7188_v63 = vld [vmem:[#allocation9 + $0x744] ss:$8 sps:$4 sm:$0xff]   ;;  %v4276_v23 = vor.u32 %v4275_v44, %v4272_v15 }
 0x1e1   : > { %v1876_v47 = vsel %vm1774_vm8, %v1867_v49, %v1875_v17  ;;  %v1849_v24 = vrot.slane %v1847_v18, 5  ;;  %v1854_v26 = vrot.slane %v1852_v11, 4  ;;  %v7183_v28 = vld [vmem:[#allocation9 + $0x340] ss:$8 sps:$4 sm:$0xff]   ;;  %v4253_v20 = vshrl.u32 %v4160_v10, 16  ;;  %5123 = vmatprep.subr.bf16.mxu0 %v7188_v63 }
 0x1e2   : > { %2308 = vmatprep.mubr.bf16.mxu1 %v1876_v47  ;;  %v4284_v27 = vor.u32 %v4283_v19, %v4280_v16  ;;  %v1857_v41 = vrot.slane %v1855_v22, 5  ;;  %v4256_v30 = vshll.u32 %v4160_v10, 16  ;;  %v7192_v32 = vld [vmem:[#allocation9 + $0x750] ss:$8 sps:$4 sm:$0xff]   ;;  %2921 = vmatpush1.bf16.msra.mxu1 %v7177_v50  ;;  %v4261_v51 = vshrl.u32 %v4162_v57, 16 }
 0x1e3   : > { %v1850_v35 = vor.u32 %v1849_v24, %v1846_v60  ;;  %v4264_v13 = vshll.u32 %v4162_v57, 16  ;;  %5124 = vmatpush1.bf16.msra.mxu0 %v7186_v43  ;;  %v7194_v34 = vld [vmem:[#allocation9 + $0x754] ss:$8 sps:$4 sm:$0xff]   ;;  %2922 = vmatprep.subr.bf16.mxu1 %v7185_v9  ;;  %v4255_v0 = vrot.slane %v4253_v20, 3  ;;  %v4165_v1 = vld [vmem:[#allocation2 + $0xa8] sm:$0xf8] }
 0x1e4   : > { %v1765_v36 = vld [vmem:[#allocation2 + $0x78] sm:$0x1f]  ;;  %v4285_v38 = vsel %vm434_vm4, %v4276_v23, %v4284_v27  ;;  %v1858_v3 = vor.u32 %v1857_v41, %v1854_v26  ;;  %v4258_v37 = vrot.slane %v4256_v30, 4  ;;  %v4263_v14 = vrot.slane %v4261_v51, 3  ;;  %5125 = vmatprep.subr.bf16.mxu0 %v7194_v34  ;;  %v7328_v40 = vld [vmem:[#allocation2 + $0x68] sm:$0xf0] }
 0x1e5   : > { %v7191_v55 = vld [vmem:[#allocation9 + $0x354] ss:$8 sps:$4 sm:$0xff]   ;;  %4717 = vmatprep.mubr.bf16.mxu0 %v4285_v38  ;;  %v4266_v53 = vrot.slane %v4264_v13, 4  ;;  %v1895_v42 = vshrl.u32 %v7328_v40, 16  ;;  %v1898_v33 = vshll.u32 %v7328_v40, 16  ;;  %v1903_v59 = vshrl.u32 %v1765_v36, 16 }
 0x1e6   : > { %v4167_v52 = vld [vmem:[#allocation2 + $0xb8] sm:$0xf]  ;;  %v1859_v54 = vsel %vm1774_vm8, %v1850_v35, %v1858_v3  ;;  %v4259_v39 = vor.u32 %v4258_v37, %v4255_v0  ;;  %v1906_v2 = vshll.u32 %v1765_v36, 16  ;;  %v1764_v31 = vld [vmem:[#allocation2 + $0x70] sm:$0x1f]  ;;  %v4304_v21 = vshrl.u32 %v4165_v1, 16  ;;  %2923 = vmatpush1.bf16.msra.mxu1 %v7183_v28 }
 0x1e7   : > { %v7189_v56 = vld [vmem:[#allocation9 + $0x350] ss:$8 sps:$4 sm:$0xff]   ;;  %2309 = vmatmul.mubr.bf16.gmra.mrb[8].mxu1 %v1859_v54  ;;  %v4267_v46 = vor.u32 %v4266_v53, %v4263_v14  ;;  %5126 = vmatpush1.bf16.msra.mxu0 %v7192_v32  ;;  %v1897_v8 = vrot.slane %v1895_v42, 4  ;;  %v1900_v6 = vrot.slane %v1898_v33, 5  ;;  %v7197_v4 = vld [vmem:[#allocation9 + $0x364] ss:$8 sps:$4 sm:$0xff]  }
 0x1e8   : > { %v1905_v50 = vrot.slane %v1903_v59, 4  ;;  %v1908_v7 = vrot.slane %v1906_v2, 5  ;;  %v4307_v15 = vshll.u32 %v4165_v1, 16  ;;  %v4312_v58 = vshrl.u32 %v4167_v52, 16  ;;  %v4164_v10 = vld [vmem:[#allocation2 + $0xa0] sm:$0xf8]  ;;  %2924 = vmatprep.subr.bf16.mxu1 %v7191_v55 }
 0x1e9   : > { %v4268_v49 = vsel %vm434_vm4, %v4259_v39, %v4267_v46  ;;  %v1901_v12 = vor.u32 %v1900_v6, %v1897_v8  ;;  %v4306_v61 = vrot.slane %v4304_v21, 3  ;;  %v4315_v25 = vshll.u32 %v4167_v52, 16  ;;  %v4166_v5 = vld [vmem:[#allocation2 + $0xb0] sm:$0xf]  ;;  %v7198_v9 = vld [vmem:[#allocation9 + $0x760] ss:$8 sps:$4 sm:$0xff]  }
 0x1ea   : > { %4718 = vmatmul.mubr.bf16.gmra.mrb[8].mxu0 %v4268_v49  ;;  %v1909_v57 = vor.u32 %v1908_v7, %v1905_v50  ;;  %v4309_v17 = vrot.slane %v4307_v15, 4  ;;  %v4314_v44 = vrot.slane %v4312_v58, 3  ;;  %v7329_v18 = vld [vmem:[#allocation2 + $0x60] sm:$0xf0]  ;;  %v1886_v60 = vshrl.u32 %v1764_v31, 16  ;;  %2925 = vmatpush1.bf16.msra.mxu1 %v7189_v56 }
 0x1eb   : > { %v1878_v11 = vshrl.u32 %v7329_v18, 16  ;;  %v7200_v43 = vld [vmem:[#allocation9 + $0x764] ss:$8 sps:$4 sm:$0xff]   ;;  %v4317_v16 = vrot.slane %v4315_v25, 4  ;;  %v1881_v19 = vshll.u32 %v7329_v18, 16  ;;  %v1889_v22 = vshll.u32 %v1764_v31, 16  ;;  %2926 = vmatprep.subr.bf16.mxu1 %v7197_v4 }
 0x1ec   : > { %v1910_v63 = vsel %vm1774_vm8, %v1901_v12, %v1909_v57  ;;  %v4310_v47 = vor.u32 %v4309_v17, %v4306_v61  ;;  %v7195_v24 = vld [vmem:[#allocation9 + $0x360] ss:$8 sps:$4 sm:$0xff]   ;;  %v4287_v26 = vshrl.u32 %v4164_v10, 16  ;;  %5127 = vmatprep.subr.bf16.mxu0 %v7200_v43  ;;  %v7203_v27 = vld [vmem:[#allocation9 + $0x374] ss:$8 sps:$4 sm:$0xff]   ;;  %v1888_v20 = vrot.slane %v1886_v60, 4 }
 0x1ed   : > { %v1880_v23 = vrot.slane %v1878_v11, 4  ;;  %2318 = vmatprep.mubr.bf16.mxu1 %v1910_v63  ;;  %v4318_v41 = vor.u32 %v4317_v16, %v4314_v44  ;;  %v1883_v28 = vrot.slane %v1881_v19, 5  ;;  %v1891_v30 = vrot.slane %v1889_v22, 5  ;;  %v7204_v32 = vld [vmem:[#allocation9 + $0x770] ss:$8 sps:$4 sm:$0xff]   ;;  %5128 = vmatpush1.bf16.msra.mxu0 %v7198_v9 }
 0x1ee   : > { %v4289_v35 = vrot.slane %v4287_v26, 3  ;;  %v4290_v51 = vshll.u32 %v4164_v10, 16  ;;  %v4295_v13 = vshrl.u32 %v4166_v5, 16  ;;  %v4298_v34 = vshll.u32 %v4166_v5, 16  ;;  %v7201_v36 = vld [vmem:[#allocation9 + $0x370] ss:$8 sps:$4 sm:$0xff]   ;;  %2927 = vmatpush1.bf16.msra.mxu1 %v7195_v24 }
 0x1ef   : > { %v7206_v38 = vld [vmem:[#allocation9 + $0x774] ss:$8 sps:$4 sm:$0xff]   ;;  %v4319_v3 = vsel %vm434_vm4, %v4310_v47, %v4318_v41  ;;  %v1884_v0 = vor.u32 %v1883_v28, %v1880_v23  ;;  %v1892_v37 = vor.u32 %v1891_v30, %v1888_v20  ;;  %v7330_v1 = vld [vmem:[#allocation2 + $0x88] sm:$0xf0]  ;;  %v4171_v54 = vld [vmem:[#allocation2 + $0xd8] sm:$0xf]  ;;  %2928 = vmatprep.subr.bf16.mxu1 %v7203_v27 }
 0x1f0   : > { %v1767_v55 = vld [vmem:[#allocation2 + $0x98] sm:$0x1f]  ;;  %v1929_v14 = vshrl.u32 %v7330_v1, 16  ;;  %v4169_v53 = vld [vmem:[#allocation2 + $0xc8] sm:$0xf8]  ;;  %4727 = vmatprep.mubr.bf16.mxu0 %v4319_v3  ;;  %v4292_v40 = vrot.slane %v4290_v51, 4  ;;  %5129 = vmatprep.subr.bf16.mxu0 %v7206_v38 }
 0x1f1   : > { %v4297_v42 = vrot.slane %v4295_v13, 3  ;;  %v4300_v33 = vrot.slane %v4298_v34, 4  ;;  %v1932_v52 = vshll.u32 %v7330_v1, 16  ;;  %v1893_v39 = vsel %vm1774_vm8, %v1884_v0, %v1892_v37  ;;  %5130 = vmatpush1.bf16.msra.mxu0 %v7204_v32  ;;  %v1766_v21 = vld [vmem:[#allocation2 + $0x90] sm:$0x1f] }
 0x1f2   : > { %v1931_v56 = vrot.slane %v1929_v14, 4  ;;  %v1937_v59 = vshrl.u32 %v1767_v55, 16  ;;  %v1940_v2 = vshll.u32 %v1767_v55, 16  ;;  %2319 = vmatmul.mubr.bf16.gmra.mrb[12].mxu1 %v1893_v39  ;;  %v4293_v31 = vor.u32 %v4292_v40, %v4289_v35  ;;  %v7209_v4 = vld [vmem:[#allocation9 + $0x384] ss:$8 sps:$4 sm:$0xff]  }
 0x1f3   : > { %v4301_v46 = vor.u32 %v4300_v33, %v4297_v42  ;;  %v1934_v8 = vrot.slane %v1932_v52, 5  ;;  %v4338_v6 = vshrl.u32 %v4169_v53, 16  ;;  %v4341_v15 = vshll.u32 %v4169_v53, 16  ;;  %v7207_v10 = vld [vmem:[#allocation9 + $0x380] ss:$8 sps:$4 sm:$0xff]   ;;  %2929 = vmatpush1.bf16.msra.mxu1 %v7201_v36 }
 0x1f4   : > { %v1939_v50 = vrot.slane %v1937_v59, 4  ;;  %v1942_v7 = vrot.slane %v1940_v2, 5  ;;  %v4346_v58 = vshrl.u32 %v4171_v54, 16  ;;  %v4168_v49 = vld [vmem:[#allocation2 + $0xc0] sm:$0xf8]  ;;  %v4349_v5 = vshll.u32 %v4171_v54, 16  ;;  %2930 = vmatprep.subr.bf16.mxu1 %v7209_v4 }
 0x1f5   : > { %v4302_v12 = vsel %vm434_vm4, %v4293_v31, %v4301_v46  ;;  %v1935_v61 = vor.u32 %v1934_v8, %v1931_v56  ;;  %v4340_v25 = vrot.slane %v4338_v6, 3  ;;  %v4170_v9 = vld [vmem:[#allocation2 + $0xd0] sm:$0xf]  ;;  %v4343_v17 = vrot.slane %v4341_v15, 4  ;;  %v7331_v18 = vld [vmem:[#allocation2 + $0x80] sm:$0xf0] }
 0x1f6   : > { %4728 = vmatmul.mubr.bf16.gmra.mrb[12].mxu0 %v4302_v12  ;;  %v1943_v57 = vor.u32 %v1942_v7, %v1939_v50  ;;  %v4348_v44 = vrot.slane %v4346_v58, 3  ;;  %v1912_v11 = vshrl.u32 %v7331_v18, 16  ;;  %v7210_v43 = vld [vmem:[#allocation9 + $0x780] ss:$8 sps:$4 sm:$0xff]   ;;  %v4351_v16 = vrot.slane %v4349_v5, 4 }
 0x1f7   : > { %v1915_v19 = vshll.u32 %v7331_v18, 16  ;;  %v1920_v60 = vshrl.u32 %v1766_v21, 16  ;;  %v1923_v22 = vshll.u32 %v1766_v21, 16  ;;  %v7212_v63 = vld [vmem:[#allocation9 + $0x784] ss:$8 sps:$4 sm:$0xff]   ;;  %v4344_v23 = vor.u32 %v4343_v17, %v4340_v25  ;;  %2931 = vmatpush1.bf16.msra.mxu1 %v7207_v10 }
 0x1f8   : > { %v1944_v47 = vsel %vm1774_vm8, %v1935_v61, %v1943_v57  ;;  %v1914_v24 = vrot.slane %v1912_v11, 4  ;;  %v4321_v26 = vshrl.u32 %v4168_v49, 16  ;;  %v4352_v27 = vor.u32 %v4351_v16, %v4348_v44  ;;  %5131 = vmatprep.subr.bf16.mxu0 %v7212_v63  ;;  %v7213_v30 = vld [vmem:[#allocation9 + $0x390] ss:$8 sps:$4 sm:$0xff]   ;;  %v7215_v32 = vld [vmem:[#allocation9 + $0x394] ss:$8 sps:$4 sm:$0xff]  }
 0x1f9   : > { %2328 = vmatprep.mubr.bf16.mxu1 %v1944_v47  ;;  %v1917_v41 = vrot.slane %v1915_v19, 5  ;;  %v1922_v28 = vrot.slane %v1920_v60, 4  ;;  %v1925_v20 = vrot.slane %v1923_v22, 5  ;;  %v4324_v51 = vshll.u32 %v4168_v49, 16  ;;  %5132 = vmatpush1.bf16.msra.mxu0 %v7210_v43  ;;  %v7216_v36 = vld [vmem:[#allocation9 + $0x790] ss:$8 sps:$4 sm:$0xff]  }
 0x1fa   : > { %v4323_v35 = vrot.slane %v4321_v26, 3  ;;  %v4329_v13 = vshrl.u32 %v4170_v9, 16  ;;  %v4332_v34 = vshll.u32 %v4170_v9, 16  ;;  %v4353_v38 = vsel %vm434_vm4, %v4344_v23, %v4352_v27  ;;  %2932 = vmatprep.subr.bf16.mxu1 %v7215_v32  ;;  %v7218_v37 = vld [vmem:[#allocation9 + $0x794] ss:$8 sps:$4 sm:$0xff]  }
 0x1fb   : > { %v1918_v3 = vor.u32 %v1917_v41, %v1914_v24  ;;  %v1926_v0 = vor.u32 %v1925_v20, %v1922_v28  ;;  %v1769_v55 = vld [vmem:[#allocation2 + $0xb8] sm:$0x1f]  ;;  %v7332_v1 = vld [vmem:[#allocation2 + $0xa8] sm:$0xf0]  ;;  %4737 = vmatprep.mubr.bf16.mxu0 %v4353_v38  ;;  %v4326_v53 = vrot.slane %v4324_v51, 4  ;;  %5133 = vmatprep.subr.bf16.mxu0 %v7218_v37 }
 0x1fc   : > { %v1963_v14 = vshrl.u32 %v7332_v1, 16  ;;  %v4331_v40 = vrot.slane %v4329_v13, 3  ;;  %v4334_v42 = vrot.slane %v4332_v34, 4  ;;  %v1966_v33 = vshll.u32 %v7332_v1, 16  ;;  %v4173_v52 = vld [vmem:[#allocation2 + $0xe8] sm:$0xf8]  ;;  %2933 = vmatpush1.bf16.msra.mxu1 %v7213_v30 }
 0x1fd   : > { %v1927_v54 = vsel %vm1774_vm8, %v1918_v3, %v1926_v0  ;;  %v1971_v56 = vshrl.u32 %v1769_v55, 16  ;;  %v1974_v59 = vshll.u32 %v1769_v55, 16  ;;  %v4175_v2 = vld [vmem:[#allocation2 + $0xf8] sm:$0xf]  ;;  %v4327_v31 = vor.u32 %v4326_v53, %v4323_v35  ;;  %5134 = vmatpush1.bf16.msra.mxu0 %v7216_v36  ;;  %v1768_v21 = vld [vmem:[#allocation2 + $0xb0] sm:$0x1f] }
 0x1fe   : > { %v1965_v39 = vrot.slane %v1963_v14, 4  ;;  %2329 = vmatmul.mubr.bf16.gmra.mrb[16].mxu1 %v1927_v54  ;;  %v4335_v46 = vor.u32 %v4334_v42, %v4331_v40  ;;  %v1968_v8 = vrot.slane %v1966_v33, 5  ;;  %v4372_v6 = vshrl.u32 %v4173_v52, 16  ;;  %v7219_v4 = vld [vmem:[#allocation9 + $0x3a0] ss:$8 sps:$4 sm:$0xff]  }
 0x1ff   : > { %v1973_v50 = vrot.slane %v1971_v56, 4  ;;  %v1976_v7 = vrot.slane %v1974_v59, 5  ;;  %v4375_v15 = vshll.u32 %v4173_v52, 16  ;;  %v4380_v58 = vshrl.u32 %v4175_v2, 16  ;;  %v7221_v10 = vld [vmem:[#allocation9 + $0x3a4] ss:$8 sps:$4 sm:$0xff]  }
 0x200   : > { %v4336_v49 = vsel %vm434_vm4, %v4327_v31, %v4335_v46  ;;  %v1969_v12 = vor.u32 %v1968_v8, %v1965_v39  ;;  %v4374_v61 = vrot.slane %v4372_v6, 3  ;;  %v4383_v25 = vshll.u32 %v4175_v2, 16  ;;  %v4172_v5 = vld [vmem:[#allocation2 + $0xe0] sm:$0xf8]  ;;  %v4174_v9 = vld [vmem:[#allocation2 + $0xf0] sm:$0xf]  ;;  %2934 = vmatprep.subr.bf16.mxu1 %v7221_v10 }
 0x201   : > { %4738 = vmatmul.mubr.bf16.gmra.mrb[16].mxu0 %v4336_v49  ;;  %v1977_v57 = vor.u32 %v1976_v7, %v1973_v50  ;;  %v4377_v17 = vrot.slane %v4375_v15, 4  ;;  %v4382_v44 = vrot.slane %v4380_v58, 3  ;;  %v7333_v18 = vld [vmem:[#allocation2 + $0xa0] sm:$0xf0]  ;;  %v1954_v19 = vshrl.u32 %v1768_v21, 16  ;;  %2935 = vmatpush1.bf16.msra.mxu1 %v7219_v4 }
 0x202   : > { %v1946_v11 = vshrl.u32 %v7333_v18, 16  ;;  %v4385_v43 = vrot.slane %v4383_v25, 4  ;;  %v1949_v16 = vshll.u32 %v7333_v18, 16  ;;  %v1957_v60 = vshll.u32 %v1768_v21, 16  ;;  %v7222_v22 = vld [vmem:[#allocation9 + $0x7a0] ss:$8 sps:$4 sm:$0xff]  }
 0x203   : > { %v1978_v63 = vsel %vm1774_vm8, %v1969_v12, %v1977_v57  ;;  %v4378_v47 = vor.u32 %v4377_v17, %v4374_v61  ;;  %v4355_v24 = vshrl.u32 %v4172_v5, 16  ;;  %v7224_v26 = vld [vmem:[#allocation9 + $0x7a4] ss:$8 sps:$4 sm:$0xff]   ;;  %v1956_v28 = vrot.slane %v1954_v19, 4  ;;  %v7225_v30 = vld [vmem:[#allocation9 + $0x3b0] ss:$8 sps:$4 sm:$0xff]  }
 0x204   : > { %v1948_v23 = vrot.slane %v1946_v11, 4  ;;  %2338 = vmatprep.mubr.bf16.mxu1 %v1978_v63  ;;  %v4386_v27 = vor.u32 %v4385_v43, %v4382_v44  ;;  %v1951_v41 = vrot.slane %v1949_v16, 5  ;;  %v1959_v20 = vrot.slane %v1957_v60, 5  ;;  %5135 = vmatprep.subr.bf16.mxu0 %v7224_v26  ;;  %v7227_v34 = vld [vmem:[#allocation9 + $0x3b4] ss:$8 sps:$4 sm:$0xff]  }
 0x205   : > { %v4357_v32 = vrot.slane %v4355_v24, 3  ;;  %v4358_v35 = vshll.u32 %v4172_v5, 16  ;;  %v4363_v51 = vshrl.u32 %v4174_v9, 16  ;;  %v4366_v13 = vshll.u32 %v4174_v9, 16  ;;  %5136 = vmatpush1.bf16.msra.mxu0 %v7222_v22  ;;  %v7228_v0 = vld [vmem:[#allocation9 + $0x7b0] ss:$8 sps:$4 sm:$0xff]   ;;  %2936 = vmatprep.subr.bf16.mxu1 %v7227_v34 }
 0x206   : > { %v4387_v36 = vsel %vm434_vm4, %v4378_v47, %v4386_v27  ;;  %v1952_v38 = vor.u32 %v1951_v41, %v1948_v23  ;;  %v1960_v3 = vor.u32 %v1959_v20, %v1956_v28  ;;  %v7230_v37 = vld [vmem:[#allocation9 + $0x7b4] ss:$8 sps:$4 sm:$0xff]   ;;  %v7334_v40 = vld [vmem:[#allocation2 + $0xc8] sm:$0xf0]  ;;  %v424_v33 = vld [vmem:[#allocation2 + $0x108] sm:$0x8]  ;;  %2937 = vmatpush1.bf16.msra.mxu1 %v7225_v30 }
 0x207   : > { %v1771_v55 = vld [vmem:[#allocation2 + $0xd8] sm:$0x1f]  ;;  %4747 = vmatprep.mubr.bf16.mxu0 %v4387_v36  ;;  %v4360_v1 = vrot.slane %v4358_v35, 4  ;;  %v4365_v14 = vrot.slane %v4363_v51, 3  ;;  %v4368_v53 = vrot.slane %v4366_v13, 4  ;;  %v1997_v42 = vshrl.u32 %v7334_v40, 16  ;;  %5137 = vmatprep.subr.bf16.mxu0 %v7230_v37 }
 0x208   : > { %v1961_v52 = vsel %vm1774_vm8, %v1952_v38, %v1960_v3  ;;  %v2000_v54 = vshll.u32 %v7334_v40, 16  ;;  %v2005_v39 = vshrl.u32 %v1771_v55, 16  ;;  %v2008_v56 = vshll.u32 %v1771_v55, 16  ;;  %v4179_v59 = vld [vmem:[#allocation2 + $0x118] sm:$0xf] }
 0x209   : > { %2339 = vmatmul.mubr.bf16.gmra.mrb[20].mxu1 %v1961_v52  ;;  %v4361_v2 = vor.u32 %v4360_v1, %v4357_v32  ;;  %v4369_v31 = vor.u32 %v4368_v53, %v4365_v14  ;;  %v1999_v46 = vrot.slane %v1997_v42, 4  ;;  %v425_v8 = vsel %vm8224_vm6, 0, %v424_v33  ;;  %v1770_v6 = vld [vmem:[#allocation2 + $0xd0] sm:$0x1f]  ;;  %5138 = vmatpush1.bf16.msra.mxu0 %v7228_v0  ;;  %v7231_v15 = vld [vmem:[#allocation9 + $0x3c0] ss:$8 sps:$4 sm:$0xff]  }
 0x20a   : > { %v2002_v21 = vrot.slane %v2000_v54, 5  ;;  %v2007_v4 = vrot.slane %v2005_v39, 4  ;;  %v2010_v50 = vrot.slane %v2008_v56, 5  ;;  %426 = vst [vmem:[#allocation2 + $0x108] sm:$0x8] %v425_v8  ;;  %v4414_v7 = vshrl.u32 %v4179_v59, 16 }
 0x20b   : > { %v4370_v58 = vsel %vm434_vm4, %v4361_v2, %v4369_v31  ;;  %v4417_v10 = vshll.u32 %v4179_v59, 16  ;;  %v7335_v49 = vld [vmem:[#allocation2 + $0xc0] sm:$0xf0]  ;;  %v1988_v17 = vshrl.u32 %v1770_v6, 16  ;;  %v421_v44 = vld [vmem:[#allocation2 + $0x100] sm:$0x8] }
 0x20c   : > { %v1980_v12 = vshrl.u32 %v7335_v49, 16  ;;  %v1983_v61 = vshll.u32 %v7335_v49, 16  ;;  %v7233_v25 = vld [vmem:[#allocation9 + $0x3c4] ss:$8 sps:$4 sm:$0xff]   ;;  %4748 = vmatmul.mubr.bf16.gmra.mrb[20].mxu0 %v4370_v58  ;;  %v2003_v5 = vor.u32 %v2002_v21, %v1999_v46  ;;  %v2011_v9 = vor.u32 %v2010_v50, %v2007_v4  ;;  %v8585_v18 = vld [vmem:[#allocation2 + $0x110] sm:$0xf] }
 0x20d   : > { %v8583_v57 = vrot.slane %v4414_v7, 3  ;;  %v8587_v11 = vrot.slane %v4417_v10, 4  ;;  %v1991_v19 = vshll.u32 %v1770_v6, 16  ;;  %2938 = vmatprep.subr.bf16.mxu1 %v7233_v25  ;;  %v7234_v60 = vld [vmem:[#allocation9 + $0x7c0] ss:$8 sps:$4 sm:$0xff]   ;;  %v1990_v63 = vrot.slane %v1988_v17, 4 }
 0x20e   : > { %v1982_v43 = vrot.slane %v1980_v12, 4  ;;  %v1985_v16 = vrot.slane %v1983_v61, 5  ;;  %v2012_v22 = vsel %vm1774_vm8, %v2003_v5, %v2011_v9  ;;  %v422_v47 = vsel %vm8224_vm6, 0, %v421_v44  ;;  %v7236_v24 = vld [vmem:[#allocation9 + $0x7c4] ss:$8 sps:$4 sm:$0xff]   ;;  %2939 = vmatpush1.bf16.msra.mxu1 %v7231_v15  ;;  %v587_v54 = vld [vmem:[%s8055_s30 + $0x18] sm:$0xff] }
 0x20f   : > { %v4397_v23 = vshrl.u32 %v8585_v18, 16  ;;  %2348 = vmatprep.mubr.bf16.mxu1 %v2012_v22  ;;  %v1993_v27 = vrot.slane %v1991_v19, 5  ;;  %423 = vst [vmem:[#allocation2 + $0x100] sm:$0x8] %v422_v47  ;;  %v4400_v41 = vshll.u32 %v8585_v18, 16  ;;  %5139 = vmatprep.subr.bf16.mxu0 %v7236_v24  ;;  %v4420_v37 = vor.u32 %v8587_v11, %v8583_v57  ;;  %v585_v14 = vld [vmem:[%s8055_s30 + $0x8] sm:$0xff] }
 0x210   : > { %v1986_v26 = vor.u32 %v1985_v16, %v1982_v43  ;;  %v7237_v28 = vld [vmem:[#allocation9 + $0x3d0] ss:$8 sps:$4 sm:$0xff]   ;;  %v7239_v30 = vld [vmem:[#allocation9 + $0x3d4] ss:$8 sps:$4 sm:$0xff]   ;;  %5140 = vmatpush1.bf16.msra.mxu0 %v7234_v60  ;;  %v7336_v36 = vld [vmem:[#allocation2 + $0xe8] sm:$0xf0]  ;;  %v604_v61 = vstv %s603_s11 }
 0x211   : > { %v8594_v20 = vrot.slane %v4397_v23, 3  ;;  %v7240_v32 = vld [vmem:[#allocation9 + $0x7d0] ss:$8 sps:$4 sm:$0xff]   ;;  %v4177_v35 = vld [vmem:[#allocation2 + $0x108] sm:$0xf8]  ;;  %v1994_v51 = vor.u32 %v1993_v27, %v1990_v63  ;;  %v8596_v13 = vrot.slane %v4400_v41, 4  ;;  %2940 = vmatprep.subr.bf16.mxu1 %v7239_v30 }
 0x212   : > { %v7242_v34 = vld [vmem:[#allocation9 + $0x7d4] ss:$8 sps:$4 sm:$0xff]   ;;  %v2031_v38 = vshrl.u32 %v7336_v36, 16  ;;  %v4406_v3 = vshrl.u32 %v4177_v35, 16  ;;  %v4409_v0 = vshll.u32 %v4177_v35, 16  ;;  %v2034_v1 = vshll.u32 %v7336_v36, 16  ;;  %2941 = vmatpush1.bf16.msra.mxu1 %v7237_v28 }
 0x213   : > { %v1773_v55 = vld [vmem:[#allocation2 + $0xf8] sm:$0x1f]  ;;  %v1995_v53 = vsel %vm1774_vm8, %v1986_v26, %v1994_v51  ;;  %v4403_v40 = vor.u32 %v8596_v13, %v8594_v20  ;;  %5141 = vmatprep.subr.bf16.mxu0 %v7242_v34  ;;  %v430_v52 = vld [vmem:[#allocation2 + $0x128] sm:$0x8]  ;;  %v589_v8 = vmax.f32 %v585_v14, 0.0  ;;  %v591_v6 = vmax.f32 %v587_v54, 0.0 }
 0x214   : > { %v2033_v42 = vrot.slane %v2031_v38, 4  ;;  %v2039_v33 = vshrl.u32 %v1773_v55, 16  ;;  %v4408_v39 = vrot.slane %v4406_v3, 3  ;;  %v4411_v56 = vrot.slane %v4409_v0, 4  ;;  %2349 = vmatmul.mubr.bf16.gmra.mrb[24].mxu1 %v1995_v53  ;;  %5142 = vmatpush1.bf16.msra.mxu0 %v7240_v32  ;;  %v1772_v21 = vld [vmem:[#allocation2 + $0xf0] sm:$0x1f] }
 0x215   : > { %v2036_v59 = vrot.slane %v2034_v1, 5  ;;  %v2042_v2 = vshll.u32 %v1773_v55, 16  ;;  %v431_v46 = vsel %vm8224_vm6, 0, %v430_v52  ;;  %v7337_v58 = vld [vmem:[#allocation2 + $0xe0] sm:$0xf0]  ;;  %vm8610_vm9 = vcmp.eq.s32.totalorder %v604_v61, 1 }
 0x216   : > { %v2041_v31 = vrot.slane %v2039_v33, 4  ;;  %v4412_v4 = vor.u32 %v4411_v56, %v4408_v39  ;;  %v4176_v50 = vld [vmem:[#allocation2 + $0x100] sm:$0xf8]  ;;  %432 = vst [vmem:[#allocation2 + $0x128] sm:$0x8] %v431_v46  ;;  %v2014_v10 = vshrl.u32 %v7337_v58, 16 }
 0x217   : > { %v2037_v7 = vor.u32 %v2036_v59, %v2033_v42  ;;  %v2044_v15 = vrot.slane %v2042_v2, 5  ;;  %v4389_v49 = vshrl.u32 %v4176_v50, 16  ;;  %v4392_v12 = vshll.u32 %v4176_v50, 16  ;;  %v7243_v5 = vld [vmem:[#allocation9 + $0x3e0] ss:$8 sps:$4 sm:$0xff]   ;;  %v586_v47 = vld [vmem:[%s8055_s30 + $0x10] sm:$0xff] }
 0x218   : > { %v2017_v25 = vshll.u32 %v7337_v58, 16  ;;  %v584_v9 = vld [vmem:[%s8055_s30] sm:$0xff]  ;;  %v4421_v57 = vsel %vm434_vm4, %v4412_v4, %v4420_v37  ;;  %v2016_v11 = vrot.slane %v2014_v10, 4  ;;  %v607_v22 = vsel %vm8610_vm9, %v589_v8, 0.0  ;;  %v7249_v0 = vld [vmem:[#allocation9 + $0x3f0] ss:$8 sps:$4 sm:$0xff]  }
 0x219   : > { %v2045_v17 = vor.u32 %v2044_v15, %v2041_v31  ;;  %v7245_v43 = vld [vmem:[#allocation9 + $0x3e4] ss:$8 sps:$4 sm:$0xff]   ;;  %v427_v16 = vld [vmem:[#allocation2 + $0x120] sm:$0x8]  ;;  %4757 = vmatprep.mubr.bf16.mxu0 %v4421_v57  ;;  %v4391_v19 = vrot.slane %v4389_v49, 3  ;;  %v4394_v60 = vrot.slane %v4392_v12, 4 }
 0x21a   : > { %v609_v63 = vsel %vm8610_vm9, %v591_v6, 0.0  ;;  %v2019_v26 = vrot.slane %v2017_v25, 5  ;;  %v2022_v27 = vshrl.u32 %v1772_v21, 16  ;;  %2942 = vmatprep.subr.bf16.mxu1 %v7245_v43  ;;  %v7246_v41 = vld [vmem:[#allocation9 + $0x7e0] ss:$8 sps:$4 sm:$0xff]   ;;  %v2025_v30 = vshll.u32 %v1772_v21, 16 }
 0x21b   : > { %v2046_v23 = vsel %vm1774_vm8, %v2037_v7, %v2045_v17  ;;  %v611_v24 = vpack.c.bf16 %v609_v63, %v607_v22  ;;  %v4395_v28 = vor.u32 %v4394_v60, %v4391_v19  ;;  %v428_v32 = vsel %vm8224_vm6, 0, %v427_v16  ;;  %v7248_v51 = vld [vmem:[#allocation9 + $0x7e4] ss:$8 sps:$4 sm:$0xff]   ;;  %2943 = vmatpush1.bf16.msra.mxu1 %v7243_v5  ;;  %v7251_v45 = vld [vmem:[#allocation9 + $0x3f4] ss:$8 sps:$4 sm:$0xff]  }
 0x21c   : > { %2358 = vmatprep.mubr.bf16.mxu1 %v2046_v23  ;;  %v588_v35 = vmax.f32 %v584_v9, 0.0  ;;  %v2020_v36 = vor.u32 %v2019_v26, %v2016_v11  ;;  %v2024_v38 = vrot.slane %v2022_v27, 4  ;;  %429 = vst [vmem:[#allocation2 + $0x120] sm:$0x8] %v428_v32  ;;  %v590_v3 = vmax.f32 %v586_v47, 0.0  ;;  %5143 = vmatprep.subr.bf16.mxu0 %v7248_v51 }
 0x21d   : > { %v706_v34 = vrot.slane %v611_v24, 4  ;;  %v4404_v37 = vsel %vm434_vm4, %v4395_v28, %v4403_v40  ;;  %v2027_v55 = vrot.slane %v2025_v30, 5  ;;  %v7338_v14 = vld [vmem:[#allocation2 + $0x38] sm:$0xf]  ;;  %v7254_v52 = vld [vmem:[#allocation9 + $0x7f4] ss:$8 sps:$4 sm:$0xff]   ;;  %5144 = vmatpush1.bf16.msra.mxu0 %v7246_v41  ;;  %2944 = vmatprep.subr.bf16.mxu1 %v7251_v45  ;;  %v2448_v25 = vor.u32 %v8553_v48, %v8549_v29 }
 0x21e   : > { %v606_v1 = vsel %vm8610_vm9, %v588_v35, 0.0  ;;  %v2459_v53 = vshrl.u32 %v7338_v14, 16  ;;  %4758 = vmatmul.mubr.bf16.gmra.mrb[24].mxu0 %v4404_v37  ;;  %v608_v42 = vsel %vm8610_vm9, %v590_v3, 0.0  ;;  %v7252_v33 = vld [vmem:[#allocation9 + $0x7f0] ss:$8 sps:$4 sm:$0xff]   ;;  %v2462_v54 = vshll.u32 %v7338_v14, 16  ;;  %5145 = vmatprep.subr.bf16.mxu0 %v7254_v52 }
 0x21f   : > { %711 = vst [vmem:[#allocation2 + $0x138] ss:$-12 sps:$4 sm:$0xff] %v706_v34   ;;  %v2028_v39 = vor.u32 %v2027_v55, %v2024_v38  ;;  %v610_v20 = vpack.c.bf16 %v608_v42, %v606_v1  ;;  %v2402_v13 = vld [vmem:[#allocation2 + $0x28] sm:$0xf8]  ;;  %v7339_v59 = vld [vmem:[#allocation2 + $0x58] sm:$0xf]  ;;  %2945 = vmatpush1.bf16.msra.mxu1 %v7249_v0 }
 0x220   : > { %v2461_v40 = vrot.slane %v2459_v53, 3  ;;  %v8630_v56 = vld [vmem:[#allocation2 + $0x48] sm:$0xf0]  ;;  %v4862_v2 = vrot.slane %v7339_v59, 4  ;;  %v2451_v31 = vshrl.u32 %v2402_v13, 16  ;;  %v2454_v46 = vshll.u32 %v2402_v13, 16 }
 0x221   : > { %v2464_v8 = vrot.slane %v2462_v54, 4  ;;  %v4861_v6 = vrot.slane %v8630_v56, 4  ;;  %v2401_v21 = vld [vmem:[#allocation2 + $0x20] sm:$0xf8]  ;;  %v2029_v4 = vsel %vm1774_vm8, %v2020_v36, %v2028_v39  ;;  %v705_v50 = vrot.slane %v610_v20, 4  ;;  %5146 = vmatpush1.bf16.msra.mxu0 %v7252_v33 }
 0x222   : > { %v2434_v7 = vshrl.u32 %v2401_v21, 16  ;;  %v2437_v15 = vshll.u32 %v2401_v21, 16  ;;  %2359 = vmatmul.mubr.bf16.gmra.mrb[28].mxu1 %v2029_v4  ;;  %v2453_v58 = vrot.slane %v2451_v31, 3  ;;  %v2456_v10 = vrot.slane %v2454_v46, 4  ;;  %v7257_v5 = vld [vmem:[#allocation9 + $0x804] ss:$8 sps:$4 sm:$0xff]  }
 0x223   : > { %710 = vst [vmem:[#allocation2 + $0x130] ss:$-12 sps:$4 sm:$0xff] %v705_v50   ;;  %v2465_v49 = vor.u32 %v2464_v8, %v2461_v40  ;;  %v7340_v57 = vld [vmem:[#allocation2 + $0x58] sm:$0xf]  ;;  %v8639_v43 = vsel %vm1114_vm1, %v4861_v6, %v4862_v2  ;;  %5757 = vmatprep.subr.bf16.mxu0 %v7257_v5  ;;  %6430 = vmatprep.subr.bf16.mxu1 %v7257_v5  ;;  %v2406_v19 = vld [vmem:[#allocation2 + $0x48] sm:$0xf8] }
 0x224   : > { %v2436_v12 = vrot.slane %v2434_v7, 3  ;;  %v2439_v61 = vrot.slane %v2437_v15, 4  ;;  %v2457_v9 = vor.u32 %v2456_v10, %v2453_v58  ;;  %v2493_v17 = vshrl.u32 %v7340_v57, 16  ;;  %v8643_v48 = vld [vmem:[#allocation2 + $0x40] sm:$0xf0] }
 0x225   : > { %v8647_v24 = vld [vmem:[#allocation9 + $0x800] ss:$8 sps:$4 sm:$0xff]   ;;  %v8649_v26 = vld [vmem:[#allocation9 + $0x814] ss:$8 sps:$4 sm:$0xff]   ;;  %v2485_v27 = vshrl.u32 %v2406_v19, 16  ;;  %v2488_v41 = vshll.u32 %v2406_v19, 16 }
 0x226   : > { %v4181_v44 = vld [vmem:[#allocation2 + $0x128] sm:$0xf8]  ;;  %v8636_v11 = vld [vmem:[#allocation2 + $0x138] sm:$0xf]  ;;  %v2440_v16 = vor.u32 %v2439_v61, %v2436_v12  ;;  %v2466_v47 = vsel %vm434_vm4, %v2457_v9, %v2465_v49  ;;  %v4858_v51 = vrot.slane %v8643_v48, 4  ;;  %v2496_v3 = vshll.u32 %v7340_v57, 16 }
 0x227   : > { %v4440_v60 = vshrl.u32 %v4181_v44, 16  ;;  %v4443_v22 = vshll.u32 %v4181_v44, 16  ;;  %v4448_v63 = vshrl.u32 %v8636_v11, 16  ;;  %v4451_v29 = vshll.u32 %v8636_v11, 16  ;;  %2946 = vmatprep.mubr.bf16.mxu1 %v2466_v47  ;;  %v8652_v34 = vld [vmem:[#allocation9 + $0x810] ss:$8 sps:$4 sm:$0xff]  }
 0x228   : > { %v2449_v23 = vsel %vm434_vm4, %v2440_v16, %v2448_v25  ;;  %v2487_v36 = vrot.slane %v2485_v27, 3  ;;  %v2490_v38 = vrot.slane %v2488_v41, 4  ;;  %v8654_v0 = vld [vmem:[#allocation2 + $0x68] sm:$0xf0]  ;;  %v7341_v14 = vld [vmem:[#allocation2 + $0x50] sm:$0xf] }
 0x229   : > { %v4442_v28 = vrot.slane %v4440_v60, 3  ;;  %v4445_v30 = vrot.slane %v4443_v22, 4  ;;  %v4450_v32 = vrot.slane %v4448_v63, 3  ;;  %v4453_v35 = vrot.slane %v4451_v29, 4  ;;  %v2405_v20 = vld [vmem:[#allocation2 + $0x40] sm:$0xf8] }
 0x22a   : > { %v4180_v1 = vld [vmem:[#allocation2 + $0x120] sm:$0xf8]  ;;  %v8656_v45 = vld [vmem:[#allocation2 + $0x130] sm:$0xf]  ;;  %2947 = vmatmul.mubr.bf16.vlgmr.msra.gmra.mrb[0].mxu1 %v2449_v23  ;;  %v4859_v53 = vrot.slane %v7341_v14, 4  ;;  %v2495_v42 = vrot.slane %v2493_v17, 3  ;;  %v2491_v40 = vor.u32 %v2490_v38, %v2487_v36 }
 0x22b   : > { %v4446_v37 = vor.u32 %v4445_v30, %v4442_v28  ;;  %v4454_v55 = vor.u32 %v4453_v35, %v4450_v32  ;;  %v4423_v33 = vshrl.u32 %v4180_v1, 16  ;;  %v4426_v52 = vshll.u32 %v4180_v1, 16  ;;  %6446 = vmatpush1.bf16.msra.mxu1 %v8647_v24  ;;  %v8664_v31 = vld [vmem:[#allocation9 + $0x824] ss:$8 sps:$4 sm:$0xff]   ;;  %v7342_v15 = vld [vmem:[#allocation2 + $0x50] sm:$0xf] }
 0x22c   : > { %v4431_v54 = vshrl.u32 %v8656_v45, 16  ;;  %v4434_v39 = vshll.u32 %v8656_v45, 16  ;;  %6431 = vmatprep.subr.bf16.mxu1 %v8649_v26  ;;  %v2498_v59 = vrot.slane %v2496_v3, 4  ;;  %v4867_v2 = vrot.slane %v8654_v0, 4  ;;  %v2410_v10 = vld [vmem:[#allocation2 + $0x68] sm:$0xf8] }
 0x22d   : > { %v4455_v13 = vsel %vm434_vm4, %v4446_v37, %v4454_v55  ;;  %v4425_v46 = vrot.slane %v4423_v33, 3  ;;  %v4428_v8 = vrot.slane %v4426_v52, 4  ;;  %v2468_v50 = vshrl.u32 %v2405_v20, 16  ;;  %v7343_v61 = vld [vmem:[#allocation2 + $0x78] sm:$0xf] }
 0x22e   : > { %4767 = vmatprep.mubr.bf16.mxu0 %v4455_v13  ;;  %v4433_v6 = vrot.slane %v4431_v54, 3  ;;  %v4436_v21 = vrot.slane %v4434_v39, 4  ;;  %v2499_v4 = vor.u32 %v2498_v59, %v2495_v42  ;;  %v2471_v7 = vshll.u32 %v2405_v20, 16  ;;  %v8667_v9 = vld [vmem:[#allocation9 + $0x820] ss:$8 sps:$4 sm:$0xff]  }
 0x22f   : > { %v2476_v58 = vshrl.u32 %v7342_v15, 16  ;;  %v4429_v49 = vor.u32 %v4428_v8, %v4425_v46  ;;  %6447 = vmatpush1.bf16.msra.mxu1 %v8652_v34  ;;  %v4868_v25 = vrot.slane %v7343_v61, 4  ;;  %v2479_v5 = vshll.u32 %v7342_v15, 16  ;;  %v8671_v19 = vld [vmem:[#allocation9 + $0x834] ss:$8 sps:$4 sm:$0xff]  }
 0x230   : > { %v4437_v12 = vor.u32 %v4436_v21, %v4433_v6  ;;  %v2500_v57 = vsel %vm434_vm4, %v2491_v40, %v2499_v4  ;;  %v2470_v17 = vrot.slane %v2468_v50, 3  ;;  %v2473_v44 = vrot.slane %v2471_v7, 4  ;;  %6432 = vmatprep.subr.bf16.mxu1 %v8664_v31  ;;  %v8674_v63 = vld [vmem:[#allocation2 + $0x60] sm:$0xf0]  ;;  %v7344_v27 = vld [vmem:[#allocation2 + $0x78] sm:$0xf] }
 0x231   : > { %v2478_v16 = vrot.slane %v2476_v58, 3  ;;  %2956 = vmatprep.mubr.bf16.mxu1 %v2500_v57  ;;  %v2481_v22 = vrot.slane %v2479_v5, 4  ;;  %v2519_v29 = vshrl.u32 %v2410_v10, 16  ;;  %v2522_v23 = vshll.u32 %v2410_v10, 16  ;;  %v2409_v30 = vld [vmem:[#allocation2 + $0x60] sm:$0xf8] }
 0x232   : > { %v4438_v60 = vsel %vm434_vm4, %v4429_v49, %v4437_v12  ;;  %v2474_v47 = vor.u32 %v2473_v44, %v2470_v17  ;;  %v2527_v41 = vshrl.u32 %v7344_v27, 16  ;;  %v2530_v28 = vshll.u32 %v7344_v27, 16  ;;  %v8682_v38 = vld [vmem:[#allocation9 + $0x830] ss:$8 sps:$4 sm:$0xff]   ;;  %v8684_v37 = vld [vmem:[#allocation2 + $0x88] sm:$0xf0] }
 0x233   : > { %4768 = vmatmul.mubr.bf16.gmra.mrb[28].mxu0 %v4438_v60  ;;  %v4860_v32 = vsel %vm1114_vm1, %v4858_v51, %v4859_v53  ;;  %v4869_v35 = vsel %vm1114_vm1, %v4867_v2, %v4868_v25  ;;  %v2482_v36 = vor.u32 %v2481_v22, %v2478_v16  ;;  %6448 = vmatpush1.bf16.msra.mxu1 %v8667_v9  ;;  %v2521_v3 = vrot.slane %v2519_v29, 3  ;;  %v8688_v42 = vld [vmem:[#allocation9 + $0x844] ss:$8 sps:$4 sm:$0xff]   ;;  %v7345_v52 = vld [vmem:[#allocation2 + $0x70] sm:$0xf] }
 0x234   : > { %5147 = vmatprep.mubr.bf16.mxu0 %v8639_v43  ;;  %v4864_v55 = vrot.slane %v8674_v63, 4  ;;  %6433 = vmatprep.subr.bf16.mxu1 %v8671_v19  ;;  %v2524_v1 = vrot.slane %v2522_v23, 4  ;;  %v2529_v43 = vrot.slane %v2527_v41, 3  ;;  %v2532_v14 = vrot.slane %v2530_v28, 4  ;;  %v2414_v39 = vld [vmem:[#allocation2 + $0x88] sm:$0xf8] }
 0x235   : > { %v2483_v51 = vsel %vm434_vm4, %v2474_v47, %v2482_v36  ;;  %v2502_v53 = vshrl.u32 %v2409_v30, 16  ;;  %v2505_v33 = vshll.u32 %v2409_v30, 16  ;;  %v2510_v54 = vshrl.u32 %v7345_v52, 16  ;;  %v7346_v20 = vld [vmem:[#allocation2 + $0x70] sm:$0xf] }
 0x236   : > { %2957 = vmatmul.mubr.bf16.gmra.mrb[4].mxu1 %v2483_v51  ;;  %v4865_v13 = vrot.slane %v7346_v20, 4  ;;  %v2525_v40 = vor.u32 %v2524_v1, %v2521_v3  ;;  %v2533_v59 = vor.u32 %v2532_v14, %v2529_v43  ;;  %v2513_v2 = vshll.u32 %v7345_v52, 16  ;;  %v8691_v46 = vld [vmem:[#allocation2 + $0x80] sm:$0xf0]  ;;  %v8695_v50 = vld [vmem:[#allocation9 + $0x840] ss:$8 sps:$4 sm:$0xff]  }
 0x237   : > { %6449 = vmatpush1.bf16.msra.mxu1 %v8682_v38  ;;  %v4873_v8 = vrot.slane %v8684_v37, 4  ;;  %v2504_v6 = vrot.slane %v2502_v53, 3  ;;  %v2507_v21 = vrot.slane %v2505_v33, 4  ;;  %v2512_v4 = vrot.slane %v2510_v54, 3  ;;  %v7347_v15 = vld [vmem:[#allocation2 + $0x98] sm:$0xf] }
 0x238   : > { %v2534_v7 = vsel %vm434_vm4, %v2525_v40, %v2533_v59  ;;  %v4874_v58 = vrot.slane %v7347_v15, 4  ;;  %v2515_v10 = vrot.slane %v2513_v2, 4  ;;  %6434 = vmatprep.subr.bf16.mxu1 %v8688_v42  ;;  %v8699_v49 = vld [vmem:[#allocation9 + $0x854] ss:$8 sps:$4 sm:$0xff]   ;;  %v2553_v12 = vshrl.u32 %v2414_v39, 16 }
 0x239   : > { %2966 = vmatprep.mubr.bf16.mxu1 %v2534_v7  ;;  %v2508_v61 = vor.u32 %v2507_v21, %v2504_v6  ;;  %v2556_v25 = vshll.u32 %v2414_v39, 16  ;;  %v7348_v5 = vld [vmem:[#allocation2 + $0x98] sm:$0xf]  ;;  %v2413_v44 = vld [vmem:[#allocation2 + $0x80] sm:$0xf8]  ;;  %v4870_v60 = vrot.slane %v8691_v46, 4  ;;  %v4866_v27 = vsel %vm1114_vm1, %v4864_v55, %v4865_v13 }
 0x23a   : > { %v2561_v57 = vshrl.u32 %v7348_v5, 16  ;;  %v2564_v17 = vshll.u32 %v7348_v5, 16  ;;  %v2516_v16 = vor.u32 %v2515_v10, %v2512_v4  ;;  %v7349_v22 = vld [vmem:[#allocation2 + $0x90] sm:$0xf]  ;;  %v2555_v23 = vrot.slane %v2553_v12, 3 }
 0x23b   : > { %5148 = vmatmul.mubr.bf16.vlgmr.msra.gmra.mrb[0].mxu0 %v4860_v32  ;;  %v4871_v29 = vrot.slane %v7349_v22, 4  ;;  %v8702_v47 = vld [vmem:[#allocation9 + $0x850] ss:$8 sps:$4 sm:$0xff]   ;;  %v2558_v41 = vrot.slane %v2556_v25, 4  ;;  %v8706_v36 = vld [vmem:[#allocation2 + $0xa8] sm:$0xf0]  ;;  %6450 = vmatpush1.bf16.msra.mxu1 %v8695_v50 }
 0x23c   : > { %5758 = vmatpush1.bf16.msra.mxu0 %v8647_v24  ;;  %5157 = vmatprep.mubr.bf16.mxu0 %v4869_v35  ;;  %v2563_v28 = vrot.slane %v2561_v57, 3  ;;  %v2566_v30 = vrot.slane %v2564_v17, 4  ;;  %v2517_v32 = vsel %vm434_vm4, %v2508_v61, %v2516_v16  ;;  %v2536_v3 = vshrl.u32 %v2413_v44, 16  ;;  %v7350_v43 = vld [vmem:[#allocation2 + $0x90] sm:$0xf] }
 0x23d   : > { %5759 = vmatprep.subr.bf16.mxu0 %v8649_v26  ;;  %v2539_v1 = vshll.u32 %v2413_v44, 16  ;;  %v2544_v14 = vshrl.u32 %v7350_v43, 16  ;;  %v2418_v51 = vld [vmem:[#allocation2 + $0xa8] sm:$0xf8]  ;;  %v4875_v24 = vsel %vm1114_vm1, %v4873_v8, %v4874_v58  ;;  %6435 = vmatprep.subr.bf16.mxu1 %v8699_v49  ;;  %v2559_v35 = vor.u32 %v2558_v41, %v2555_v23  ;;  %v8713_v33 = vld [vmem:[#allocation2 + $0xa0] sm:$0xf0] }
 0x23e   : > { %v2567_v55 = vor.u32 %v2566_v30, %v2563_v28  ;;  %v2547_v53 = vshll.u32 %v7350_v43, 16  ;;  %v8715_v52 = vld [vmem:[#allocation9 + $0x864] ss:$8 sps:$4 sm:$0xff]   ;;  %2967 = vmatmul.mubr.bf16.gmra.mrb[8].mxu1 %v2517_v32  ;;  %v8718_v26 = vsel %vm1114_vm1, %v4870_v60, %v4871_v29  ;;  %v2538_v54 = vrot.slane %v2536_v3, 3  ;;  %v8720_v13 = vld [vmem:[#allocation9 + $0x860] ss:$8 sps:$4 sm:$0xff]  }
 0x23f   : > { %v2541_v39 = vrot.slane %v2539_v1, 4  ;;  %v2546_v20 = vrot.slane %v2544_v14, 3  ;;  %v4879_v59 = vrot.slane %v8706_v36, 4  ;;  %v8725_v8 = vld [vmem:[#allocation9 + $0x874] ss:$8 sps:$4 sm:$0xff]   ;;  %v2587_v6 = vshrl.u32 %v2418_v51, 16  ;;  %6451 = vmatpush1.bf16.msra.mxu1 %v8702_v47 }
 0x240   : > { %5760 = vmatpush1.bf16.msra.mxu0 %v8652_v34  ;;  %v2568_v40 = vsel %vm434_vm4, %v2559_v35, %v2567_v55  ;;  %v2549_v2 = vrot.slane %v2547_v53, 4  ;;  %v2590_v4 = vshll.u32 %v2418_v51, 16  ;;  %v7351_v7 = vld [vmem:[#allocation2 + $0xb8] sm:$0xf]  ;;  %v2417_v10 = vld [vmem:[#allocation2 + $0xa0] sm:$0xf8]  ;;  %6436 = vmatprep.subr.bf16.mxu1 %v8715_v52 }
 0x241   : > { %5761 = vmatprep.subr.bf16.mxu0 %v8664_v31  ;;  %v2542_v21 = vor.u32 %v2541_v39, %v2538_v54  ;;  %v2595_v15 = vshrl.u32 %v7351_v7, 16  ;;  %v2598_v58 = vshll.u32 %v7351_v7, 16  ;;  %2976 = vmatprep.mubr.bf16.mxu1 %v2568_v40  ;;  %v7352_v34 = vld [vmem:[#allocation2 + $0xb8] sm:$0xf]  ;;  %v4876_v25 = vrot.slane %v8713_v33, 4 }
 0x242   : > { %v4880_v12 = vrot.slane %v7352_v34, 4  ;;  %v2550_v61 = vor.u32 %v2549_v2, %v2546_v20  ;;  %v2589_v5 = vrot.slane %v2587_v6, 3  ;;  %v8731_v57 = vld [vmem:[#allocation2 + $0xc8] sm:$0xf0]  ;;  %v7353_v31 = vld [vmem:[#allocation2 + $0xb0] sm:$0xf] }
 0x243   : > { %5158 = vmatmul.mubr.bf16.gmra.mrb[4].mxu0 %v4866_v27  ;;  %v4877_v17 = vrot.slane %v7353_v31, 4  ;;  %v8733_v44 = vld [vmem:[#allocation9 + $0x870] ss:$8 sps:$4 sm:$0xff]   ;;  %v2592_v16 = vrot.slane %v2590_v4, 4  ;;  %v2597_v60 = vrot.slane %v2595_v15, 3  ;;  %v2600_v22 = vrot.slane %v2598_v58, 4  ;;  %6452 = vmatpush1.bf16.msra.mxu1 %v8720_v13 }
 0x244   : > { %5762 = vmatpush1.bf16.msra.mxu0 %v8667_v9  ;;  %5167 = vmatprep.mubr.bf16.mxu0 %v4875_v24  ;;  %v2551_v29 = vsel %vm434_vm4, %v2542_v21, %v2550_v61  ;;  %v2570_v23 = vshrl.u32 %v2417_v10, 16  ;;  %v2573_v41 = vshll.u32 %v2417_v10, 16  ;;  %v7354_v28 = vld [vmem:[#allocation2 + $0xb0] sm:$0xf]  ;;  %v8737_v32 = vld [vmem:[#allocation2 + $0xc0] sm:$0xf0]  ;;  %v4881_v2 = vsel %vm1114_vm1, %v4879_v59, %v4880_v12 }
 0x245   : > { %v2578_v30 = vshrl.u32 %v7354_v28, 16  ;;  %5763 = vmatprep.subr.bf16.mxu0 %v8671_v19  ;;  %v2593_v27 = vor.u32 %v2592_v16, %v2589_v5  ;;  %v2601_v3 = vor.u32 %v2600_v22, %v2597_v60  ;;  %v4885_v1 = vrot.slane %v8731_v57, 4  ;;  %v2422_v14 = vld [vmem:[#allocation2 + $0xc8] sm:$0xf8]  ;;  %6437 = vmatprep.subr.bf16.mxu1 %v8725_v8  ;;  %v7355_v9 = vld [vmem:[#allocation2 + $0xd8] sm:$0xf] }
 0x246   : > { %v2581_v43 = vshll.u32 %v7354_v28, 16  ;;  %v4886_v51 = vrot.slane %v7355_v9, 4  ;;  %v2572_v24 = vrot.slane %v2570_v23, 3  ;;  %v2575_v35 = vrot.slane %v2573_v41, 4  ;;  %v8743_v53 = vld [vmem:[#allocation9 + $0x884] ss:$8 sps:$4 sm:$0xff]   ;;  %2977 = vmatmul.mubr.bf16.gmra.mrb[12].mxu1 %v2551_v29 }
 0x247   : > { %v2580_v55 = vrot.slane %v2578_v30, 3  ;;  %v2602_v19 = vsel %vm434_vm4, %v2593_v27, %v2601_v3  ;;  %v4882_v39 = vrot.slane %v8737_v32, 4  ;;  %v7356_v20 = vld [vmem:[#allocation2 + $0xd0] sm:$0xf]  ;;  %v8749_v21 = vld [vmem:[#allocation9 + $0x880] ss:$8 sps:$4 sm:$0xff]   ;;  %v8753_v15 = vsel %vm1114_vm1, %v4876_v25, %v4877_v17  ;;  %6453 = vmatpush1.bf16.msra.mxu1 %v8733_v44 }
 0x248   : > { %v2583_v54 = vrot.slane %v2581_v43, 4  ;;  %v4883_v40 = vrot.slane %v7356_v20, 4  ;;  %5764 = vmatpush1.bf16.msra.mxu0 %v8682_v38  ;;  %2986 = vmatprep.mubr.bf16.mxu1 %v2602_v19  ;;  %v2576_v6 = vor.u32 %v2575_v35, %v2572_v24  ;;  %v2621_v4 = vshrl.u32 %v2422_v14, 16  ;;  %v8757_v34 = vld [vmem:[#allocation9 + $0x894] ss:$8 sps:$4 sm:$0xff]  }
 0x249   : > { %v2624_v7 = vshll.u32 %v2422_v14, 16  ;;  %5765 = vmatprep.subr.bf16.mxu0 %v8688_v42  ;;  %v5413_v10 = vshrl.u32 %v8737_v32, 16  ;;  %v7357_v38 = vld [vmem:[#allocation2 + $0xd8] sm:$0xf]  ;;  %v2421_v12 = vld [vmem:[#allocation2 + $0xc0] sm:$0xf8]  ;;  %v8760_v61 = vsel %vm1114_vm1, %v4885_v1, %v4886_v51  ;;  %6438 = vmatprep.subr.bf16.mxu1 %v8743_v53 }
 0x24a   : > { %v2584_v58 = vor.u32 %v2583_v54, %v2580_v55  ;;  %v2629_v59 = vshrl.u32 %v7357_v38, 16  ;;  %v2623_v5 = vrot.slane %v2621_v4, 3  ;;  %v2632_v31 = vshll.u32 %v7357_v38, 16  ;;  %v8763_v25 = vld [vmem:[#allocation2 + $0xe8] sm:$0xf0] }
 0x24b   : > { %v2626_v42 = vrot.slane %v2624_v7, 4  ;;  %5168 = vmatmul.mubr.bf16.gmra.mrb[8].mxu0 %v8718_v26  ;;  %v8768_v16 = vsel %vm1114_vm1, %v4882_v39, %v4883_v40  ;;  %v5416_v60 = vshll.u32 %v8737_v32, 16  ;;  %v8771_v22 = vld [vmem:[#allocation9 + $0x890] ss:$8 sps:$4 sm:$0xff]   ;;  %v2604_v28 = vshrl.u32 %v2421_v12, 16  ;;  %6454 = vmatpush1.bf16.msra.mxu1 %v8749_v21 }
 0x24c   : > { %v2585_v17 = vsel %vm434_vm4, %v2576_v6, %v2584_v58  ;;  %v2631_v29 = vrot.slane %v2629_v59, 3  ;;  %5766 = vmatpush1.bf16.msra.mxu0 %v8695_v50  ;;  %5177 = vmatprep.mubr.bf16.mxu0 %v4881_v2  ;;  %v2634_v41 = vrot.slane %v2632_v31, 4  ;;  %v2607_v30 = vshll.u32 %v2421_v12, 16  ;;  %v2426_v27 = vld [vmem:[#allocation2 + $0xe8] sm:$0xf8] }
 0x24d   : > { %v2627_v23 = vor.u32 %v2626_v42, %v2623_v5  ;;  %5767 = vmatprep.subr.bf16.mxu0 %v8699_v49  ;;  %v8775_v26 = vrot.slane %v5413_v10, 4  ;;  %v4891_v3 = vrot.slane %v8763_v25, 4  ;;  %v7358_v32 = vld [vmem:[#allocation2 + $0xd0] sm:$0xf]  ;;  %v8779_v14 = vld [vmem:[#allocation2 + $0xe0] sm:$0xf0]  ;;  %6439 = vmatprep.subr.bf16.mxu1 %v8757_v34 }
 0x24e   : > { %v2612_v1 = vshrl.u32 %v7358_v32, 16  ;;  %v2615_v43 = vshll.u32 %v7358_v32, 16  ;;  %v2635_v50 = vor.u32 %v2634_v41, %v2631_v29  ;;  %v7359_v9 = vld [vmem:[#allocation2 + $0xf8] sm:$0xf]  ;;  %v2606_v24 = vrot.slane %v2604_v28, 3  ;;  %2987 = vmatmul.mubr.bf16.gmra.mrb[16].mxu1 %v2585_v17 }
 0x24f   : > { %v4892_v51 = vrot.slane %v7359_v9, 4  ;;  %v2609_v35 = vrot.slane %v2607_v30, 4  ;;  %v8782_v55 = vld [vmem:[#allocation9 + $0x8a4] ss:$8 sps:$4 sm:$0xff]   ;;  %v8784_v54 = vld [vmem:[#allocation9 + $0x8a0] ss:$8 sps:$4 sm:$0xff]   ;;  %6455 = vmatpush1.bf16.msra.mxu1 %v8771_v22 }
 0x250   : > { %v2614_v49 = vrot.slane %v2612_v1, 3  ;;  %v2617_v19 = vrot.slane %v2615_v43, 4  ;;  %v2655_v39 = vshrl.u32 %v2426_v27, 16  ;;  %v2658_v20 = vshll.u32 %v2426_v27, 16  ;;  %v2425_v40 = vld [vmem:[#allocation2 + $0xe0] sm:$0xf8]  ;;  %5768 = vmatpush1.bf16.msra.mxu0 %v8702_v47  ;;  %6440 = vmatprep.subr.bf16.mxu1 %v8782_v55 }
 0x251   : > { %v8787_v2 = vrot.slane %v5416_v60, 5  ;;  %v2636_v6 = vsel %vm434_vm4, %v2627_v23, %v2635_v50  ;;  %v2610_v4 = vor.u32 %v2609_v35, %v2606_v24  ;;  %v8790_v7 = vld [vmem:[#allocation9 + $0x8b4] ss:$8 sps:$4 sm:$0xff]   ;;  %v7360_v58 = vld [vmem:[#allocation2 + $0xf8] sm:$0xf]  ;;  %5769 = vmatprep.subr.bf16.mxu0 %v8715_v52  ;;  %v8797_v47 = vsel %vm1114_vm1, %v4891_v3, %v4892_v51 }
 0x252   : > { %v2663_v10 = vshrl.u32 %v7360_v58, 16  ;;  %v2618_v38 = vor.u32 %v2617_v19, %v2614_v49  ;;  %v2657_v59 = vrot.slane %v2655_v39, 3  ;;  %v2660_v12 = vrot.slane %v2658_v20, 4  ;;  %v8794_v42 = vld [vmem:[#allocation2 + $0x108] sm:$0xf0]  ;;  %2996 = vmatprep.mubr.bf16.mxu1 %v2636_v6 }
 0x253   : > { %v2666_v5 = vshll.u32 %v7360_v58, 16  ;;  %v4888_v31 = vrot.slane %v8779_v14, 4  ;;  %v2638_v60 = vshrl.u32 %v2425_v40, 16  ;;  %v8801_v29 = vld [vmem:[#allocation2 + $0x100] sm:$0xf0]  ;;  %5178 = vmatmul.mubr.bf16.gmra.mrb[12].mxu0 %v8753_v15  ;;  %v2641_v27 = vshll.u32 %v2425_v40, 16  ;;  %6456 = vmatpush1.bf16.msra.mxu1 %v8784_v54 }
 0x254   : > { %v2665_v17 = vrot.slane %v2663_v10, 3  ;;  %v7361_v52 = vld [vmem:[#allocation2 + $0xf0] sm:$0xf]  ;;  %v2661_v28 = vor.u32 %v2660_v12, %v2657_v59  ;;  %v2430_v32 = vld [vmem:[#allocation2 + $0x108] sm:$0xf8]  ;;  %5770 = vmatpush1.bf16.msra.mxu0 %v8720_v13  ;;  %5187 = vmatprep.mubr.bf16.mxu0 %v8760_v61  ;;  %v2619_v3 = vsel %vm434_vm4, %v2610_v4, %v2618_v38  ;;  %v4897_v24 = vrot.slane %v8794_v42, 4 }
 0x255   : > { %v4889_v23 = vrot.slane %v7361_v52, 4  ;;  %v8804_v41 = vld [vmem:[#allocation9 + $0x8b0] ss:$8 sps:$4 sm:$0xff]   ;;  %v2668_v30 = vrot.slane %v2666_v5, 4  ;;  %v2640_v1 = vrot.slane %v2638_v60, 3  ;;  %5771 = vmatprep.subr.bf16.mxu0 %v8725_v8  ;;  %v2643_v13 = vrot.slane %v2641_v27, 4  ;;  %6441 = vmatprep.subr.bf16.mxu1 %v8790_v7 }
 0x256   : > { %v7362_v43 = vld [vmem:[#allocation2 + $0xf0] sm:$0xf]  ;;  %v8809_v51 = vld [vmem:[#allocation9 + $0x8c4] ss:$8 sps:$4 sm:$0xff]   ;;  %v7363_v35 = vld [vmem:[#allocation2 + $0x118] sm:$0xf]  ;;  %2997 = vmatmul.mubr.bf16.gmra.mrb[20].mxu1 %v2619_v3 }
 0x257   : > { %v2646_v50 = vshrl.u32 %v7362_v43, 16  ;;  %v2649_v9 = vshll.u32 %v7362_v43, 16  ;;  %v2669_v15 = vor.u32 %v2668_v30, %v2665_v17  ;;  %v4898_v49 = vrot.slane %v7363_v35, 4  ;;  %v8814_v19 = vld [vmem:[#allocation2 + $0x128] sm:$0xf0]  ;;  %6457 = vmatpush1.bf16.msra.mxu1 %v8804_v41 }
 0x258   : > { %v2689_v20 = vshrl.u32 %v2430_v32, 16  ;;  %v2692_v40 = vshll.u32 %v2430_v32, 16  ;;  %v2429_v6 = vld [vmem:[#allocation2 + $0x100] sm:$0xf8]  ;;  %v2644_v4 = vor.u32 %v2643_v13, %v2640_v1  ;;  %v4894_v58 = vrot.slane %v8801_v29, 4  ;;  %5772 = vmatpush1.bf16.msra.mxu0 %v8733_v44  ;;  %6442 = vmatprep.subr.bf16.mxu1 %v8809_v51 }
 0x259   : > { %v2648_v61 = vrot.slane %v2646_v50, 3  ;;  %v2651_v39 = vrot.slane %v2649_v9, 4  ;;  %v2670_v8 = vsel %vm434_vm4, %v2661_v28, %v2669_v15  ;;  %v7364_v10 = vld [vmem:[#allocation2 + $0x118] sm:$0xf]  ;;  %5773 = vmatprep.subr.bf16.mxu0 %v8743_v53  ;;  %v4895_v60 = vrot.slane %v8585_v18, 4 }
 0x25a   : > { %v2697_v38 = vshrl.u32 %v7364_v10, 16  ;;  %3006 = vmatprep.mubr.bf16.mxu1 %v2670_v8  ;;  %v2691_v12 = vrot.slane %v2689_v20, 3  ;;  %v2694_v5 = vrot.slane %v2692_v40, 4  ;;  %v2700_v17 = vshll.u32 %v7364_v10, 16  ;;  %v8823_v52 = vld [vmem:[#allocation9 + $0x8c0] ss:$8 sps:$4 sm:$0xff]  }
 0x25b   : > { %v2652_v59 = vor.u32 %v2651_v39, %v2648_v61  ;;  %v4903_v30 = vrot.slane %v8814_v19, 4  ;;  %v2672_v27 = vshrl.u32 %v2429_v6, 16  ;;  %v8827_v44 = vld [vmem:[#allocation9 + $0x8d4] ss:$8 sps:$4 sm:$0xff]   ;;  %v4904_v1 = vrot.slane %v8636_v11, 4  ;;  %5188 = vmatmul.mubr.bf16.gmra.mrb[16].mxu0 %v8768_v16  ;;  %6458 = vmatpush1.bf16.msra.mxu1 %v8823_v52 }
 0x25c   : > { %v2699_v28 = vrot.slane %v2697_v38, 3  ;;  %v2695_v32 = vor.u32 %v2694_v5, %v2691_v12  ;;  %v2702_v3 = vrot.slane %v2700_v17, 4  ;;  %v2675_v43 = vshll.u32 %v2429_v6, 16  ;;  %v7365_v50 = vld [vmem:[#allocation2 + $0x110] sm:$0xf]  ;;  %5774 = vmatpush1.bf16.msra.mxu0 %v8749_v21  ;;  %5197 = vmatprep.mubr.bf16.mxu0 %v8797_v47 }
 0x25d   : > { %v4890_v53 = vsel %vm1114_vm1, %v4888_v31, %v4889_v23  ;;  %v2674_v18 = vrot.slane %v2672_v27, 3  ;;  %v2680_v9 = vshrl.u32 %v7365_v50, 16  ;;  %v2683_v15 = vshll.u32 %v7365_v50, 16  ;;  %v5261_v35 = vld [vmem:[#allocation2 + $0x58] sm:$0x1f]  ;;  %5775 = vmatprep.subr.bf16.mxu0 %v8757_v34  ;;  %6443 = vmatprep.subr.bf16.mxu1 %v8827_v44 }
 0x25e   : > { %v4899_v13 = vsel %vm1114_vm1, %v4897_v24, %v4898_v49  ;;  %v2653_v61 = vsel %vm434_vm4, %v2644_v4, %v2652_v59  ;;  %v8836_v39 = vld [vmem:[#allocation9 + $0x8d0] ss:$8 sps:$4 sm:$0xff]   ;;  %v2703_v11 = vor.u32 %v2702_v3, %v2699_v28  ;;  %v2677_v20 = vrot.slane %v2675_v43, 4  ;;  %v8838_v16 = vld [vmem:[#allocation2 + $0x120] sm:$0xf0] }
 0x25f   : > { %v2682_v31 = vrot.slane %v2680_v9, 3  ;;  %v2685_v23 = vrot.slane %v2683_v15, 4  ;;  %v5294_v21 = vshrl.u32 %v8630_v56, 16  ;;  %v5297_v47 = vshll.u32 %v8630_v56, 16  ;;  %v5269_v40 = vld [vmem:[#allocation2 + $0xd8] sm:$0x1f]  ;;  %3007 = vmatmul.mubr.bf16.gmra.mrb[24].mxu1 %v2653_v61 }
 0x260   : > { %v8845_v24 = vsel %vm1114_vm1, %v4894_v58, %v4895_v60  ;;  %v2704_v49 = vsel %vm434_vm4, %v2695_v32, %v2703_v11  ;;  %v8850_v6 = vsel %vm1114_vm1, %v4903_v30, %v4904_v1  ;;  %v8852_v34 = vld [vmem:[#allocation9 + $0x8e4] ss:$8 sps:$4 sm:$0xff]   ;;  %v5302_v8 = vshrl.u32 %v5261_v35, 16  ;;  %5776 = vmatpush1.bf16.msra.mxu0 %v8771_v22  ;;  %v5260_v17 = vld [vmem:[#allocation2 + $0x50] sm:$0x1f]  ;;  %6459 = vmatpush1.bf16.msra.mxu1 %v8836_v39 }
 0x261   : > { %v2678_v4 = vor.u32 %v2677_v20, %v2674_v18  ;;  %v4900_v10 = vrot.slane %v8838_v16, 4  ;;  %v4901_v56 = vrot.slane %v8656_v45, 4  ;;  %v5305_v38 = vshll.u32 %v5261_v35, 16  ;;  %3016 = vmatprep.mubr.bf16.mxu1 %v2704_v49  ;;  %5777 = vmatprep.subr.bf16.mxu0 %v8782_v55  ;;  %v8861_v60 = vld [vmem:[#allocation9 + $0x8e0] ss:$8 sps:$4 sm:$0xff]  }
 0x262   : > { %v2686_v58 = vor.u32 %v2685_v23, %v2682_v31  ;;  %v5430_v59 = vshrl.u32 %v8731_v57, 16  ;;  %v5433_v12 = vshll.u32 %v8731_v57, 16  ;;  %v5438_v5 = vshrl.u32 %v5269_v40, 16  ;;  %6444 = vmatprep.subr.bf16.mxu1 %v8852_v34  ;;  %v8870_v32 = vld [vmem:[#allocation9 + $0x8f4] ss:$8 sps:$4 sm:$0xff]  }
 0x263   : > { %v8863_v28 = vrot.slane %v5294_v21, 4  ;;  %v8865_v30 = vrot.slane %v5297_v47, 5  ;;  %v8867_v27 = vrot.slane %v5302_v8, 4  ;;  %v5441_v22 = vshll.u32 %v5269_v40, 16  ;;  %5198 = vmatmul.mubr.bf16.gmra.mrb[20].mxu0 %v4890_v53  ;;  %v5268_v15 = vld [vmem:[#allocation2 + $0xd0] sm:$0x1f] }
 0x264   : > { %v5432_v57 = vrot.slane %v5430_v59, 4  ;;  %v5435_v3 = vrot.slane %v5433_v12, 5  ;;  %v5440_v1 = vrot.slane %v5438_v5, 4  ;;  %v5277_v55 = vshrl.u32 %v8643_v48, 16  ;;  %5778 = vmatpush1.bf16.msra.mxu0 %v8784_v54  ;;  %5207 = vmatprep.mubr.bf16.mxu0 %v4899_v13  ;;  %v5263_v31 = vld [vmem:[#allocation2 + $0x78] sm:$0x1f] }
 0x265   : > { %v5307_v43 = vrot.slane %v5305_v38, 5  ;;  %v5443_v18 = vrot.slane %v5441_v22, 5  ;;  %v5280_v50 = vshll.u32 %v8643_v48, 16  ;;  %v5285_v9 = vshrl.u32 %v5260_v17, 16  ;;  %5779 = vmatprep.subr.bf16.mxu0 %v8790_v7  ;;  %6460 = vmatpush1.bf16.msra.mxu1 %v8861_v60  ;;  %v8878_v53 = vld [vmem:[#allocation9 + $0x8f0] ss:$8 sps:$4 sm:$0xff]  }
 0x266   : > { %v2687_v35 = vsel %vm434_vm4, %v2678_v4, %v2686_v58  ;;  %v5436_v61 = vor.u32 %v5435_v3, %v5432_v57  ;;  %v5279_v11 = vrot.slane %v5277_v55, 4  ;;  %v5288_v20 = vshll.u32 %v5260_v17, 16  ;;  %6445 = vmatprep.subr.bf16.mxu1 %v8870_v32  ;;  %v5271_v58 = vld [vmem:[#allocation2 + $0xf8] sm:$0x1f] }
 0x267   : > { %v5300_v48 = vor.u32 %v8865_v30, %v8863_v28  ;;  %v5444_v23 = vor.u32 %v5443_v18, %v5440_v1  ;;  %v5282_v21 = vrot.slane %v5280_v50, 5  ;;  %v5287_v47 = vrot.slane %v5285_v9, 4  ;;  %3017 = vmatmul.mubr.bf16.gmra.mrb[28].mxu1 %v2687_v35  ;;  %v5262_v50 = vld [vmem:[#allocation2 + $0x70] sm:$0x1f] }
 0x268   : > { %v5290_v54 = vrot.slane %v5288_v20, 5  ;;  %v5421_v13 = vshrl.u32 %v5268_v15, 16  ;;  %v5424_v40 = vshll.u32 %v5268_v15, 16  ;;  %v5328_v49 = vshrl.u32 %v8654_v0, 16  ;;  %5780 = vmatpush1.bf16.msra.mxu0 %v8804_v41  ;;  %v5270_v15 = vld [vmem:[#allocation2 + $0xf0] sm:$0x1f] }
 0x269   : > { %v5308_v7 = vor.u32 %v5307_v43, %v8867_v27  ;;  %v5445_v8 = vsel %vm1774_vm8, %v5436_v61, %v5444_v23  ;;  %v5331_v4 = vshll.u32 %v8654_v0, 16  ;;  %v5336_v38 = vshrl.u32 %v5263_v31, 16  ;;  %5781 = vmatprep.subr.bf16.mxu0 %v8809_v51  ;;  %6461 = vmatpush1.bf16.msra.mxu1 %v8878_v53 }
 0x26a   : > { %5829 = vmatprep.mubr.bf16.mxu1 %v5445_v8  ;;  %v5283_v59 = vor.u32 %v5282_v21, %v5279_v11  ;;  %v5419_v12 = vor.u32 %v8787_v2, %v8775_v26  ;;  %v5423_v5 = vrot.slane %v5421_v13, 4  ;;  %v5426_v17 = vrot.slane %v5424_v40, 5  ;;  %v5265_v21 = vld [vmem:[#allocation2 + $0x98] sm:$0x1f] }
 0x26b   : > { %v5291_v28 = vor.u32 %v5290_v54, %v5287_v47  ;;  %v8892_v30 = vrot.slane %v5328_v49, 4  ;;  %v5339_v27 = vshll.u32 %v5263_v31, 16  ;;  %v5464_v0 = vshrl.u32 %v8763_v25, 16  ;;  %5208 = vmatmul.mubr.bf16.gmra.mrb[24].mxu0 %v8845_v24 }
 0x26c   : > { %v5427_v22 = vor.u32 %v5426_v17, %v5423_v5  ;;  %v8895_v57 = vrot.slane %v5331_v4, 5  ;;  %v5467_v41 = vshll.u32 %v8763_v25, 16  ;;  %v5472_v3 = vshrl.u32 %v5271_v58, 16  ;;  %5782 = vmatpush1.bf16.msra.mxu0 %v8823_v52  ;;  %5217 = vmatprep.mubr.bf16.mxu0 %v8850_v6 }
 0x26d   : > { %v8899_v26 = vrot.slane %v5336_v38, 4  ;;  %v8901_v2 = vrot.slane %v5339_v27, 5  ;;  %v5466_v51 = vrot.slane %v5464_v0, 4  ;;  %v5475_v1 = vshll.u32 %v5271_v58, 16  ;;  %5783 = vmatprep.subr.bf16.mxu0 %v8827_v44  ;;  %v5273_v38 = vld [vmem:[#allocation2 + $0x118] sm:$0x1f] }
 0x26e   : > { %v5428_v55 = vsel %vm1774_vm8, %v5419_v12, %v5427_v22  ;;  %v5469_v43 = vrot.slane %v5467_v41, 5  ;;  %v5474_v18 = vrot.slane %v5472_v3, 4  ;;  %v4902_v25 = vsel %vm1114_vm1, %v4900_v10, %v4901_v56  ;;  %v5264_v41 = vld [vmem:[#allocation2 + $0x90] sm:$0x1f] }
 0x26f   : > { %v5309_v24 = vsel %vm1774_vm8, %v5300_v48, %v5308_v7  ;;  %v5477_v9 = vrot.slane %v5475_v1, 5  ;;  %v5311_v52 = vshrl.u32 %v8674_v63, 16  ;;  %v8915_v6 = vsel %vm1774_vm8, %v5283_v59, %v5291_v28  ;;  %5830 = vmatmul.mubr.bf16.vlgmr.msra.gmra.mrb[32].mxu1 %v5428_v55  ;;  %v5272_v55 = vld [vmem:[#allocation2 + $0x110] sm:$0x1f] }
 0x270   : > { %v5470_v35 = vor.u32 %v5469_v43, %v5466_v51  ;;  %v5314_v61 = vshll.u32 %v8674_v63, 16  ;;  %v5447_v44 = vshrl.u32 %v8779_v14, 16  ;;  %v5334_v45 = vor.u32 %v8895_v57, %v8892_v30  ;;  %5784 = vmatpush1.bf16.msra.mxu0 %v8836_v39 }
 0x271   : > { %v5342_v10 = vor.u32 %v8901_v2, %v8899_v26  ;;  %v5478_v56 = vor.u32 %v5477_v9, %v5474_v18  ;;  %v5319_v11 = vshrl.u32 %v5262_v50, 16  ;;  %v5322_v20 = vshll.u32 %v5262_v50, 16  ;;  %5785 = vmatprep.subr.bf16.mxu0 %v8852_v34 }
 0x272   : > { %v5449_v31 = vrot.slane %v5447_v44, 4  ;;  %v5450_v48 = vshll.u32 %v8779_v14, 16  ;;  %v5455_v23 = vshrl.u32 %v5270_v15, 16  ;;  %v8927_v47 = vrot.slane %v5311_v52, 4 }
 0x273   : > { %v5479_v63 = vsel %vm1774_vm8, %v5470_v35, %v5478_v56  ;;  %v5458_v54 = vshll.u32 %v5270_v15, 16  ;;  %v5362_v13 = vshrl.u32 %v8684_v37, 16  ;;  %v8930_v40 = vrot.slane %v5314_v61, 5  ;;  %5218 = vmatmul.mubr.bf16.gmra.mrb[28].mxu0 %v4902_v25 }
 0x274   : > { %5839 = vmatprep.mubr.bf16.mxu1 %v5479_v63  ;;  %v5452_v49 = vrot.slane %v5450_v48, 5  ;;  %v5457_v39 = vrot.slane %v5455_v23, 4  ;;  %v5365_v7 = vshll.u32 %v8684_v37, 16  ;;  %v8933_v14 = vrot.slane %v5319_v11, 4  ;;  %5786 = vmatpush1.bf16.msra.mxu0 %v8861_v60 }
 0x275   : > { %v5460_v8 = vrot.slane %v5458_v54, 5  ;;  %v5370_v4 = vshrl.u32 %v5265_v21, 16  ;;  %v5373_v34 = vshll.u32 %v5265_v21, 16  ;;  %5789 = vmatprep.mubr.bf16.mxu0 %v5309_v24  ;;  %v5324_v58 = vrot.slane %v5322_v20, 5  ;;  %5787 = vmatprep.subr.bf16.mxu0 %v8870_v32  ;;  %v493_v20 = vld [vmem:[#allocation2 + $0x138] sm:$0x10] }
 0x276   : > { %v5453_v59 = vor.u32 %v5452_v49, %v5449_v31  ;;  %v5364_v12 = vrot.slane %v5362_v13, 4  ;;  %v5498_v5 = vshrl.u32 %v8794_v42, 16  ;;  %v5367_v28 = vrot.slane %v5365_v7, 5 }
 0x277   : > { %v5461_v17 = vor.u32 %v5460_v8, %v5457_v39  ;;  %v5372_v37 = vrot.slane %v5370_v4, 4  ;;  %v5501_v30 = vshll.u32 %v8794_v42, 16  ;;  %v5375_v27 = vrot.slane %v5373_v34, 5 }
 0x278   : > { %v5500_v0 = vrot.slane %v5498_v5, 4  ;;  %v5506_v22 = vshrl.u32 %v5273_v38, 16  ;;  %v5509_v57 = vshll.u32 %v5273_v38, 16  ;;  %v5343_v60 = vsel %vm1774_vm8, %v5334_v45, %v5342_v10  ;;  %5788 = vmatpush1.bf16.msra.mxu0 %v8878_v53  ;;  %v5267_v45 = vld [vmem:[#allocation2 + $0xb8] sm:$0x1f] }
 0x279   : > { %v5462_v3 = vsel %vm1774_vm8, %v5453_v59, %v5461_v17  ;;  %v5503_v26 = vrot.slane %v5501_v30, 5  ;;  %v5345_v2 = vshrl.u32 %v8691_v46, 16  ;;  %v5317_v32 = vor.u32 %v8930_v40, %v8927_v47 }
 0x27a   : > { %5840 = vmatmul.mubr.bf16.gmra.mrb[36].mxu1 %v5462_v3  ;;  %v5508_v51 = vrot.slane %v5506_v22, 4  ;;  %v5511_v42 = vrot.slane %v5509_v57, 5  ;;  %v5348_v1 = vshll.u32 %v8691_v46, 16  ;;  %v5325_v43 = vor.u32 %v5324_v58, %v8933_v14  ;;  %v5266_v14 = vld [vmem:[#allocation2 + $0xb0] sm:$0x1f] }
 0x27b   : > { %v5368_v18 = vor.u32 %v5367_v28, %v5364_v12  ;;  %v5504_v50 = vor.u32 %v5503_v26, %v5500_v0  ;;  %v5353_v25 = vshrl.u32 %v5264_v41, 16  ;;  %v5376_v24 = vor.u32 %v5375_v27, %v5372_v37  ;;  %5790 = vmatmul.mubr.bf16.vlgmr.msra.gmra.mrb[0].mxu0 %v8915_v6 }
 0x27c   : > { %v5512_v9 = vor.u32 %v5511_v42, %v5508_v51  ;;  %v5356_v52 = vshll.u32 %v5264_v41, 16  ;;  %v5481_v15 = vshrl.u32 %v8801_v29, 16  ;;  %v5347_v53 = vrot.slane %v5345_v2, 4  ;;  %5799 = vmatprep.mubr.bf16.mxu0 %v5343_v60 }
 0x27d   : > { %v5484_v35 = vshll.u32 %v8801_v29, 16  ;;  %v5489_v61 = vshrl.u32 %v5272_v55, 16  ;;  %v5492_v44 = vshll.u32 %v5272_v55, 16  ;;  %v5350_v10 = vrot.slane %v5348_v1, 5 }
 0x27e   : > { %v5513_v46 = vsel %vm1774_vm8, %v5504_v50, %v5512_v9  ;;  %v5483_v56 = vrot.slane %v5481_v15, 4  ;;  %v5396_v11 = vshrl.u32 %v8706_v36, 16  ;;  %v5355_v31 = vrot.slane %v5353_v25, 4 }
 0x27f   : > { %5849 = vmatprep.mubr.bf16.mxu1 %v5513_v46  ;;  %v5486_v48 = vrot.slane %v5484_v35, 5  ;;  %v5491_v23 = vrot.slane %v5489_v61, 4  ;;  %v5494_v21 = vrot.slane %v5492_v44, 5  ;;  %v5358_v6 = vrot.slane %v5356_v52, 5 }
 0x280   : > { %v5399_v63 = vshll.u32 %v8706_v36, 16  ;;  %v5404_v29 = vshrl.u32 %v5267_v45, 16  ;;  %v5407_v47 = vshll.u32 %v5267_v45, 16  ;;  %v494_v40 = vsel %vm8230_vm7, 0, %v493_v20  ;;  %v490_v36 = vld [vmem:[#allocation2 + $0x130] sm:$0x10] }
 0x281   : > { %v5487_v54 = vor.u32 %v5486_v48, %v5483_v56  ;;  %v5495_v13 = vor.u32 %v5494_v21, %v5491_v23  ;;  %v5326_v49 = vsel %vm1774_vm8, %v5317_v32, %v5325_v43  ;;  %v5377_v39 = vsel %vm1774_vm8, %v5368_v18, %v5376_v24  ;;  %495 = vst [vmem:[#allocation2 + $0x138] sm:$0x10] %v494_v40 }
 0x282   : > { %v5398_v7 = vrot.slane %v5396_v11, 4  ;;  %v5401_v4 = vrot.slane %v5399_v63, 5  ;;  %v5406_v34 = vrot.slane %v5404_v29, 4  ;;  %v5409_v38 = vrot.slane %v5407_v47, 5 }
 0x283   : > { %v5496_v8 = vsel %vm1774_vm8, %v5487_v54, %v5495_v13  ;;  %v5351_v58 = vor.u32 %v5350_v10, %v5347_v53  ;;  %v5359_v59 = vor.u32 %v5358_v6, %v5355_v31  ;;  %v5532_v12 = vshrl.u32 %v8814_v19, 16  ;;  %5800 = vmatmul.mubr.bf16.gmra.mrb[4].mxu0 %v5326_v49 }
 0x284   : > { %5850 = vmatmul.mubr.bf16.gmra.mrb[40].mxu1 %v5496_v8  ;;  %v5535_v5 = vshll.u32 %v8814_v19, 16  ;;  %v5379_v17 = vshrl.u32 %v8713_v33, 16  ;;  %v5382_v28 = vshll.u32 %v8713_v33, 16  ;;  %5809 = vmatprep.mubr.bf16.mxu0 %v5377_v39  ;;  %v5387_v37 = vshrl.u32 %v5266_v14, 16 }
 0x285   : > { %v5390_v30 = vshll.u32 %v5266_v14, 16  ;;  %v491_v27 = vsel %vm8230_vm7, 0, %v490_v36  ;;  %v5402_v0 = vor.u32 %v5401_v4, %v5398_v7  ;;  %v5410_v22 = vor.u32 %v5409_v38, %v5406_v34 }
 0x286   : > { %492 = vst [vmem:[#allocation2 + $0x130] sm:$0x10] %v491_v27  ;;  %v5360_v57 = vsel %vm1774_vm8, %v5351_v58, %v5359_v59  ;;  %v5534_v41 = vrot.slane %v5532_v12, 4  ;;  %v5537_v60 = vrot.slane %v5535_v5, 5  ;;  %v5381_v19 = vrot.slane %v5379_v17, 4 }
 0x287   : > { %v5384_v26 = vrot.slane %v5382_v28, 5  ;;  %v5515_v2 = vshrl.u32 %v8838_v16, 16  ;;  %v5518_v33 = vshll.u32 %v8838_v16, 16  ;;  %v5389_v42 = vrot.slane %v5387_v37, 4 }
 0x288   : > { %v5275_v3 = vld [vmem:[#allocation2 + $0x138] sm:$0x1f]  ;;  %v5392_v1 = vrot.slane %v5390_v30, 5  ;;  %v5411_v62 = vsel %vm1774_vm8, %v5402_v0, %v5410_v22  ;;  %v5538_v55 = vor.u32 %v5537_v60, %v5534_v41 }
 0x289   : > { %v5540_v32 = vshrl.u32 %v5275_v3, 16  ;;  %v5543_v51 = vshll.u32 %v5275_v3, 16  ;;  %v5517_v50 = vrot.slane %v5515_v2, 4  ;;  %v5520_v25 = vrot.slane %v5518_v33, 5 }
 0x28a   : > { %v5385_v9 = vor.u32 %v5384_v26, %v5381_v19  ;;  %v5393_v52 = vor.u32 %v5392_v1, %v5389_v42 }
 0x28b   : > { %v5542_v43 = vrot.slane %v5540_v32, 4  ;;  %v5545_v18 = vrot.slane %v5543_v51, 5  ;;  %5810 = vmatmul.mubr.bf16.gmra.mrb[8].mxu0 %v5360_v57  ;;  %v5521_v61 = vor.u32 %v5520_v25, %v5517_v50 }
 0x28c   : > { %5819 = vmatprep.mubr.bf16.mxu0 %v5411_v62  ;;  %v5394_v46 = vsel %vm1774_vm8, %v5385_v9, %v5393_v52 }
 0x28d   : > { %v5546_v24 = vor.u32 %v5545_v18, %v5542_v43  ;;  %v5274_v15 = vld [vmem:[#allocation2 + $0x130] sm:$0x1f] }
 0x28e   : > { %v5523_v53 = vshrl.u32 %v5274_v15, 16  ;;  %v5526_v35 = vshll.u32 %v5274_v15, 16 }
 0x28f   : > { %v5547_v16 = vsel %vm1774_vm8, %v5538_v55, %v5546_v24 }
 0x290   : > { %5859 = vmatprep.mubr.bf16.mxu1 %v5547_v16  ;;  %v5525_v44 = vrot.slane %v5523_v53, 4  ;;  %v5528_v45 = vrot.slane %v5526_v35, 5 }
 0x292   : > { %v5529_v10 = vor.u32 %v5528_v45, %v5525_v44 }
 0x293   : > { %5820 = vmatmul.mubr.bf16.gmra.mrb[12].mxu0 %v5394_v46 }
 0x294   : > { %v5530_v56 = vsel %vm1774_vm8, %v5521_v61, %v5529_v10 }
 0x295   : > { %5860 = vmatmul.mubr.bf16.gmra.mrb[44].mxu1 %v5530_v56 }
 0x2fd   : > { %v8971_v11 = vpop.f32.mrb[0].mxu1 }
 0x2fe   : > { %v8973_v20 = vpop.f32.mrb[1].mxu1 }
 0x2ff   : > { %v8975_v31 = vpop.f32.mrb[2].mxu1 }
 0x300   : > { %v8977_v48 = vpop.f32.mrb[3].mxu1 }
 0x309   : > { %v8979_v23 = vpop.f32.mrb[4].mxu1 }
 0x30a   : > { %v8981_v21 = vpop.f32.mrb[5].mxu1 }
 0x30b   : > { %v8983_v6 = vpop.f32.mrb[6].mxu1 }
 0x30c   : > { %v8985_v63 = vpop.f32.mrb[7].mxu1 }
 0x311   : > { %v8987_v29 = vpop.f32.mrb[8].mxu1 }
 0x312   : > { %v8989_v47 = vpop.f32.mrb[9].mxu1 }
 0x313   : > { %v8991_v54 = vpop.f32.mrb[10].mxu1 }
 0x314   : > { %v8993_v13 = vpop.f32.mrb[11].mxu1 }
 0x319   : > { %v8995_v40 = vpop.f32.mrb[12].mxu1 }
 0x31a   : > { %v8997_v49 = vpop.f32.mrb[13].mxu1 }
 0x31b   : > { %v8999_v39 = vpop.f32.mrb[14].mxu1 }
 0x31c   : > { %v9001_v7 = vpop.f32.mrb[15].mxu1 }
 0x321   : > { %v2988_v14 = vpop.f32.mrb[16].mxu1 }
 0x322   : > { %v2990_v8 = vpop.f32.mrb[17].mxu1 }
 0x323   : > { %v2992_v4 = vpop.f32.mrb[18].mxu1 }
 0x324   : > { %v2994_v34 = vpop.f32.mrb[19].mxu1 }
 0x329   : > { %v2998_v38 = vpop.f32.mrb[20].mxu1 }
 0x32a   : > { %v3000_v36 = vpop.f32.mrb[21].mxu1 }
 0x32b   : > { %v3002_v58 = vpop.f32.mrb[22].mxu1 }
 0x32c   : > { %v3004_v59 = vpop.f32.mrb[23].mxu1 }
 0x32e   : > { %v5189_v12 = vpop.f32.mrb[16].mxu0 }
 0x32f   : > { %v6478_v5 = vadd.f32 %v5189_v12, %v2988_v14  ;;  %v5191_v17 = vpop.f32.mrb[17].mxu0 }
 0x330   : > { %v6480_v28 = vadd.f32 %v5191_v17, %v2990_v8  ;;  %v5193_v37 = vpop.f32.mrb[18].mxu0 }
 0x331   : > { %v6482_v30 = vadd.f32 %v5193_v37, %v2992_v4  ;;  %v5195_v27 = vpop.f32.mrb[19].mxu0 }
 0x332   : > { %v6484_v0 = vadd.f32 %v5195_v27, %v2994_v34  ;;  %v3008_v22 = vpop.f32.mrb[24].mxu1 }
 0x333   : > { %v3010_v57 = vpop.f32.mrb[25].mxu1 }
 0x334   : > { %v3012_v41 = vpop.f32.mrb[26].mxu1 }
 0x335   : > { %v3014_v60 = vpop.f32.mrb[27].mxu1 }
 0x336   : > { %v5199_v3 = vpop.f32.mrb[20].mxu0 }
 0x337   : > { %v6486_v19 = vadd.f32 %v5199_v3, %v2998_v38  ;;  %v5201_v26 = vpop.f32.mrb[21].mxu0 }
 0x338   : > { %v6488_v2 = vadd.f32 %v5201_v26, %v3000_v36  ;;  %v5203_v33 = vpop.f32.mrb[22].mxu0 }
 0x339   : > { %v6490_v32 = vadd.f32 %v5203_v33, %v3002_v58  ;;  %v5205_v51 = vpop.f32.mrb[23].mxu0 }
 0x33a   : > { %v6492_v42 = vadd.f32 %v5205_v51, %v3004_v59  ;;  %v3018_v1 = vpop.f32.mrb[28].mxu1 }
 0x33b   : > { %v3020_v62 = vpop.f32.mrb[29].mxu1 }
 0x33c   : > { %v3022_v55 = vpop.f32.mrb[30].mxu1 }
 0x33d   : > { %v3024_v43 = vpop.f32.mrb[31].mxu1 }
 0x33e   : > { %v5209_v18 = vpop.f32.mrb[24].mxu0 }
 0x33f   : > { %v6494_v50 = vadd.f32 %v5209_v18, %v3008_v22  ;;  %v5211_v25 = vpop.f32.mrb[25].mxu0 }
 0x340   : > { %v6496_v24 = vadd.f32 %v5211_v25, %v3010_v57  ;;  %v5213_v9 = vpop.f32.mrb[26].mxu0 }
 0x341   : > { %v6498_v52 = vadd.f32 %v5213_v9, %v3012_v41  ;;  %v5215_v15 = vpop.f32.mrb[27].mxu0 }
 0x342   : > { %v9003_v53 = vadd.f32 %v5215_v15, %v3014_v60  ;;  %v5831_v35 = vpop.f32.mrb[32].mxu1 }
 0x343   : > { %v6479_v16 = vadd.f32 %v6478_v5, %v5831_v35  ;;  %v5833_v61 = vpop.f32.mrb[33].mxu1 }
 0x344   : > { %v6481_v44 = vadd.f32 %v6480_v28, %v5833_v61  ;;  %v5835_v45 = vpop.f32.mrb[34].mxu1 }
 0x345   : > { %5918 = vst [vmem:[%s9007_s20 + $0x80] sm:$0xff] %v6479_v16  ;;  %v6483_v46 = vadd.f32 %v6482_v30, %v5835_v45  ;;  %v5837_v10 = vpop.f32.mrb[35].mxu1 }
 0x346   : > { %v5219_v56 = vpop.f32.mrb[28].mxu0  ;;  %5919 = vst [vmem:[%s9007_s20 + $0x88] sm:$0xff] %v6481_v44  ;;  %v6485_v14 = vadd.f32 %v6484_v0, %v5837_v10 }
 0x347   : > { %v9011_v8 = vadd.f32 %v5219_v56, %v3018_v1  ;;  %v5221_v4 = vpop.f32.mrb[29].mxu0  ;;  %5920 = vst [vmem:[%s9007_s20 + $0x90] sm:$0xff] %v6483_v46 }
 0x348   : > { %v9014_v34 = vadd.f32 %v5221_v4, %v3020_v62  ;;  %v5223_v38 = vpop.f32.mrb[30].mxu0  ;;  %5921 = vst [vmem:[%s9007_s20 + $0x98] sm:$0xff] %v6485_v14 }
 0x349   : > { %v9017_v36 = vadd.f32 %v5223_v38, %v3022_v55  ;;  %v5225_v58 = vpop.f32.mrb[31].mxu0 }
 0x34a   : > { %v9019_v59 = vadd.f32 %v5225_v58, %v3024_v43 }
 0x34d   : > { %v5841_v12 = vpop.f32.mrb[36].mxu1 }
 0x34e   : > { %v6487_v5 = vadd.f32 %v6486_v19, %v5841_v12  ;;  %v5843_v17 = vpop.f32.mrb[37].mxu1  ;;  %v5791_v30 = vpop.f32.mrb[0].mxu0 }
 0x34f   : > { %v6489_v28 = vadd.f32 %v6488_v2, %v5843_v17  ;;  %v5845_v37 = vpop.f32.mrb[38].mxu1  ;;  %v6462_v22 = vadd.f32 %v5791_v30, %v8971_v11  ;;  %v5793_v57 = vpop.f32.mrb[1].mxu0 }
 0x350   : > { %5922 = vst [vmem:[%s9007_s20 + $0xa0] sm:$0xff] %v6487_v5  ;;  %v6491_v27 = vadd.f32 %v6490_v32, %v5845_v37  ;;  %v5847_v0 = vpop.f32.mrb[39].mxu1  ;;  %v6463_v60 = vadd.f32 %v5793_v57, %v8973_v20  ;;  %v5795_v3 = vpop.f32.mrb[2].mxu0 }
 0x351   : > { %5923 = vst [vmem:[%s9007_s20 + $0xa8] sm:$0xff] %v6489_v28  ;;  %v6493_v41 = vadd.f32 %v6492_v42, %v5847_v0  ;;  %5902 = vst [vmem:[%s9007_s20] sm:$0xff] %v6462_v22  ;;  %v6464_v19 = vadd.f32 %v5795_v3, %v8975_v31  ;;  %v5797_v26 = vpop.f32.mrb[3].mxu0 }
 0x352   : > { %5924 = vst [vmem:[%s9007_s20 + $0xb0] sm:$0xff] %v6491_v27  ;;  %5903 = vst [vmem:[%s9007_s20 + $0x8] sm:$0xff] %v6463_v60  ;;  %v6465_v2 = vadd.f32 %v5797_v26, %v8977_v48 }
 0x353   : > { %5925 = vst [vmem:[%s9007_s20 + $0xb8] sm:$0xff] %v6493_v41  ;;  %5904 = vst [vmem:[%s9007_s20 + $0x10] sm:$0xff] %v6464_v19 }
 0x354   : > { %5905 = vst [vmem:[%s9007_s20 + $0x18] sm:$0xff] %v6465_v2 }
 0x356   : > { %v5801_v33 = vpop.f32.mrb[4].mxu0 }
 0x357   : > { %v5851_v11 = vpop.f32.mrb[40].mxu1  ;;  %v6466_v51 = vadd.f32 %v5801_v33, %v8979_v23  ;;  %v5803_v42 = vpop.f32.mrb[5].mxu0 }
 0x358   : > { %v6495_v32 = vadd.f32 %v6494_v50, %v5851_v11  ;;  %v5853_v20 = vpop.f32.mrb[41].mxu1  ;;  %v6467_v48 = vadd.f32 %v5803_v42, %v8981_v21  ;;  %v5805_v62 = vpop.f32.mrb[6].mxu0 }
 0x359   : > { %v6497_v31 = vadd.f32 %v6496_v24, %v5853_v20  ;;  %v5855_v1 = vpop.f32.mrb[42].mxu1  ;;  %5906 = vst [vmem:[%s9007_s20 + $0x20] sm:$0xff] %v6466_v51  ;;  %v6468_v18 = vadd.f32 %v5805_v62, %v8983_v6  ;;  %v5807_v50 = vpop.f32.mrb[7].mxu0 }
 0x35a   : > { %5926 = vst [vmem:[%s9007_s20 + $0xc0] sm:$0xff] %v6495_v32  ;;  %v6499_v55 = vadd.f32 %v6498_v52, %v5855_v1  ;;  %v5857_v43 = vpop.f32.mrb[43].mxu1  ;;  %5907 = vst [vmem:[%s9007_s20 + $0x28] sm:$0xff] %v6467_v48  ;;  %v6469_v25 = vadd.f32 %v5807_v50, %v8985_v63 }
 0x35b   : > { %5927 = vst [vmem:[%s9007_s20 + $0xc8] sm:$0xff] %v6497_v31  ;;  %v6501_v23 = vadd.f32 %v9003_v53, %v5857_v43  ;;  %5908 = vst [vmem:[%s9007_s20 + $0x30] sm:$0xff] %v6468_v18 }
 0x35c   : > { %5928 = vst [vmem:[%s9007_s20 + $0xd0] sm:$0xff] %v6499_v55  ;;  %5909 = vst [vmem:[%s9007_s20 + $0x38] sm:$0xff] %v6469_v25 }
 0x35d   : > { %5929 = vst [vmem:[%s9007_s20 + $0xd8] sm:$0xff] %v6501_v23 }
 0x35e   : > { %v5811_v21 = vpop.f32.mrb[8].mxu0 }
 0x35f   : > { %v6470_v24 = vadd.f32 %v5811_v21, %v8987_v29  ;;  %v5813_v6 = vpop.f32.mrb[9].mxu0 }
 0x360   : > { %v6471_v9 = vadd.f32 %v5813_v6, %v8989_v47  ;;  %v5815_v52 = vpop.f32.mrb[10].mxu0 }
 0x361   : > { %5910 = vst [vmem:[%s9007_s20 + $0x40] sm:$0xff] %v6470_v24  ;;  %v6472_v15 = vadd.f32 %v5815_v52, %v8991_v54  ;;  %v5817_v53 = vpop.f32.mrb[11].mxu0 }
 0x362   : > { %5911 = vst [vmem:[%s9007_s20 + $0x48] sm:$0xff] %v6471_v9  ;;  %v6473_v63 = vadd.f32 %v5817_v53, %v8993_v13 }
 0x363   : > { %5912 = vst [vmem:[%s9007_s20 + $0x50] sm:$0xff] %v6472_v15 }
 0x364   : > { %5913 = vst [vmem:[%s9007_s20 + $0x58] sm:$0xff] %v6473_v63 }
 0x366   : > { %v5821_v29 = vpop.f32.mrb[12].mxu0 }
 0x367   : > { %v6474_v47 = vadd.f32 %v5821_v29, %v8995_v40  ;;  %v5823_v16 = vpop.f32.mrb[13].mxu0 }
 0x368   : > { %v5861_v35 = vpop.f32.mrb[44].mxu1  ;;  %v6475_v61 = vadd.f32 %v5823_v16, %v8997_v49  ;;  %v5825_v13 = vpop.f32.mrb[14].mxu0 }
 0x369   : > { %v6503_v54 = vadd.f32 %v9011_v8, %v5861_v35  ;;  %v5863_v44 = vpop.f32.mrb[45].mxu1  ;;  %5914 = vst [vmem:[%s9007_s20 + $0x60] sm:$0xff] %v6474_v47  ;;  %v6476_v40 = vadd.f32 %v5825_v13, %v8999_v39  ;;  %v5827_v10 = vpop.f32.mrb[15].mxu0 }
 0x36a   : > { %v6505_v45 = vadd.f32 %v9014_v34, %v5863_v44  ;;  %v5865_v46 = vpop.f32.mrb[46].mxu1  ;;  %5915 = vst [vmem:[%s9007_s20 + $0x68] sm:$0xff] %v6475_v61  ;;  %v6477_v49 = vadd.f32 %v5827_v10, %v9001_v7 }
 0x36b   : > { %5930 = vst [vmem:[%s9007_s20 + $0xe0] sm:$0xff] %v6503_v54  ;;  %v6507_v56 = vadd.f32 %v9017_v36, %v5865_v46  ;;  %v5867_v14 = vpop.f32.mrb[47].mxu1  ;;  %5916 = vst [vmem:[%s9007_s20 + $0x70] sm:$0xff] %v6476_v40 }
 0x36c   : > { %5931 = vst [vmem:[%s9007_s20 + $0xe8] sm:$0xff] %v6505_v45  ;;  %v6509_v39 = vadd.f32 %v9019_v59, %v5867_v14  ;;  %5917 = vst [vmem:[%s9007_s20 + $0x78] sm:$0xff] %v6477_v49 }
 0x36d   : > { %5932 = vst [vmem:[%s9007_s20 + $0xf0] sm:$0xff] %v6507_v56 }
 0x36e   : > { %5933 = vst [vmem:[%s9007_s20 + $0xf8] sm:$0xff] %v6509_v39 }
 0x36f   : > { %7497 = shalt.err (!%p7494_p0)
}
 0x370   : > { %s7498_s17 = scalar_lea.hbm %s9070_s0, 4096  ;;  %s7502_s30 = scalar_lea.hbm %s9257_s7, 16384 }
 0x371   : > { %p7499_p9 = scmp.ne.s32.totalorder %s9070_s0, %s7498_s17  ;;  %p7503_p10 = scmp.lt.u32.totalorder %s9070_s0, %s9257_s7 }
 0x372   : > { %p7504_p7 = scmp.lt.u32.totalorder %s7502_s30, %s7498_s17  ;;  %p7506_p13 = scmp.lt.u32.totalorder %s7498_s17, %s9070_s0 }
 0x373   : > { %p7500_p5 = pnand %p7499_p9, %p9258_p12 }
 0x374   : > { %p7505_p1 = por %p7504_p7, %p7503_p10 }
 0x375   : > { %p7501_p4 = pneg %p7500_p5 }
 0x376   : > { %p7507_p8 = por %p7506_p13, %p7505_p1 }
 0x378   : > { %p7508_p11 = pnand %p7507_p8, %p7501_p4 }
 0x37a   : > { %7511 = shalt.err (!%p7508_p11)
}
 0x37b   : > { %s7653_s11 = smov 256   ;;  %s7654_s20 = smov 16  }
 0x37c   : > { %6728 = dma.vmem_to_hbm [thread:$0]  (%p9258_p12), %s9072_s1, 4096, %s9070_s0, %s5935_s2, %s7653_s11, %s7653_s11, %s7654_s20  }
 0x37d PF: > { %s9259_s23 = sld [smem:[#allocation32_spill]]  ;;  %p6751_p6 = scmp.ge.s32.totalorder %s7642_s28, 2 }
 0x37e   : > { %s5966_s26 = sand.u32 1, %s7614_s21  }
 0x37f   : > { %s5967_s27 = scalar_lea.sflag [#allocation5], %s5966_s26 }
 0x383   : > { %p9260_p2 = scmp.ne.s32.totalorder %s9259_s23, 0 }
 0x385   : > { %p6745_p3 = pnand %p6751_p6, %p9260_p2 }
 0x387   : > { %7585 = dma.done.wait (!%p6745_p3), %s5967_s27, 4096  }
 0x388   : > { %7587 = vsyncadd (!%p6745_p3), %s5967_s27, 4294963200  ;;  %s24_s28 = sadd.s32 1, %s7642_s28   ;;  %s9262_s15 = sld [smem:[#allocation18_spill]] }
 0x389   : > { %p9109_p0 = scmp.ge.s32.totalorder %s24_s28, 6   ;;  %s9263_s16 = sld [smem:[#allocation19_spill]] }
 0x38a   : > { %s9264_s9 = sld [smem:[#allocation20_spill]]  ;;  %s9265_s20 = sld [smem:[#allocation30_spill]] }
 0x38b   : > { %s9266_s8 = sld [smem:[#allocation21_spill]]  ;;  %s9267_s23 = sld [smem:[#allocation31_spill]] }
 0x38c   : > { %s9268_s24 = sld [smem:[#allocation24_spill]]  ;;  %s9269_s25 = sld [smem:[#allocation25_spill]] }
 0x38d   : > { %s9270_s26 = sld [smem:[#allocation26_spill]]  ;;  %s9271_s27 = sld [smem:[#allocation27_spill]] }
 0x38e   : > { %s9272_s17 = smov %s9292_s5  ;;  %s9273_s18 = smov %s7606_s19 }
 0x38f   : > { %s9275_s21 = smov %s7618_s22  ;;  %23 = sbr.rel (!%p9109_p0) target bundleno = 19 (0x13), region = 120 }
 0x390   : > { %s9274_s19 = smov %s9264_s9 }
 0x391   : > { %s9276_s22 = smov %s9266_s8 }
 0x396   :  { %5972 = vsyncpa [#allocation4], 1 }
 0x397   :  { %5974 = vsyncpa [#allocation4 + $0x1], 1 }
 0x398   :  { %5975 = vsyncpa [#allocation7], 1 }
 0x399   :  { %5977 = vsyncpa [#allocation7 + $0x1], 1 }
 0x39a   :  { %5978 = vsyncpa [#allocation10], 1 }
 0x39b   :  { %5979 = vsyncpa [#allocation5], 1 }
 0x39c   :  { %5981 = vsyncpa [#allocation5 + $0x1], 1 }

</bundles_post_ra>
